<compile_context>
chip_gen: v7x
topology: tpu7x:2x2x1
jax: 0.10.0
libtpu: 0.0.40
codegen_flags: <defaults>
</compile_context>

<pallas_src>
import functools

import jax
import jax.numpy as jnp
from jax.experimental import pallas as pl
from jax.experimental.pallas import tpu as pltpu

NUM_CLASSES = 3
FEAT_DIM = 1024      # DenseNet-121 feature dimension expected by fc1

# GAP kernel tiling knobs. Max per-step x block = 16*256*512*4 B = 8 MiB.
B_TILE_MAX = 16      # batch rows per grid step (block == full B when B <= 16)
C_TILE = 256         # channel chunk (parallel axis -> feeds both v7x TCs)
S_TILE_MAX = 512     # spatial (lane) tile; multiple of 128


# --------------------------------------------------------------------------
# Kernel 1: global average pool over the spatial axis (the HBM-bound part).
# --------------------------------------------------------------------------
def _gap_kernel(x_ref, feat_ref, *scratch, inv_hw, hw, s_tile, multi_step):
    """Grid = (batch_tiles, C_chunks, spatial_tiles); spatial is innermost."""
    x = x_ref[...].astype(jnp.float32)            # (b_t, c_t, s_t), native f32 read

    if not multi_step:
        # Whole spatial extent in one block: single lane-axis (XLU) reduce
        # per (batch, C-chunk) tile.
        feat_ref[...] = jnp.sum(x, axis=-1) * inv_hw
        return

    acc_ref, = scratch                            # (b_t, c_t, 128) f32
    s = pl.program_id(2)

    @pl.when(s == 0)
    def _():
        acc_ref[...] = jnp.zeros_like(acc_ref)

    if hw % s_tile != 0:
        # Ragged last spatial tile: mask out-of-range lanes (no host-side pad).
        lane = jax.lax.broadcasted_iota(jnp.int32, x.shape, 2) + s * s_tile
        x = jnp.where(lane < hw, x, 0.0)

    # Wide accumulation: fold s_tile lanes into 128 with pure VPU adds so the
    # hot loop uses only vld/VALU slots; the XLU reduce is deferred to finalize.
    partial = x[:, :, 0:128]
    for f in range(1, s_tile // 128):
        partial = partial + x[:, :, f * 128:(f + 1) * 128]
    acc_ref[...] += partial

    @pl.when(s == pl.num_programs(2) - 1)
    def _():
        feat_ref[...] = jnp.sum(acc_ref[...], axis=-1) * inv_hw


def _global_avg_pool(x):
    """(B, C, H, W) float -> (B, C) f32 spatial mean, as a Pallas kernel."""
    B, C, H, W = x.shape
    HW = H * W
    # Metadata-only reshape of a contiguous array: no extra HBM pass.
    x_flat = x.reshape(B, C, HW)

    if HW <= S_TILE_MAX:
        s_tile, n_s = HW, 1                 # block dim == full dim: no padding
    else:
        s_tile, n_s = S_TILE_MAX, pl.cdiv(HW, S_TILE_MAX)
    multi_step = n_s > 1

    b_tile = B if B <= B_TILE_MAX else B_TILE_MAX
    n_b = pl.cdiv(B, b_tile)
    c_tile = C_TILE if C % C_TILE == 0 else C
    n_c = C // c_tile

    kernel = functools.partial(_gap_kernel, inv_hw=1.0 / float(HW), hw=HW,
                               s_tile=s_tile, multi_step=multi_step)
    scratch = ([pltpu.VMEM((b_tile, c_tile, 128), jnp.float32)]
               if multi_step else [])

    cost = pl.CostEstimate(
        flops=int(B * C * HW),
        transcendentals=0,
        bytes_accessed=int(B * C * HW * x.dtype.itemsize + B * C * 4))

    return pl.pallas_call(
        kernel,
        out_shape=jax.ShapeDtypeStruct((B, C), jnp.float32),
        grid_spec=pltpu.PrefetchScalarGridSpec(
            num_scalar_prefetch=0,
            grid=(n_b, n_c, n_s),
            in_specs=[pl.BlockSpec((b_tile, c_tile, s_tile),
                                   lambda b, c, s: (b, c, s))],
            out_specs=pl.BlockSpec((b_tile, c_tile), lambda b, c, s: (b, c)),
            scratch_shapes=scratch,
        ),
        compiler_params=pltpu.CompilerParams(
            dimension_semantics=("parallel", "parallel", "arbitrary"),
            vmem_limit_bytes=48 * 1024 * 1024,
        ),
        cost_estimate=cost,
    )(x_flat)


# --------------------------------------------------------------------------
# Kernel 2: the tiny MLP head, run once on the full-batch (B, 1024) feature.
# --------------------------------------------------------------------------
def _head_kernel(feat_ref, w1_ref, b1_ref, w2_ref, b2_ref, w3_ref, b3_ref,
                 out_ref):
    feat = feat_ref[...]
    h1 = jnp.maximum(
        jnp.dot(feat, w1_ref[...], preferred_element_type=jnp.float32)
        + b1_ref[...], 0.0)                                          # (B, 512)
    h2 = jnp.maximum(
        jnp.dot(h1, w2_ref[...], preferred_element_type=jnp.float32)
        + b2_ref[...], 0.0)                                          # (B, 128)

    # F.normalize(dim=1, eps=1e-12): x / max(||x||, 1e-12) == x * rsqrt(max(||x||^2, 1e-24))
    ssq = jnp.sum(h2 * h2, axis=-1, keepdims=True)
    f_out = h2 * jax.lax.rsqrt(jnp.maximum(ssq, 1e-24))              # EUP rsqrt

    l_out = jnp.dot(f_out, w3_ref[...], preferred_element_type=jnp.float32)
    l_out = l_out + b3_ref[...]                                      # (B, 128-pad)

    # Single lane-dense packed writeback: [ f_out | l_out(padded to 128) ].
    out_ref[:, 0:128] = f_out.astype(out_ref.dtype)
    out_ref[:, 128:256] = l_out.astype(out_ref.dtype)


def _mlp_head(feat, params):
    B, C = feat.shape
    w1, b1, w2, b2, w3, b3 = params
    # Pad linout to 128 output lanes for a dense store; sliced off below.
    w3p = jnp.pad(w3, ((0, 0), (0, 128 - NUM_CLASSES)))
    b3p = jnp.pad(b3, ((0, 0), (0, 128 - NUM_CLASSES)))

    b_tile = B if B <= 256 else 256
    n_b = pl.cdiv(B, b_tile)
    const = lambda b: (0, 0)

    cost = pl.CostEstimate(
        flops=int(2 * B * (C * 512 + 512 * 128 + 128 * 128)),
        transcendentals=int(B),
        bytes_accessed=int((B * C + C * 512 + 512 + 512 * 128 + 128
                            + 128 * 128 + 128 + B * 256) * 4))

    out = pl.pallas_call(
        _head_kernel,
        out_shape=jax.ShapeDtypeStruct((B, 256), jnp.float32),
        grid_spec=pltpu.PrefetchScalarGridSpec(
            num_scalar_prefetch=0,
            grid=(n_b,),
            in_specs=[
                pl.BlockSpec((b_tile, C), lambda b: (b, 0)),
                pl.BlockSpec((C, 512), const),
                pl.BlockSpec((1, 512), const),
                pl.BlockSpec((512, 128), const),
                pl.BlockSpec((1, 128), const),
                pl.BlockSpec((128, 128), const),
                pl.BlockSpec((1, 128), const),
            ],
            out_specs=pl.BlockSpec((b_tile, 256), lambda b: (b, 0)),
        ),
        compiler_params=pltpu.CompilerParams(
            dimension_semantics=("parallel",),
        ),
        cost_estimate=cost,
    )(feat, w1, b1, w2, b2, w3p, b3p)

    return out[:, :128], out[:, 128:128 + NUM_CLASSES]


def custom_model_forward(x, params):
    """x: (B, 1024, H, W) f32 NCHW.  Returns (f_out (B,128), l_out (B,3))."""
    # TODO(synk): `self.dnet` is an external DenseNet backbone passed to
    # __init__; global average pooling over its (B, 1024, H, W) feature map
    # stands in for it here.
    feat = _global_avg_pool(x)
    return _mlp_head(feat, params)


def init_params(key):
    """Deterministic init mimicking nn.Linear's U(-1/sqrt(fan_in), 1/sqrt(fan_in)).
    Weights stored as (in_features, out_features); biases as (1, out_features)."""
    dims = [(FEAT_DIM, 512), (512, 128), (128, NUM_CLASSES)]
    params = []
    for fan_in, fan_out in dims:
        key, kw, kb = jax.random.split(key, 3)
        bound = 1.0 / jnp.sqrt(jnp.float32(fan_in))
        w = jax.random.uniform(kw, (fan_in, fan_out), jnp.float32, -bound, bound)
        b = jax.random.uniform(kb, (1, fan_out), jnp.float32, -bound, bound)
        params += [w, b]
    return tuple(params)


if __name__ == "__main__":
    key = jax.random.PRNGKey(0)
    key, kx = jax.random.split(key)

    # small NCHW input: batch=2, channels=1024 (required by fc1), spatial=16x16
    B, H, W = 2, 16, 16
    x = jax.random.normal(kx, (B, FEAT_DIM, H, W), jnp.float32)
    params = init_params(key)

    fwd = jax.jit(custom_model_forward)
    f_out, l_out = fwd(x, params)
    jax.block_until_ready((f_out, l_out))

    # Pure-JAX f32 reference of the same math (no bf16 quantization anymore).
    w1, b1, w2, b2, w3, b3 = params
    feat = jnp.mean(x.reshape(B, FEAT_DIM, -1), axis=-1)
    h1 = jnp.maximum(feat @ w1 + b1, 0.0)
    h2 = jnp.maximum(h1 @ w2 + b2, 0.0)
    f_ref = h2 / jnp.maximum(
        jnp.sqrt(jnp.sum(h2 * h2, axis=-1, keepdims=True)), 1e-12)
    l_ref = f_ref @ w3 + b3

    assert f_out.shape == (B, 128) and l_out.shape == (B, NUM_CLASSES)
    assert jnp.allclose(f_out, f_ref, atol=5e-3, rtol=5e-3), "f_out mismatch"
    assert jnp.allclose(l_out, l_ref, atol=5e-3, rtol=5e-3), "l_out mismatch"

    print("KERNEL_OK")
</pallas_src>

<mosaic_0001>
module attributes {stable_mosaic.version = 11 : i64} {
  func.func @_gap_kernel(%arg0: i32, %arg1: i32, %arg2: i32, %arg3: memref<2x256x256xf32, #tpu.memory_space<vmem>>, %arg4: memref<2x256xf32, #tpu.memory_space<vmem>>) attributes {dimension_semantics = [#tpu.dimension_semantics<parallel>, #tpu.dimension_semantics<parallel>, #tpu.dimension_semantics<arbitrary>], iteration_bounds = array<i64: 1, 4, 1>, scalar_prefetch = 0 : i64, scratch_operands = 0 : i64, tpu.core_type = #tpu.core_type<tc>, window_params = [{transform_indices = @transform_0, window_bounds = array<i64: 2, 256, 256>}, {transform_indices = @transform_1, window_bounds = array<i64: 2, 256>}]} {
    %c0 = arith.constant 0 : index
    %c0_0 = arith.constant 0 : index
    %c0_1 = arith.constant 0 : index
    %0 = vector.load %arg3[%c0, %c0_0, %c0_1] : memref<2x256x256xf32, #tpu.memory_space<vmem>>, vector<2x256x256xf32>
    %cst = arith.constant dense<0.000000e+00> : vector<2x256xf32>
    %1 = vector.multi_reduction <add>, %0, %cst [2] : vector<2x256x256xf32> to vector<2x256xf32>
    %cst_2 = arith.constant 3.906250e-03 : f32
    %2 = vector.broadcast %cst_2 : f32 to vector<2x256xf32>
    %3 = arith.mulf %1, %2 : vector<2x256xf32>
    %c0_3 = arith.constant 0 : index
    %c0_4 = arith.constant 0 : index
    %4 = vector.load %arg4[%c0_3, %c0_4] : memref<2x256xf32, #tpu.memory_space<vmem>>, vector<2x256xf32>
    tpu.vector_store %arg4[%c0_3, %c0_4], %3 {strides = array<i32>} : memref<2x256xf32, #tpu.memory_space<vmem>>, vector<2x256xf32>,
    return
  }
  func.func @transform_0(%arg0: i32, %arg1: i32, %arg2: i32) -> (i32, i32, i32) {
    %c0_i32 = arith.constant 0 : i32
    return %arg0, %arg1, %arg2 : i32, i32, i32
  }
  func.func @transform_1(%arg0: i32, %arg1: i32, %arg2: i32) -> (i32, i32) {
    %c0_i32 = arith.constant 0 : i32
    return %arg0, %arg1 : i32, i32
  }
}

module attributes {stable_mosaic.version = 11 : i64} {
  func.func @_head_kernel(%arg0: i32, %arg1: memref<2x1024xf32, #tpu.memory_space<vmem>>, %arg2: memref<1024x512xf32, #tpu.memory_space<vmem>>, %arg3: memref<1x512xf32, #tpu.memory_space<vmem>>, %arg4: memref<512x128xf32, #tpu.memory_space<vmem>>, %arg5: memref<1x128xf32, #tpu.memory_space<vmem>>, %arg6: memref<128x128xf32, #tpu.memory_space<vmem>>, %arg7: memref<1x128xf32, #tpu.memory_space<vmem>>, %arg8: memref<2x256xf32, #tpu.memory_space<vmem>>) attributes {dimension_semantics = [#tpu.dimension_semantics<parallel>], iteration_bounds = array<i64: 1>, scalar_prefetch = 0 : i64, scratch_operands = 0 : i64, tpu.core_type = #tpu.core_type<tc>, window_params = [{transform_indices = @transform_0, window_bounds = array<i64: 2, 1024>}, {pipeline_mode = #tpu.pipeline_mode<synchronous>, transform_indices = @transform_1, window_bounds = array<i64: 1024, 512>}, {pipeline_mode = #tpu.pipeline_mode<synchronous>, transform_indices = @transform_2, window_bounds = array<i64: 1, 512>}, {pipeline_mode = #tpu.pipeline_mode<synchronous>, transform_indices = @transform_3, window_bounds = array<i64: 512, 128>}, {pipeline_mode = #tpu.pipeline_mode<synchronous>, transform_indices = @transform_4, window_bounds = array<i64: 1, 128>}, {pipeline_mode = #tpu.pipeline_mode<synchronous>, transform_indices = @transform_5, window_bounds = array<i64: 128, 128>}, {pipeline_mode = #tpu.pipeline_mode<synchronous>, transform_indices = @transform_6, window_bounds = array<i64: 1, 128>}, {transform_indices = @transform_7, window_bounds = array<i64: 2, 256>}]} {
    %c0 = arith.constant 0 : index
    %c0_0 = arith.constant 0 : index
    %0 = vector.load %arg1[%c0, %c0_0] : memref<2x1024xf32, #tpu.memory_space<vmem>>, vector<2x1024xf32>
    %c0_1 = arith.constant 0 : index
    %c0_2 = arith.constant 0 : index
    %1 = vector.load %arg2[%c0_1, %c0_2] : memref<1024x512xf32, #tpu.memory_space<vmem>>, vector<1024x512xf32>
    %cst = arith.constant dense<0.000000e+00> : vector<2x512xf32>
    %2 = tpu.matmul %0, %1, %cst {dimension_numbers = #tpu.dot_dimension_numbers<[1], [0], [0], [1], [0, 0, 1, 1], [], []>} : vector<2x1024xf32>, vector<1024x512xf32>, vector<2x512xf32> -> vector<2x512xf32>
    %c0_3 = arith.constant 0 : index
    %c0_4 = arith.constant 0 : index
    %3 = vector.load %arg3[%c0_3, %c0_4] : memref<1x512xf32, #tpu.memory_space<vmem>>, vector<1x512xf32>
    %4 = vector.broadcast %3 : vector<1x512xf32> to vector<2x512xf32>
    %5 = arith.addf %2, %4 : vector<2x512xf32>
    %cst_5 = arith.constant 0.000000e+00 : f32
    %6 = vector.broadcast %cst_5 : f32 to vector<2x512xf32>
    %7 = arith.maximumf %5, %6 : vector<2x512xf32>
    %c0_6 = arith.constant 0 : index
    %c0_7 = arith.constant 0 : index
    %8 = vector.load %arg4[%c0_6, %c0_7] : memref<512x128xf32, #tpu.memory_space<vmem>>, vector<512x128xf32>
    %cst_8 = arith.constant dense<0.000000e+00> : vector<2x128xf32>
    %9 = tpu.matmul %7, %8, %cst_8 {dimension_numbers = #tpu.dot_dimension_numbers<[1], [0], [0], [1], [0, 0, 1, 1], [], []>} : vector<2x512xf32>, vector<512x128xf32>, vector<2x128xf32> -> vector<2x128xf32>
    %c0_9 = arith.constant 0 : index
    %c0_10 = arith.constant 0 : index
    %10 = vector.load %arg5[%c0_9, %c0_10] : memref<1x128xf32, #tpu.memory_space<vmem>>, vector<1x128xf32>
    %11 = vector.broadcast %10 : vector<1x128xf32> to vector<2x128xf32>
    %12 = arith.addf %9, %11 : vector<2x128xf32>
    %cst_11 = arith.constant 0.000000e+00 : f32
    %13 = vector.broadcast %cst_11 : f32 to vector<2x128xf32>
    %14 = arith.maximumf %12, %13 : vector<2x128xf32>
    %15 = arith.mulf %14, %14 : vector<2x128xf32>
    %cst_12 = arith.constant dense<0.000000e+00> : vector<2xf32>
    %16 = vector.multi_reduction <add>, %15, %cst_12 [1] : vector<2x128xf32> to vector<2xf32>
    %17 = vector.shape_cast %16 : vector<2xf32> to vector<2x1xf32>
    %cst_13 = arith.constant 1.000000e-24 : f32
    %18 = vector.broadcast %cst_13 : f32 to vector<2x1xf32>
    %19 = arith.maximumf %17, %18 : vector<2x1xf32>
    %20 = math.rsqrt %19 : vector<2x1xf32>
    %21 = vector.broadcast %20 : vector<2x1xf32> to vector<2x128xf32>
    %22 = arith.mulf %14, %21 : vector<2x128xf32>
    %c0_14 = arith.constant 0 : index
    %c0_15 = arith.constant 0 : index
    %23 = vector.load %arg6[%c0_14, %c0_15] : memref<128x128xf32, #tpu.memory_space<vmem>>, vector<128x128xf32>
    %cst_16 = arith.constant dense<0.000000e+00> : vector<2x128xf32>
    %24 = tpu.matmul %22, %23, %cst_16 {dimension_numbers = #tpu.dot_dimension_numbers<[1], [0], [0], [1], [0, 0, 1, 1], [], []>} : vector<2x128xf32>, vector<128x128xf32>, vector<2x128xf32> -> vector<2x128xf32>
    %c0_17 = arith.constant 0 : index
    %c0_18 = arith.constant 0 : index
    %25 = vector.load %arg7[%c0_17, %c0_18] : memref<1x128xf32, #tpu.memory_space<vmem>>, vector<1x128xf32>
    %26 = vector.broadcast %25 : vector<1x128xf32> to vector<2x128xf32>
    %27 = arith.addf %24, %26 : vector<2x128xf32>
    %c0_19 = arith.constant 0 : index
    %c0_20 = arith.constant 0 : index
    %28 = vector.load %arg8[%c0_19, %c0_20] : memref<2x256xf32, #tpu.memory_space<vmem>>, vector<2x128xf32>
    tpu.vector_store %arg8[%c0_19, %c0_20], %22 {strides = array<i32>} : memref<2x256xf32, #tpu.memory_space<vmem>>, vector<2x128xf32>,
    %c0_21 = arith.constant 0 : index
    %c128 = arith.constant 128 : index
    %29 = vector.load %arg8[%c0_21, %c128] : memref<2x256xf32, #tpu.memory_space<vmem>>, vector<2x128xf32>
    tpu.vector_store %arg8[%c0_21, %c128], %27 {strides = array<i32>} : memref<2x256xf32, #tpu.memory_space<vmem>>, vector<2x128xf32>,
    return
  }
  func.func @transform_0(%arg0: i32) -> (i32, i32) {
    %c0_i32 = arith.constant 0 : i32
    %c0_i32_0 = arith.constant 0 : i32
    return %arg0, %c0_i32 : i32, i32
  }
  func.func @transform_1(%arg0: i32) -> (i32, i32) {
    %c0_i32 = arith.constant 0 : i32
    %c0_i32_0 = arith.constant 0 : i32
    %c0_i32_1 = arith.constant 0 : i32
    return %c0_i32, %c0_i32_0 : i32, i32
  }
  func.func @transform_2(%arg0: i32) -> (i32, i32) {
    %c0_i32 = arith.constant 0 : i32
    %c0_i32_0 = arith.constant 0 : i32
    %c0_i32_1 = arith.constant 0 : i32
    return %c0_i32, %c0_i32_0 : i32, i32
  }
  func.func @transform_3(%arg0: i32) -> (i32, i32) {
    %c0_i32 = arith.constant 0 : i32
    %c0_i32_0 = arith.constant 0 : i32
    %c0_i32_1 = arith.constant 0 : i32
    return %c0_i32, %c0_i32_0 : i32, i32
  }
  func.func @transform_4(%arg0: i32) -> (i32, i32) {
    %c0_i32 = arith.constant 0 : i32
    %c0_i32_0 = arith.constant 0 : i32
    %c0_i32_1 = arith.constant 0 : i32
    return %c0_i32, %c0_i32_0 : i32, i32
  }
  func.func @transform_5(%arg0: i32) -> (i32, i32) {
    %c0_i32 = arith.constant 0 : i32
    %c0_i32_0 = arith.constant 0 : i32
    %c0_i32_1 = arith.constant 0 : i32
    return %c0_i32, %c0_i32_0 : i32, i32
  }
  func.func @transform_6(%arg0: i32) -> (i32, i32) {
    %c0_i32 = arith.constant 0 : i32
    %c0_i32_0 = arith.constant 0 : i32
    %c0_i32_1 = arith.constant 0 : i32
    return %c0_i32, %c0_i32_0 : i32, i32
  }
  func.func @transform_7(%arg0: i32) -> (i32, i32) {
    %c0_i32 = arith.constant 0 : i32
    %c0_i32_0 = arith.constant 0 : i32
    return %arg0, %c0_i32 : i32, i32
  }
}

</mosaic_0001>

<bundles_post_ra>
// kernel: custom_model_forward.2
= control target key start
LH: loop header
LB: loop body
LE: loop exit
PB: predicated region body
PF: predicated region fallthrough
CT: control target
= control target key end

     0   :  { %s4528_s6 = smov 0   ;;  %s4530_s7 = smov 0   ;;  %s6008_s0 = inlined_call_operand.vmem [shape: f32[2,1024,256], index: 0, kind: input, shape index: {}]   ;;  %s6009_s1 = inlined_call_operand.vmem [shape: f32[2,1024], index: 1, kind: output, shape index: {}]  }
   0x1   :  { %s4532_s8 = smov 0   ;;  %s4534_s9 = smov 0  }
   0x2   :  { %s4536_s10 = smov 0  }
   0x3 LB: > { %s26_s11 = sadd.s32 1, %s4506_s9  ;;  %p48_p1 = scmp.ne.s32.totalorder %s4498_s7, %s4494_s6  ;;  %s4510_s10 = sphi %s4536_s10, %s11_s10   ;;  %s4506_s9 = sphi %s4534_s9, %s6014_s9   ;;  %s4502_s8 = sphi %s4532_s8, %s6013_s8   ;;  %s4498_s7 = sphi %s4530_s7, %s6012_s7   ;;  %s4494_s6 = sphi %s4528_s6, %s6011_s6  }
   0x4   : > { %p28_p0 = scmp.ge.s32.totalorder %s26_s11, 4  ;;  %p49_p2 = scmp.eq.s32.totalorder %s4510_s10, 0 }
   0x5   : > { %s41_s13 = sadd.s32 1, %s4498_s7  ;;  %p4410_p5 = scmp.ge.s32.totalorder %s4510_s10, 4 }
   0x6   : > { %s6016_s11 = smov (%p28_p0, %s26_s11), 0  ;;  %p50_p3 = por %p49_p2, %p48_p1 }
   0x7   : > { %s35_s12 = ssub.s32 %s4506_s9, %s6016_s11  ;;  %102 = sbr.rel (%p4410_p5) target bundleno = 82 (0x52), region = 16 }
   0x8   : > { %p39_p4 = scmp.eq.s32.totalorder %s35_s12, 0 }
   0xa   : > { %s4563_s14 = scalar_select %p39_p4, %s4498_s7, %s41_s13  }
   0xe   : > { %105 = sbr.rel (!%p50_p3) target bundleno = 82 (0x52), region = 20  ;;  %s107_s15 = sand.u32 (%p50_p3), 1, %s4498_s7  }
   0xf   : > { %s4423_s16 = sshll.u32 (%p50_p3), %s4506_s9, 9  ;;  %s4411_s17 = sshll.u32 (%p50_p3), %s107_s15, 10 }
  0x10   : > { %s4571_s20 = scalar_lea.vmem (%p50_p3), %s6008_s0, %s4423_s16  ;;  %s4576_s21 = scalar_lea.vmem (%p50_p3), [#allocation2], %s4411_s17 }
  0x11   : > { %v131_v0 = vld [vmem:[%s4571_s20] sm:$0xff] (%p50_p3)  ;;  %v133_v1 = vld [vmem:[%s4571_s20 + $0x8] sm:$0xff] (%p50_p3)  ;;  %v135_v2 = vld [vmem:[%s4571_s20 + $0x10] sm:$0xff] (%p50_p3) }
  0x12   : > { %132 = vst [vmem:[%s4576_s21] sm:$0xff] (%p50_p3), %v131_v0  ;;  %134 = vst [vmem:[%s4576_s21 + $0x8] sm:$0xff] (%p50_p3), %v133_v1  ;;  %v137_v3 = vld [vmem:[%s4571_s20 + $0x18] sm:$0xff] (%p50_p3)  ;;  %v139_v4 = vld [vmem:[%s4571_s20 + $0x20] sm:$0xff] (%p50_p3) }
  0x13   : > { %136 = vst [vmem:[%s4576_s21 + $0x10] sm:$0xff] (%p50_p3), %v135_v2  ;;  %v141_v5 = vld [vmem:[%s4571_s20 + $0x28] sm:$0xff] (%p50_p3)  ;;  %138 = vst [vmem:[%s4576_s21 + $0x18] sm:$0xff] (%p50_p3), %v137_v3  ;;  %v143_v6 = vld [vmem:[%s4571_s20 + $0x30] sm:$0xff] (%p50_p3) }
  0x14   : > { %140 = vst [vmem:[%s4576_s21 + $0x20] sm:$0xff] (%p50_p3), %v139_v4  ;;  %142 = vst [vmem:[%s4576_s21 + $0x28] sm:$0xff] (%p50_p3), %v141_v5  ;;  %v145_v7 = vld [vmem:[%s4571_s20 + $0x38] sm:$0xff] (%p50_p3)  ;;  %v147_v8 = vld [vmem:[%s4571_s20 + $0x40] sm:$0xff] (%p50_p3) }
  0x15   : > { %144 = vst [vmem:[%s4576_s21 + $0x30] sm:$0xff] %v143_v6  ;;  %146 = vst [vmem:[%s4576_s21 + $0x38] sm:$0xff] %v145_v7  ;;  %v149_v9 = vld [vmem:[%s4571_s20 + $0x48] sm:$0xff]  ;;  %v151_v10 = vld [vmem:[%s4571_s20 + $0x50] sm:$0xff] }
  0x16   : > { %148 = vst [vmem:[%s4576_s21 + $0x40] sm:$0xff] %v147_v8  ;;  %v153_v11 = vld [vmem:[%s4571_s20 + $0x58] sm:$0xff]  ;;  %150 = vst [vmem:[%s4576_s21 + $0x48] sm:$0xff] %v149_v9  ;;  %v155_v12 = vld [vmem:[%s4571_s20 + $0x60] sm:$0xff] }
  0x17   : > { %152 = vst [vmem:[%s4576_s21 + $0x50] sm:$0xff] %v151_v10  ;;  %154 = vst [vmem:[%s4576_s21 + $0x58] sm:$0xff] %v153_v11  ;;  %v157_v13 = vld [vmem:[%s4571_s20 + $0x68] sm:$0xff]  ;;  %v159_v14 = vld [vmem:[%s4571_s20 + $0x70] sm:$0xff] }
  0x18   : > { %156 = vst [vmem:[%s4576_s21 + $0x60] sm:$0xff] %v155_v12  ;;  %158 = vst [vmem:[%s4576_s21 + $0x68] sm:$0xff] %v157_v13  ;;  %v161_v15 = vld [vmem:[%s4571_s20 + $0x78] sm:$0xff]  ;;  %v163_v16 = vld [vmem:[%s4571_s20 + $0x80] sm:$0xff] }
  0x19   : > { %160 = vst [vmem:[%s4576_s21 + $0x70] sm:$0xff] %v159_v14  ;;  %v165_v17 = vld [vmem:[%s4571_s20 + $0x88] sm:$0xff]  ;;  %162 = vst [vmem:[%s4576_s21 + $0x78] sm:$0xff] %v161_v15  ;;  %v167_v18 = vld [vmem:[%s4571_s20 + $0x90] sm:$0xff] }
  0x1a   : > { %164 = vst [vmem:[%s4576_s21 + $0x80] sm:$0xff] %v163_v16  ;;  %166 = vst [vmem:[%s4576_s21 + $0x88] sm:$0xff] %v165_v17  ;;  %v169_v19 = vld [vmem:[%s4571_s20 + $0x98] sm:$0xff]  ;;  %v171_v20 = vld [vmem:[%s4571_s20 + $0xa0] sm:$0xff] }
  0x1b   : > { %168 = vst [vmem:[%s4576_s21 + $0x90] sm:$0xff] %v167_v18  ;;  %170 = vst [vmem:[%s4576_s21 + $0x98] sm:$0xff] %v169_v19  ;;  %v173_v21 = vld [vmem:[%s4571_s20 + $0xa8] sm:$0xff]  ;;  %v175_v22 = vld [vmem:[%s4571_s20 + $0xb0] sm:$0xff] }
  0x1c   : > { %172 = vst [vmem:[%s4576_s21 + $0xa0] sm:$0xff] %v171_v20  ;;  %v177_v23 = vld [vmem:[%s4571_s20 + $0xb8] sm:$0xff]  ;;  %174 = vst [vmem:[%s4576_s21 + $0xa8] sm:$0xff] %v173_v21  ;;  %v179_v24 = vld [vmem:[%s4571_s20 + $0xc0] sm:$0xff] }
  0x1d   : > { %176 = vst [vmem:[%s4576_s21 + $0xb0] sm:$0xff] %v175_v22  ;;  %178 = vst [vmem:[%s4576_s21 + $0xb8] sm:$0xff] %v177_v23  ;;  %v181_v25 = vld [vmem:[%s4571_s20 + $0xc8] sm:$0xff]  ;;  %v183_v26 = vld [vmem:[%s4571_s20 + $0xd0] sm:$0xff] }
  0x1e   : > { %180 = vst [vmem:[%s4576_s21 + $0xc0] sm:$0xff] %v179_v24  ;;  %182 = vst [vmem:[%s4576_s21 + $0xc8] sm:$0xff] %v181_v25  ;;  %v185_v27 = vld [vmem:[%s4571_s20 + $0xd8] sm:$0xff]  ;;  %v187_v28 = vld [vmem:[%s4571_s20 + $0xe0] sm:$0xff] }
  0x1f   : > { %184 = vst [vmem:[%s4576_s21 + $0xd0] sm:$0xff] %v183_v26  ;;  %v189_v29 = vld [vmem:[%s4571_s20 + $0xe8] sm:$0xff]  ;;  %186 = vst [vmem:[%s4576_s21 + $0xd8] sm:$0xff] %v185_v27  ;;  %v191_v30 = vld [vmem:[%s4571_s20 + $0xf0] sm:$0xff] }
  0x20   : > { %188 = vst [vmem:[%s4576_s21 + $0xe0] sm:$0xff] %v187_v28  ;;  %190 = vst [vmem:[%s4576_s21 + $0xe8] sm:$0xff] %v189_v29  ;;  %v193_v31 = vld [vmem:[%s4571_s20 + $0xf8] sm:$0xff]  ;;  %v195_v32 = vld [vmem:[%s4571_s20 + $0x100] sm:$0xff] }
  0x21   : > { %192 = vst [vmem:[%s4576_s21 + $0xf0] sm:$0xff] %v191_v30  ;;  %194 = vst [vmem:[%s4576_s21 + $0xf8] sm:$0xff] %v193_v31  ;;  %v197_v33 = vld [vmem:[%s4571_s20 + $0x108] sm:$0xff]  ;;  %v199_v34 = vld [vmem:[%s4571_s20 + $0x110] sm:$0xff] }
  0x22   : > { %196 = vst [vmem:[%s4576_s21 + $0x100] sm:$0xff] %v195_v32  ;;  %v201_v35 = vld [vmem:[%s4571_s20 + $0x118] sm:$0xff]  ;;  %198 = vst [vmem:[%s4576_s21 + $0x108] sm:$0xff] %v197_v33  ;;  %v203_v36 = vld [vmem:[%s4571_s20 + $0x120] sm:$0xff] }
  0x23   : > { %200 = vst [vmem:[%s4576_s21 + $0x110] sm:$0xff] %v199_v34  ;;  %202 = vst [vmem:[%s4576_s21 + $0x118] sm:$0xff] %v201_v35  ;;  %v205_v37 = vld [vmem:[%s4571_s20 + $0x128] sm:$0xff]  ;;  %v207_v38 = vld [vmem:[%s4571_s20 + $0x130] sm:$0xff] }
  0x24   : > { %204 = vst [vmem:[%s4576_s21 + $0x120] sm:$0xff] %v203_v36  ;;  %206 = vst [vmem:[%s4576_s21 + $0x128] sm:$0xff] %v205_v37  ;;  %v209_v39 = vld [vmem:[%s4571_s20 + $0x138] sm:$0xff]  ;;  %v211_v40 = vld [vmem:[%s4571_s20 + $0x140] sm:$0xff] }
  0x25   : > { %208 = vst [vmem:[%s4576_s21 + $0x130] sm:$0xff] %v207_v38  ;;  %v213_v41 = vld [vmem:[%s4571_s20 + $0x148] sm:$0xff]  ;;  %210 = vst [vmem:[%s4576_s21 + $0x138] sm:$0xff] %v209_v39  ;;  %v215_v42 = vld [vmem:[%s4571_s20 + $0x150] sm:$0xff] }
  0x26   : > { %212 = vst [vmem:[%s4576_s21 + $0x140] sm:$0xff] %v211_v40  ;;  %214 = vst [vmem:[%s4576_s21 + $0x148] sm:$0xff] %v213_v41  ;;  %v217_v43 = vld [vmem:[%s4571_s20 + $0x158] sm:$0xff]  ;;  %v219_v44 = vld [vmem:[%s4571_s20 + $0x160] sm:$0xff] }
  0x27   : > { %216 = vst [vmem:[%s4576_s21 + $0x150] sm:$0xff] %v215_v42  ;;  %218 = vst [vmem:[%s4576_s21 + $0x158] sm:$0xff] %v217_v43  ;;  %v221_v45 = vld [vmem:[%s4571_s20 + $0x168] sm:$0xff]  ;;  %v223_v46 = vld [vmem:[%s4571_s20 + $0x170] sm:$0xff] }
  0x28   : > { %220 = vst [vmem:[%s4576_s21 + $0x160] sm:$0xff] %v219_v44  ;;  %v225_v47 = vld [vmem:[%s4571_s20 + $0x178] sm:$0xff]  ;;  %222 = vst [vmem:[%s4576_s21 + $0x168] sm:$0xff] %v221_v45  ;;  %v227_v48 = vld [vmem:[%s4571_s20 + $0x180] sm:$0xff] }
  0x29   : > { %224 = vst [vmem:[%s4576_s21 + $0x170] sm:$0xff] %v223_v46  ;;  %226 = vst [vmem:[%s4576_s21 + $0x178] sm:$0xff] %v225_v47  ;;  %v229_v49 = vld [vmem:[%s4571_s20 + $0x188] sm:$0xff]  ;;  %v231_v50 = vld [vmem:[%s4571_s20 + $0x190] sm:$0xff] }
  0x2a   : > { %228 = vst [vmem:[%s4576_s21 + $0x180] sm:$0xff] %v227_v48  ;;  %230 = vst [vmem:[%s4576_s21 + $0x188] sm:$0xff] %v229_v49  ;;  %v233_v51 = vld [vmem:[%s4571_s20 + $0x198] sm:$0xff]  ;;  %v235_v52 = vld [vmem:[%s4571_s20 + $0x1a0] sm:$0xff] }
  0x2b   : > { %232 = vst [vmem:[%s4576_s21 + $0x190] sm:$0xff] %v231_v50  ;;  %v237_v53 = vld [vmem:[%s4571_s20 + $0x1a8] sm:$0xff]  ;;  %234 = vst [vmem:[%s4576_s21 + $0x198] sm:$0xff] %v233_v51  ;;  %v239_v54 = vld [vmem:[%s4571_s20 + $0x1b0] sm:$0xff] }
  0x2c   : > { %236 = vst [vmem:[%s4576_s21 + $0x1a0] sm:$0xff] %v235_v52  ;;  %238 = vst [vmem:[%s4576_s21 + $0x1a8] sm:$0xff] %v237_v53  ;;  %v241_v55 = vld [vmem:[%s4571_s20 + $0x1b8] sm:$0xff]  ;;  %v243_v56 = vld [vmem:[%s4571_s20 + $0x1c0] sm:$0xff] }
  0x2d   : > { %240 = vst [vmem:[%s4576_s21 + $0x1b0] sm:$0xff] %v239_v54  ;;  %242 = vst [vmem:[%s4576_s21 + $0x1b8] sm:$0xff] %v241_v55  ;;  %v245_v57 = vld [vmem:[%s4571_s20 + $0x1c8] sm:$0xff]  ;;  %v247_v58 = vld [vmem:[%s4571_s20 + $0x1d0] sm:$0xff] }
  0x2e   : > { %244 = vst [vmem:[%s4576_s21 + $0x1c0] sm:$0xff] %v243_v56  ;;  %v249_v59 = vld [vmem:[%s4571_s20 + $0x1d8] sm:$0xff]  ;;  %246 = vst [vmem:[%s4576_s21 + $0x1c8] sm:$0xff] %v245_v57  ;;  %v251_v60 = vld [vmem:[%s4571_s20 + $0x1e0] sm:$0xff] }
  0x2f   : > { %248 = vst [vmem:[%s4576_s21 + $0x1d0] sm:$0xff] %v247_v58  ;;  %250 = vst [vmem:[%s4576_s21 + $0x1d8] sm:$0xff] %v249_v59  ;;  %v253_v61 = vld [vmem:[%s4571_s20 + $0x1e8] sm:$0xff]  ;;  %v255_v62 = vld [vmem:[%s4571_s20 + $0x1f0] sm:$0xff] }
  0x30   : > { %252 = vst [vmem:[%s4576_s21 + $0x1e0] sm:$0xff] %v251_v60  ;;  %254 = vst [vmem:[%s4576_s21 + $0x1e8] sm:$0xff] %v253_v61  ;;  %v257_v63 = vld [vmem:[%s4571_s20 + $0x1f8] sm:$0xff]  ;;  %v259_v0 = vld [vmem:[%s4571_s20 + $0x800] sm:$0xff] }
  0x31   : > { %256 = vst [vmem:[%s4576_s21 + $0x1f0] sm:$0xff] %v255_v62  ;;  %v261_v1 = vld [vmem:[%s4571_s20 + $0x808] sm:$0xff]  ;;  %258 = vst [vmem:[%s4576_s21 + $0x1f8] sm:$0xff] %v257_v63  ;;  %v263_v2 = vld [vmem:[%s4571_s20 + $0x810] sm:$0xff] }
  0x32   : > { %260 = vst [vmem:[%s4576_s21 + $0x200] sm:$0xff] %v259_v0  ;;  %262 = vst [vmem:[%s4576_s21 + $0x208] sm:$0xff] %v261_v1  ;;  %v265_v3 = vld [vmem:[%s4571_s20 + $0x818] sm:$0xff]  ;;  %v267_v4 = vld [vmem:[%s4571_s20 + $0x820] sm:$0xff] }
  0x33   : > { %264 = vst [vmem:[%s4576_s21 + $0x210] sm:$0xff] %v263_v2  ;;  %266 = vst [vmem:[%s4576_s21 + $0x218] sm:$0xff] %v265_v3  ;;  %v269_v5 = vld [vmem:[%s4571_s20 + $0x828] sm:$0xff]  ;;  %v271_v6 = vld [vmem:[%s4571_s20 + $0x830] sm:$0xff] }
  0x34   : > { %268 = vst [vmem:[%s4576_s21 + $0x220] sm:$0xff] %v267_v4  ;;  %v273_v7 = vld [vmem:[%s4571_s20 + $0x838] sm:$0xff]  ;;  %270 = vst [vmem:[%s4576_s21 + $0x228] sm:$0xff] %v269_v5  ;;  %v275_v8 = vld [vmem:[%s4571_s20 + $0x840] sm:$0xff] }
  0x35   : > { %272 = vst [vmem:[%s4576_s21 + $0x230] sm:$0xff] %v271_v6  ;;  %274 = vst [vmem:[%s4576_s21 + $0x238] sm:$0xff] %v273_v7  ;;  %v277_v9 = vld [vmem:[%s4571_s20 + $0x848] sm:$0xff]  ;;  %v279_v10 = vld [vmem:[%s4571_s20 + $0x850] sm:$0xff] }
  0x36   : > { %276 = vst [vmem:[%s4576_s21 + $0x240] sm:$0xff] %v275_v8  ;;  %278 = vst [vmem:[%s4576_s21 + $0x248] sm:$0xff] %v277_v9  ;;  %v281_v11 = vld [vmem:[%s4571_s20 + $0x858] sm:$0xff]  ;;  %v283_v12 = vld [vmem:[%s4571_s20 + $0x860] sm:$0xff] }
  0x37   : > { %280 = vst [vmem:[%s4576_s21 + $0x250] sm:$0xff] %v279_v10  ;;  %v285_v13 = vld [vmem:[%s4571_s20 + $0x868] sm:$0xff]  ;;  %282 = vst [vmem:[%s4576_s21 + $0x258] sm:$0xff] %v281_v11  ;;  %v287_v14 = vld [vmem:[%s4571_s20 + $0x870] sm:$0xff] }
  0x38   : > { %284 = vst [vmem:[%s4576_s21 + $0x260] sm:$0xff] %v283_v12  ;;  %286 = vst [vmem:[%s4576_s21 + $0x268] sm:$0xff] %v285_v13  ;;  %v289_v15 = vld [vmem:[%s4571_s20 + $0x878] sm:$0xff]  ;;  %v291_v16 = vld [vmem:[%s4571_s20 + $0x880] sm:$0xff] }
  0x39   : > { %288 = vst [vmem:[%s4576_s21 + $0x270] sm:$0xff] %v287_v14  ;;  %290 = vst [vmem:[%s4576_s21 + $0x278] sm:$0xff] %v289_v15  ;;  %v293_v17 = vld [vmem:[%s4571_s20 + $0x888] sm:$0xff]  ;;  %v295_v18 = vld [vmem:[%s4571_s20 + $0x890] sm:$0xff] }
  0x3a   : > { %292 = vst [vmem:[%s4576_s21 + $0x280] sm:$0xff] %v291_v16  ;;  %v297_v19 = vld [vmem:[%s4571_s20 + $0x898] sm:$0xff]  ;;  %294 = vst [vmem:[%s4576_s21 + $0x288] sm:$0xff] %v293_v17  ;;  %v299_v20 = vld [vmem:[%s4571_s20 + $0x8a0] sm:$0xff] }
  0x3b   : > { %296 = vst [vmem:[%s4576_s21 + $0x290] sm:$0xff] %v295_v18  ;;  %298 = vst [vmem:[%s4576_s21 + $0x298] sm:$0xff] %v297_v19  ;;  %v301_v21 = vld [vmem:[%s4571_s20 + $0x8a8] sm:$0xff]  ;;  %v303_v22 = vld [vmem:[%s4571_s20 + $0x8b0] sm:$0xff] }
  0x3c   : > { %300 = vst [vmem:[%s4576_s21 + $0x2a0] sm:$0xff] %v299_v20  ;;  %302 = vst [vmem:[%s4576_s21 + $0x2a8] sm:$0xff] %v301_v21  ;;  %v305_v23 = vld [vmem:[%s4571_s20 + $0x8b8] sm:$0xff]  ;;  %v307_v24 = vld [vmem:[%s4571_s20 + $0x8c0] sm:$0xff] }
  0x3d   : > { %304 = vst [vmem:[%s4576_s21 + $0x2b0] sm:$0xff] %v303_v22  ;;  %v309_v25 = vld [vmem:[%s4571_s20 + $0x8c8] sm:$0xff]  ;;  %306 = vst [vmem:[%s4576_s21 + $0x2b8] sm:$0xff] %v305_v23  ;;  %v311_v26 = vld [vmem:[%s4571_s20 + $0x8d0] sm:$0xff] }
  0x3e   : > { %308 = vst [vmem:[%s4576_s21 + $0x2c0] sm:$0xff] %v307_v24  ;;  %310 = vst [vmem:[%s4576_s21 + $0x2c8] sm:$0xff] %v309_v25  ;;  %v313_v27 = vld [vmem:[%s4571_s20 + $0x8d8] sm:$0xff]  ;;  %v315_v28 = vld [vmem:[%s4571_s20 + $0x8e0] sm:$0xff] }
  0x3f   : > { %312 = vst [vmem:[%s4576_s21 + $0x2d0] sm:$0xff] %v311_v26  ;;  %314 = vst [vmem:[%s4576_s21 + $0x2d8] sm:$0xff] %v313_v27  ;;  %v317_v29 = vld [vmem:[%s4571_s20 + $0x8e8] sm:$0xff]  ;;  %v319_v30 = vld [vmem:[%s4571_s20 + $0x8f0] sm:$0xff] }
  0x40   : > { %316 = vst [vmem:[%s4576_s21 + $0x2e0] sm:$0xff] %v315_v28  ;;  %v321_v31 = vld [vmem:[%s4571_s20 + $0x8f8] sm:$0xff]  ;;  %318 = vst [vmem:[%s4576_s21 + $0x2e8] sm:$0xff] %v317_v29  ;;  %v323_v32 = vld [vmem:[%s4571_s20 + $0x900] sm:$0xff] }
  0x41   : > { %320 = vst [vmem:[%s4576_s21 + $0x2f0] sm:$0xff] %v319_v30  ;;  %322 = vst [vmem:[%s4576_s21 + $0x2f8] sm:$0xff] %v321_v31  ;;  %v325_v33 = vld [vmem:[%s4571_s20 + $0x908] sm:$0xff]  ;;  %v327_v34 = vld [vmem:[%s4571_s20 + $0x910] sm:$0xff] }
  0x42   : > { %324 = vst [vmem:[%s4576_s21 + $0x300] sm:$0xff] %v323_v32  ;;  %326 = vst [vmem:[%s4576_s21 + $0x308] sm:$0xff] %v325_v33  ;;  %v329_v35 = vld [vmem:[%s4571_s20 + $0x918] sm:$0xff]  ;;  %v331_v36 = vld [vmem:[%s4571_s20 + $0x920] sm:$0xff] }
  0x43   : > { %328 = vst [vmem:[%s4576_s21 + $0x310] sm:$0xff] %v327_v34  ;;  %v333_v37 = vld [vmem:[%s4571_s20 + $0x928] sm:$0xff]  ;;  %330 = vst [vmem:[%s4576_s21 + $0x318] sm:$0xff] %v329_v35  ;;  %v335_v38 = vld [vmem:[%s4571_s20 + $0x930] sm:$0xff] }
  0x44   : > { %332 = vst [vmem:[%s4576_s21 + $0x320] sm:$0xff] %v331_v36  ;;  %334 = vst [vmem:[%s4576_s21 + $0x328] sm:$0xff] %v333_v37  ;;  %v337_v39 = vld [vmem:[%s4571_s20 + $0x938] sm:$0xff]  ;;  %v339_v40 = vld [vmem:[%s4571_s20 + $0x940] sm:$0xff] }
  0x45   : > { %336 = vst [vmem:[%s4576_s21 + $0x330] sm:$0xff] %v335_v38  ;;  %338 = vst [vmem:[%s4576_s21 + $0x338] sm:$0xff] %v337_v39  ;;  %v341_v41 = vld [vmem:[%s4571_s20 + $0x948] sm:$0xff]  ;;  %v343_v42 = vld [vmem:[%s4571_s20 + $0x950] sm:$0xff] }
  0x46   : > { %340 = vst [vmem:[%s4576_s21 + $0x340] sm:$0xff] %v339_v40  ;;  %v345_v43 = vld [vmem:[%s4571_s20 + $0x958] sm:$0xff]  ;;  %342 = vst [vmem:[%s4576_s21 + $0x348] sm:$0xff] %v341_v41  ;;  %v347_v44 = vld [vmem:[%s4571_s20 + $0x960] sm:$0xff] }
  0x47   : > { %344 = vst [vmem:[%s4576_s21 + $0x350] sm:$0xff] %v343_v42  ;;  %346 = vst [vmem:[%s4576_s21 + $0x358] sm:$0xff] %v345_v43  ;;  %v349_v45 = vld [vmem:[%s4571_s20 + $0x968] sm:$0xff]  ;;  %v351_v46 = vld [vmem:[%s4571_s20 + $0x970] sm:$0xff] }
  0x48   : > { %348 = vst [vmem:[%s4576_s21 + $0x360] sm:$0xff] %v347_v44  ;;  %350 = vst [vmem:[%s4576_s21 + $0x368] sm:$0xff] %v349_v45  ;;  %v353_v47 = vld [vmem:[%s4571_s20 + $0x978] sm:$0xff]  ;;  %v355_v48 = vld [vmem:[%s4571_s20 + $0x980] sm:$0xff] }
  0x49   : > { %352 = vst [vmem:[%s4576_s21 + $0x370] sm:$0xff] %v351_v46  ;;  %v357_v49 = vld [vmem:[%s4571_s20 + $0x988] sm:$0xff]  ;;  %354 = vst [vmem:[%s4576_s21 + $0x378] sm:$0xff] %v353_v47  ;;  %v359_v50 = vld [vmem:[%s4571_s20 + $0x990] sm:$0xff] }
  0x4a   : > { %356 = vst [vmem:[%s4576_s21 + $0x380] sm:$0xff] %v355_v48  ;;  %358 = vst [vmem:[%s4576_s21 + $0x388] sm:$0xff] %v357_v49  ;;  %v361_v51 = vld [vmem:[%s4571_s20 + $0x998] sm:$0xff]  ;;  %v363_v52 = vld [vmem:[%s4571_s20 + $0x9a0] sm:$0xff] }
  0x4b   : > { %360 = vst [vmem:[%s4576_s21 + $0x390] sm:$0xff] %v359_v50  ;;  %362 = vst [vmem:[%s4576_s21 + $0x398] sm:$0xff] %v361_v51  ;;  %v365_v53 = vld [vmem:[%s4571_s20 + $0x9a8] sm:$0xff]  ;;  %v367_v54 = vld [vmem:[%s4571_s20 + $0x9b0] sm:$0xff] }
  0x4c   : > { %364 = vst [vmem:[%s4576_s21 + $0x3a0] sm:$0xff] %v363_v52  ;;  %v369_v55 = vld [vmem:[%s4571_s20 + $0x9b8] sm:$0xff]  ;;  %366 = vst [vmem:[%s4576_s21 + $0x3a8] sm:$0xff] %v365_v53  ;;  %v371_v56 = vld [vmem:[%s4571_s20 + $0x9c0] sm:$0xff] }
  0x4d   : > { %368 = vst [vmem:[%s4576_s21 + $0x3b0] sm:$0xff] %v367_v54  ;;  %370 = vst [vmem:[%s4576_s21 + $0x3b8] sm:$0xff] %v369_v55  ;;  %v373_v57 = vld [vmem:[%s4571_s20 + $0x9c8] sm:$0xff]  ;;  %v375_v58 = vld [vmem:[%s4571_s20 + $0x9d0] sm:$0xff] }
  0x4e   : > { %372 = vst [vmem:[%s4576_s21 + $0x3c0] sm:$0xff] %v371_v56  ;;  %374 = vst [vmem:[%s4576_s21 + $0x3c8] sm:$0xff] %v373_v57  ;;  %v377_v59 = vld [vmem:[%s4571_s20 + $0x9d8] sm:$0xff]  ;;  %v379_v60 = vld [vmem:[%s4571_s20 + $0x9e0] sm:$0xff] }
  0x4f   : > { %376 = vst [vmem:[%s4576_s21 + $0x3d0] sm:$0xff] %v375_v58  ;;  %v381_v61 = vld [vmem:[%s4571_s20 + $0x9e8] sm:$0xff]  ;;  %378 = vst [vmem:[%s4576_s21 + $0x3d8] sm:$0xff] %v377_v59  ;;  %v383_v62 = vld [vmem:[%s4571_s20 + $0x9f0] sm:$0xff] }
  0x50   : > { %380 = vst [vmem:[%s4576_s21 + $0x3e0] sm:$0xff] %v379_v60  ;;  %382 = vst [vmem:[%s4576_s21 + $0x3e8] sm:$0xff] %v381_v61  ;;  %v385_v63 = vld [vmem:[%s4571_s20 + $0x9f8] sm:$0xff] }
  0x51   : > { %384 = vst [vmem:[%s4576_s21 + $0x3f0] sm:$0xff] %v383_v62  ;;  %386 = vst [vmem:[%s4576_s21 + $0x3f8] sm:$0xff] %v385_v63 }
  0x52 PF: > { %p4415_p6 = scmp.ge.s32.totalorder %s4510_s10, 1  ;;  %p391_p7 = scmp.lt.s32.totalorder %s4510_s10, 5 }
  0x54   : > { %p392_p8 = pnand %p4415_p6, %p391_p7 }
  0x55   : > { %s398_s22 = sand.u32 (!%p392_p8), 1, %s4494_s6   ;;  %v4512_v47 = vmov (!%p392_p8), 0   ;;  %vm3965_vm0 = vcmask (!%p392_p8), 130112   ;;  %vm3972_vm1 = vcmask (!%p392_p8), 195712   ;;  %vm3979_vm2 = vcmask (!%p392_p8), 261312   ;;  %s4417_s25 = sshll.u32 (!%p392_p8), %s4502_s8, 1 }
  0x56   : > { %395 = sbr.rel (%p392_p8) target bundleno = 542 (0x21e), region = 43  ;;  %s4416_s23 = sshll.u32 (!%p392_p8), %s398_s22, 10  ;;  %4470 = vset.pattern.permute.xlu0 (!%p392_p8), %v4512_v47  ;;  %4471 = vset.pattern.permute.xlu1 (!%p392_p8), %v4512_v47  ;;  %vm3986_vm3 = vcmask (!%p392_p8), 326912   ;;  %vm3993_vm4 = vcmask (!%p392_p8), 392512   ;;  %vm4000_vm5 = vcmask (!%p392_p8), 458112   ;;  %vm4007_vm6 = vcmask (!%p392_p8), 523712  }
  0x57   : > { %s4834_s24 = scalar_lea.vmem (!%p392_p8), [#allocation2], %s4416_s23  ;;  %vm4014_vm7 = vcmask (!%p392_p8), 589312   ;;  %vm4021_vm8 = vcmask (!%p392_p8), 654912   ;;  %vm4028_vm9 = vcmask (!%p392_p8), 720512   ;;  %vm4035_vm10 = vcmask (!%p392_p8), 786112   ;;  %p5956_p9 = scmp.lt.s32.totalorder (!%p392_p8), %s4417_s25, 7 }
  0x58   : > { %v438_v0 = vld [vmem:[%s4834_s24 + $0x20] sm:$0xff] (!%p392_p8)  ;;  %v439_v1 = vld [vmem:[%s4834_s24 + $0x28] sm:$0xff] (!%p392_p8)  ;;  %v440_v5 = vld [vmem:[%s4834_s24 + $0x30] sm:$0xff] (!%p392_p8)  ;;  %vm4042_vm11 = vcmask (!%p392_p8), 851712   ;;  %vm4049_vm12 = vcmask (!%p392_p8), 917312   ;;  %vm4056_vm13 = vcmask (!%p392_p8), 982912  }
  0x59   : > { %v434_v2 = vld [vmem:[%s4834_s24] sm:$0xff] (!%p392_p8)  ;;  %v568_v3 = vadd.f32 (!%p392_p8), %v439_v1, %v438_v0  ;;  %v435_v4 = vld [vmem:[%s4834_s24 + $0x8] sm:$0xff] (!%p392_p8)  ;;  %v441_v6 = vld [vmem:[%s4834_s24 + $0x38] sm:$0xff] (!%p392_p8)  ;;  %vm4063_vm14 = vcmask (!%p392_p8), 1048512   ;;  %vm4302_vm15 = vcmask (!%p392_p8), 1041409  }
  0x5a   : > { %v562_v7 = vadd.f32 (!%p392_p8), %v435_v4, %v434_v2  ;;  %v436_v8 = vld [vmem:[%s4834_s24 + $0x10] sm:$0xff] (!%p392_p8)  ;;  %v437_v9 = vld [vmem:[%s4834_s24 + $0x18] sm:$0xff] (!%p392_p8)  ;;  %v571_v10 = vadd.f32 (!%p392_p8), %v441_v6, %v440_v5  ;;  %v442_v14 = vld [vmem:[%s4834_s24 + $0x40] sm:$0xff] (!%p392_p8) }
  0x5b   : > { %569 = vadd.xlane.f32.xlu1 (!%p392_p8), %v568_v3  ;;  %v565_v11 = vadd.f32 (!%p392_p8), %v437_v9, %v436_v8  ;;  %v444_v12 = vld [vmem:[%s4834_s24 + $0x50] sm:$0xff] (!%p392_p8)  ;;  %v445_v13 = vld [vmem:[%s4834_s24 + $0x58] sm:$0xff] (!%p392_p8)  ;;  %v443_v15 = vld [vmem:[%s4834_s24 + $0x48] sm:$0xff] (!%p392_p8) }
  0x5c   : > { %563 = vadd.xlane.f32.xlu0 (!%p392_p8), %v562_v7  ;;  %v577_v16 = vadd.f32 (!%p392_p8), %v445_v13, %v444_v12  ;;  %v574_v17 = vadd.f32 (!%p392_p8), %v443_v15, %v442_v14  ;;  %v448_v18 = vld [vmem:[%s4834_s24 + $0x70] sm:$0xff] (!%p392_p8)  ;;  %v449_v19 = vld [vmem:[%s4834_s24 + $0x78] sm:$0xff] (!%p392_p8)  ;;  %v446_v20 = vld [vmem:[%s4834_s24 + $0x60] sm:$0xff] (!%p392_p8) }
  0x5d   : > { %v447_v21 = vld [vmem:[%s4834_s24 + $0x68] sm:$0xff]  ;;  %v583_v22 = vadd.f32 %v449_v19, %v448_v18  ;;  %v452_v24 = vld [vmem:[%s4834_s24 + $0x90] sm:$0xff]  ;;  %v453_v25 = vld [vmem:[%s4834_s24 + $0x98] sm:$0xff]  ;;  %s6018_s25 = smov (!%p5956_p9, %s4417_s25), 7 }
  0x5e   : > { %v580_v23 = vadd.f32 %v447_v21, %v446_v20  ;;  %v450_v26 = vld [vmem:[%s4834_s24 + $0x80] sm:$0xff]  ;;  %v451_v27 = vld [vmem:[%s4834_s24 + $0x88] sm:$0xff]  ;;  %v589_v28 = vadd.f32 %v453_v25, %v452_v24  ;;  %v456_v30 = vld [vmem:[%s4834_s24 + $0xb0] sm:$0xff]  ;;  %s4418_s27 = sshll.u32 %s6018_s25, 1 }
  0x5f   : > { %572 = vadd.xlane.f32.xlu1 %v571_v10  ;;  %v586_v29 = vadd.f32 %v451_v27, %v450_v26  ;;  %v457_v31 = vld [vmem:[%s4834_s24 + $0xb8] sm:$0xff]  ;;  %v454_v32 = vld [vmem:[%s4834_s24 + $0xa0] sm:$0xff]  ;;  %v455_v33 = vld [vmem:[%s4834_s24 + $0xa8] sm:$0xff]  ;;  %s432_s30 = scalar_lea.vmem %s6009_s1, %s4418_s27 }
  0x60   : > { %566 = vadd.xlane.f32.xlu0 %v565_v11  ;;  %v595_v34 = vadd.f32 %v457_v31, %v456_v30  ;;  %v592_v35 = vadd.f32 %v455_v33, %v454_v32  ;;  %v460_v36 = vld [vmem:[%s4834_s24 + $0xd0] sm:$0xff]  ;;  %v461_v37 = vld [vmem:[%s4834_s24 + $0xd8] sm:$0xff]  ;;  %v458_v38 = vld [vmem:[%s4834_s24 + $0xc0] sm:$0xff] }
  0x61   : > { %v459_v39 = vld [vmem:[%s4834_s24 + $0xc8] sm:$0xff]  ;;  %v601_v40 = vadd.f32 %v461_v37, %v460_v36  ;;  %v464_v42 = vld [vmem:[%s4834_s24 + $0xf0] sm:$0xff]  ;;  %v465_v43 = vld [vmem:[%s4834_s24 + $0xf8] sm:$0xff] }
  0x62   : > { %v598_v41 = vadd.f32 %v459_v39, %v458_v38  ;;  %v462_v44 = vld [vmem:[%s4834_s24 + $0xe0] sm:$0xff]  ;;  %v463_v45 = vld [vmem:[%s4834_s24 + $0xe8] sm:$0xff]  ;;  %v607_v46 = vadd.f32 %v465_v43, %v464_v42  ;;  %v468_v49 = vld [vmem:[%s4834_s24 + $0x110] sm:$0xff] }
  0x63   : > { %578 = vadd.xlane.f32.xlu1 %v577_v16  ;;  %v604_v48 = vadd.f32 %v463_v45, %v462_v44  ;;  %v469_v50 = vld [vmem:[%s4834_s24 + $0x118] sm:$0xff]  ;;  %v466_v51 = vld [vmem:[%s4834_s24 + $0x100] sm:$0xff]  ;;  %v467_v52 = vld [vmem:[%s4834_s24 + $0x108] sm:$0xff] }
  0x64   : > { %575 = vadd.xlane.f32.xlu0 %v574_v17  ;;  %v613_v53 = vadd.f32 %v469_v50, %v468_v49  ;;  %v610_v54 = vadd.f32 %v467_v52, %v466_v51  ;;  %v472_v55 = vld [vmem:[%s4834_s24 + $0x130] sm:$0xff]  ;;  %v473_v56 = vld [vmem:[%s4834_s24 + $0x138] sm:$0xff]  ;;  %v470_v57 = vld [vmem:[%s4834_s24 + $0x120] sm:$0xff] }
  0x65   : > { %v471_v58 = vld [vmem:[%s4834_s24 + $0x128] sm:$0xff]  ;;  %v619_v59 = vadd.f32 %v473_v56, %v472_v55  ;;  %v476_v61 = vld [vmem:[%s4834_s24 + $0x150] sm:$0xff]  ;;  %v477_v62 = vld [vmem:[%s4834_s24 + $0x158] sm:$0xff] }
  0x66   : > { %v616_v60 = vadd.f32 %v471_v58, %v470_v57  ;;  %v474_v63 = vld [vmem:[%s4834_s24 + $0x140] sm:$0xff]  ;;  %v475_v0 = vld [vmem:[%s4834_s24 + $0x148] sm:$0xff]  ;;  %v625_v1 = vadd.f32 %v477_v62, %v476_v61  ;;  %v480_v3 = vld [vmem:[%s4834_s24 + $0x170] sm:$0xff] }
  0x67   : > { %584 = vadd.xlane.f32.xlu1 %v583_v22  ;;  %v622_v2 = vadd.f32 %v475_v0, %v474_v63  ;;  %v481_v4 = vld [vmem:[%s4834_s24 + $0x178] sm:$0xff]  ;;  %v478_v5 = vld [vmem:[%s4834_s24 + $0x160] sm:$0xff]  ;;  %v479_v6 = vld [vmem:[%s4834_s24 + $0x168] sm:$0xff] }
  0x68   : > { %581 = vadd.xlane.f32.xlu0 %v580_v23  ;;  %v631_v7 = vadd.f32 %v481_v4, %v480_v3  ;;  %v628_v8 = vadd.f32 %v479_v6, %v478_v5  ;;  %v484_v9 = vld [vmem:[%s4834_s24 + $0x190] sm:$0xff]  ;;  %v485_v10 = vld [vmem:[%s4834_s24 + $0x198] sm:$0xff]  ;;  %v482_v11 = vld [vmem:[%s4834_s24 + $0x180] sm:$0xff] }
  0x69   : > { %v483_v12 = vld [vmem:[%s4834_s24 + $0x188] sm:$0xff]  ;;  %v637_v13 = vadd.f32 %v485_v10, %v484_v9  ;;  %v488_v15 = vld [vmem:[%s4834_s24 + $0x1b0] sm:$0xff]  ;;  %v489_v16 = vld [vmem:[%s4834_s24 + $0x1b8] sm:$0xff] }
  0x6a   : > { %v634_v14 = vadd.f32 %v483_v12, %v482_v11  ;;  %v486_v17 = vld [vmem:[%s4834_s24 + $0x1a0] sm:$0xff]  ;;  %v487_v18 = vld [vmem:[%s4834_s24 + $0x1a8] sm:$0xff]  ;;  %v643_v19 = vadd.f32 %v489_v16, %v488_v15  ;;  %v492_v21 = vld [vmem:[%s4834_s24 + $0x1d0] sm:$0xff] }
  0x6b   : > { %590 = vadd.xlane.f32.xlu1 %v589_v28  ;;  %v640_v20 = vadd.f32 %v487_v18, %v486_v17  ;;  %v493_v22 = vld [vmem:[%s4834_s24 + $0x1d8] sm:$0xff]  ;;  %v490_v23 = vld [vmem:[%s4834_s24 + $0x1c0] sm:$0xff]  ;;  %v491_v24 = vld [vmem:[%s4834_s24 + $0x1c8] sm:$0xff] }
  0x6c   : > { %587 = vadd.xlane.f32.xlu0 %v586_v29  ;;  %v649_v25 = vadd.f32 %v493_v22, %v492_v21  ;;  %v646_v26 = vadd.f32 %v491_v24, %v490_v23  ;;  %v496_v27 = vld [vmem:[%s4834_s24 + $0x1f0] sm:$0xff]  ;;  %v497_v28 = vld [vmem:[%s4834_s24 + $0x1f8] sm:$0xff]  ;;  %v494_v29 = vld [vmem:[%s4834_s24 + $0x1e0] sm:$0xff] }
  0x6d   : > { %v495_v30 = vld [vmem:[%s4834_s24 + $0x1e8] sm:$0xff]  ;;  %v655_v31 = vadd.f32 %v497_v28, %v496_v27  ;;  %v500_v33 = vld [vmem:[%s4834_s24 + $0x210] sm:$0xff]  ;;  %v506_v47 = vld [vmem:[%s4834_s24 + $0x240] sm:$0xff] }
  0x6e   : > { %v652_v32 = vadd.f32 %v495_v30, %v494_v29  ;;  %v499_v36 = vld [vmem:[%s4834_s24 + $0x208] sm:$0xff]  ;;  %v504_v39 = vld [vmem:[%s4834_s24 + $0x230] sm:$0xff]  ;;  %v513_v52 = vld [vmem:[%s4834_s24 + $0x278] sm:$0xff] }
  0x6f   : > { %596 = vadd.xlane.f32.xlu1 %v595_v34  ;;  %v501_v34 = vld [vmem:[%s4834_s24 + $0x218] sm:$0xff]  ;;  %v503_v42 = vld [vmem:[%s4834_s24 + $0x228] sm:$0xff]  ;;  %v508_v45 = vld [vmem:[%s4834_s24 + $0x250] sm:$0xff] }
  0x70   : > { %593 = vadd.xlane.f32.xlu0 %v592_v35  ;;  %v498_v35 = vld [vmem:[%s4834_s24 + $0x200] sm:$0xff]  ;;  %v661_v37 = vadd.f32 %v501_v34, %v500_v33  ;;  %v512_v51 = vld [vmem:[%s4834_s24 + $0x270] sm:$0xff]  ;;  %v517_v58 = vld [vmem:[%s4834_s24 + $0x298] sm:$0xff] }
  0x71   : > { %v658_v38 = vadd.f32 %v499_v36, %v498_v35  ;;  %v679_v55 = vadd.f32 %v513_v52, %v512_v51  ;;  %v516_v57 = vld [vmem:[%s4834_s24 + $0x290] sm:$0xff]  ;;  %v521_v0 = vld [vmem:[%s4834_s24 + $0x2b8] sm:$0xff] }
  0x72   : > { %v685_v61 = vadd.f32 %v517_v58, %v516_v57  ;;  %v520_v63 = vld [vmem:[%s4834_s24 + $0x2b0] sm:$0xff]  ;;  %v525_v6 = vld [vmem:[%s4834_s24 + $0x2d8] sm:$0xff] }
  0x73   : > { %602 = vadd.xlane.f32.xlu1 %v601_v40  ;;  %v505_v40 = vld [vmem:[%s4834_s24 + $0x238] sm:$0xff]  ;;  %v691_v3 = vadd.f32 %v521_v0, %v520_v63  ;;  %v524_v5 = vld [vmem:[%s4834_s24 + $0x2d0] sm:$0xff] }
  0x74   : > { %599 = vadd.xlane.f32.xlu0 %v598_v41  ;;  %v502_v41 = vld [vmem:[%s4834_s24 + $0x220] sm:$0xff]  ;;  %v667_v43 = vadd.f32 %v505_v40, %v504_v39  ;;  %v697_v9 = vadd.f32 %v525_v6, %v524_v5  ;;  %v528_v11 = vld [vmem:[%s4834_s24 + $0x2f0] sm:$0xff]  ;;  %v529_v12 = vld [vmem:[%s4834_s24 + $0x2f8] sm:$0xff]  ;;  %v4515_v6 = vmov 1414812756  }
  0x75   : > { %v664_v44 = vadd.f32 %v503_v42, %v502_v41  ;;  %v703_v15 = vadd.f32 %v529_v12, %v528_v11  ;;  %v532_v17 = vld [vmem:[%s4834_s24 + $0x310] sm:$0xff]  ;;  %v533_v18 = vld [vmem:[%s4834_s24 + $0x318] sm:$0xff] }
  0x76   : > { %v709_v21 = vadd.f32 %v533_v18, %v532_v17  ;;  %v536_v23 = vld [vmem:[%s4834_s24 + $0x330] sm:$0xff]  ;;  %v537_v24 = vld [vmem:[%s4834_s24 + $0x338] sm:$0xff] }
  0x77   : > { %608 = vadd.xlane.f32.xlu1 %v607_v46  ;;  %v509_v46 = vld [vmem:[%s4834_s24 + $0x258] sm:$0xff]  ;;  %v715_v27 = vadd.f32 %v537_v24, %v536_v23  ;;  %v540_v29 = vld [vmem:[%s4834_s24 + $0x350] sm:$0xff] }
  0x78   : > { %605 = vadd.xlane.f32.xlu0 %v604_v48  ;;  %v507_v48 = vld [vmem:[%s4834_s24 + $0x248] sm:$0xff]  ;;  %v673_v49 = vadd.f32 %v509_v46, %v508_v45  ;;  %v541_v30 = vld [vmem:[%s4834_s24 + $0x358] sm:$0xff]  ;;  %v544_v35 = vld [vmem:[%s4834_s24 + $0x370] sm:$0xff] }
  0x79   : > { %v670_v50 = vadd.f32 %v507_v48, %v506_v47  ;;  %v721_v33 = vadd.f32 %v541_v30, %v540_v29  ;;  %v545_v36 = vld [vmem:[%s4834_s24 + $0x378] sm:$0xff]  ;;  %v548_v41 = vld [vmem:[%s4834_s24 + $0x390] sm:$0xff] }
  0x7a   : > { %v727_v39 = vadd.f32 %v545_v36, %v544_v35  ;;  %v549_v42 = vld [vmem:[%s4834_s24 + $0x398] sm:$0xff]  ;;  %v552_v47 = vld [vmem:[%s4834_s24 + $0x3b0] sm:$0xff] }
  0x7b   : > { %614 = vadd.xlane.f32.xlu1 %v613_v53  ;;  %v510_v53 = vld [vmem:[%s4834_s24 + $0x260] sm:$0xff]  ;;  %v733_v45 = vadd.f32 %v549_v42, %v548_v41  ;;  %v553_v48 = vld [vmem:[%s4834_s24 + $0x3b8] sm:$0xff] }
  0x7c   : > { %611 = vadd.xlane.f32.xlu0 %v610_v54  ;;  %v511_v54 = vld [vmem:[%s4834_s24 + $0x268] sm:$0xff]  ;;  %v739_v51 = vadd.f32 %v553_v48, %v552_v47 }
  0x7d   : > { %v676_v56 = vadd.f32 %v511_v54, %v510_v53  ;;  %v556_v53 = vld [vmem:[%s4834_s24 + $0x3d0] sm:$0xff]  ;;  %v557_v54 = vld [vmem:[%s4834_s24 + $0x3d8] sm:$0xff] }
  0x7e   : > { %v745_v57 = vadd.f32 %v557_v54, %v556_v53 }
  0x7f   : > { %620 = vadd.xlane.f32.xlu1 %v619_v59  ;;  %v514_v59 = vld [vmem:[%s4834_s24 + $0x280] sm:$0xff] }
  0x80   : > { %617 = vadd.xlane.f32.xlu0 %v616_v60  ;;  %v515_v60 = vld [vmem:[%s4834_s24 + $0x288] sm:$0xff] }
  0x81   : > { %v682_v62 = vadd.f32 %v515_v60, %v514_v59  ;;  %v560_v59 = vld [vmem:[%s4834_s24 + $0x3f0] sm:$0xff]  ;;  %v561_v60 = vld [vmem:[%s4834_s24 + $0x3f8] sm:$0xff] }
  0x82   : > { %v751_v63 = vadd.f32 %v561_v60, %v560_v59 }
  0x83   : > { %626 = vadd.xlane.f32.xlu1 %v625_v1  ;;  %v518_v1 = vld [vmem:[%s4834_s24 + $0x2a0] sm:$0xff] }
  0x84   : > { %623 = vadd.xlane.f32.xlu0 %v622_v2  ;;  %v519_v2 = vld [vmem:[%s4834_s24 + $0x2a8] sm:$0xff] }
  0x85   : > { %v688_v4 = vadd.f32 %v519_v2, %v518_v1  ;;  %v885_v1 = vlaneseq  ;;  %v4513_v2 = vmov 269488144  }
  0x87   : > { %632 = vadd.xlane.f32.xlu1 %v631_v7  ;;  %v522_v7 = vld [vmem:[%s4834_s24 + $0x2c0] sm:$0xff] }
  0x88   : > { %629 = vadd.xlane.f32.xlu0 %v628_v8  ;;  %v523_v8 = vld [vmem:[%s4834_s24 + $0x2c8] sm:$0xff] }
  0x89   : > { %v694_v10 = vadd.f32 %v523_v8, %v522_v7  ;;  %v897_v7 = vunpack.c.l.s4 %v4515_v6  ;;  %v4516_v8 = vmov 1987475062  }
  0x8b   : > { %638 = vadd.xlane.f32.xlu1 %v637_v13  ;;  %v526_v13 = vld [vmem:[%s4834_s24 + $0x2e0] sm:$0xff] }
  0x8c   : > { %635 = vadd.xlane.f32.xlu0 %v634_v14  ;;  %v527_v14 = vld [vmem:[%s4834_s24 + $0x2e8] sm:$0xff] }
  0x8d   : > { %v700_v16 = vadd.f32 %v527_v14, %v526_v13  ;;  %v898_v13 = vunpack.c.0.s8 %v897_v7 }
  0x8f   : > { %644 = vadd.xlane.f32.xlu1 %v643_v19  ;;  %v530_v19 = vld [vmem:[%s4834_s24 + $0x300] sm:$0xff] }
  0x90   : > { %641 = vadd.xlane.f32.xlu0 %v640_v20  ;;  %v531_v20 = vld [vmem:[%s4834_s24 + $0x308] sm:$0xff] }
  0x91   : > { %v706_v22 = vadd.f32 %v531_v20, %v530_v19 }
  0x93   : > { %650 = vadd.xlane.f32.xlu1 %v649_v25  ;;  %v534_v25 = vld [vmem:[%s4834_s24 + $0x320] sm:$0xff] }
  0x94   : > { %647 = vadd.xlane.f32.xlu0 %v646_v26  ;;  %v535_v26 = vld [vmem:[%s4834_s24 + $0x328] sm:$0xff] }
  0x95   : > { %v712_v28 = vadd.f32 %v535_v26, %v534_v25 }
  0x97   : > { %656 = vadd.xlane.f32.xlu1 %v655_v31  ;;  %v538_v31 = vld [vmem:[%s4834_s24 + $0x340] sm:$0xff] }
  0x98   : > { %653 = vadd.xlane.f32.xlu0 %v652_v32  ;;  %v539_v32 = vld [vmem:[%s4834_s24 + $0x348] sm:$0xff] }
  0x99   : > { %v718_v34 = vadd.f32 %v539_v32, %v538_v31 }
  0x9b   : > { %662 = vadd.xlane.f32.xlu1 %v661_v37  ;;  %v542_v37 = vld [vmem:[%s4834_s24 + $0x360] sm:$0xff] }
  0x9c   : > { %659 = vadd.xlane.f32.xlu0 %v658_v38  ;;  %v543_v38 = vld [vmem:[%s4834_s24 + $0x368] sm:$0xff] }
  0x9d   : > { %v724_v40 = vadd.f32 %v543_v38, %v542_v37 }
  0x9f   : > { %668 = vadd.xlane.f32.xlu1 %v667_v43  ;;  %v546_v43 = vld [vmem:[%s4834_s24 + $0x380] sm:$0xff] }
  0xa0   : > { %665 = vadd.xlane.f32.xlu0 %v664_v44  ;;  %v547_v44 = vld [vmem:[%s4834_s24 + $0x388] sm:$0xff] }
  0xa1   : > { %v730_v46 = vadd.f32 %v547_v44, %v546_v43 }
  0xa3   : > { %674 = vadd.xlane.f32.xlu1 %v673_v49  ;;  %v550_v49 = vld [vmem:[%s4834_s24 + $0x3a0] sm:$0xff] }
  0xa4   : > { %671 = vadd.xlane.f32.xlu0 %v670_v50  ;;  %v551_v50 = vld [vmem:[%s4834_s24 + $0x3a8] sm:$0xff] }
  0xa5   : > { %v736_v52 = vadd.f32 %v551_v50, %v550_v49 }
  0xa7   : > { %680 = vadd.xlane.f32.xlu1 %v679_v55  ;;  %v554_v55 = vld [vmem:[%s4834_s24 + $0x3c0] sm:$0xff] }
  0xa8   : > { %677 = vadd.xlane.f32.xlu0 %v676_v56  ;;  %v555_v56 = vld [vmem:[%s4834_s24 + $0x3c8] sm:$0xff] }
  0xa9   : > { %v742_v58 = vadd.f32 %v555_v56, %v554_v55 }
  0xab   : > { %686 = vadd.xlane.f32.xlu1 %v685_v61  ;;  %v558_v61 = vld [vmem:[%s4834_s24 + $0x3e0] sm:$0xff] }
  0xac   : > { %683 = vadd.xlane.f32.xlu0 %v682_v62  ;;  %v559_v62 = vld [vmem:[%s4834_s24 + $0x3e8] sm:$0xff] }
  0xad   : > { %v748_v0 = vadd.f32 %v559_v62, %v558_v61 }
  0xaf   : > { %692 = vadd.xlane.f32.xlu1 %v691_v3  ;;  %v883_v3 = vunpack.c.l.s4 %v4513_v2 }
  0xb0   : > { %689 = vadd.xlane.f32.xlu0 %v688_v4  ;;  %v4514_v4 = vmov 842150450  }
  0xb1   : > { %v890_v5 = vunpack.c.l.s4 %v4514_v4  ;;  %v884_v11 = vunpack.c.0.s8 %v883_v3 }
  0xb3   : > { %698 = vadd.xlane.f32.xlu1 %v697_v9  ;;  %v904_v9 = vunpack.c.l.s4 %v4516_v8  ;;  %v891_v12 = vunpack.c.0.s8 %v890_v5 }
  0xb4   : > { %695 = vadd.xlane.f32.xlu0 %v694_v10  ;;  %v4965_v10 = vshrl.u32 %v885_v1, 7 }
  0xb5   : > { %v905_v14 = vunpack.c.0.s8 %v904_v9 }
  0xb6   : > { %v4968_v17 = vsub.s32 %v884_v11, %v4965_v10  ;;  %v4971_v18 = vsub.s32 %v891_v12, %v4965_v10  ;;  %v4974_v19 = vsub.s32 %v898_v13, %v4965_v10 }
  0xb7   : > { %704 = vadd.xlane.f32.xlu1 %v703_v15  ;;  %v4517_v15 = vmov 1983009808   ;;  %v4977_v20 = vsub.s32 %v905_v14, %v4965_v10 }
  0xb8   : > { %701 = vadd.xlane.f32.xlu0 %v700_v16  ;;  %v2677_v16 = vunpack.c.l.s4 %v4517_v15 }
  0xba   : > { %v2678_v24 = vunpack.c.0.s8 %v2677_v16 }
  0xbb   : > { %710 = vadd.xlane.f32.xlu1 %v709_v21 }
  0xbc   : > { %707 = vadd.xlane.f32.xlu0 %v706_v22  ;;  %v4988_v37 = vsub.s32 %v2678_v24, %v4965_v10 }
  0xbf   : > { %716 = vadd.xlane.f32.xlu1 %v715_v27 }
  0xc0   : > { %713 = vadd.xlane.f32.xlu0 %v712_v28 }
  0xc3   : > { %722 = vadd.xlane.f32.xlu1 %v721_v33 }
  0xc4   : > { %719 = vadd.xlane.f32.xlu0 %v718_v34 }
  0xc7   : > { %728 = vadd.xlane.f32.xlu1 %v727_v39 }
  0xc8   : > { %725 = vadd.xlane.f32.xlu0 %v724_v40 }
  0xcb   : > { %734 = vadd.xlane.f32.xlu1 %v733_v45 }
  0xcc   : > { %731 = vadd.xlane.f32.xlu0 %v730_v46 }
  0xcf   : > { %740 = vadd.xlane.f32.xlu1 %v739_v51 }
  0xd0   : > { %737 = vadd.xlane.f32.xlu0 %v736_v52 }
  0xd3   : > { %746 = vadd.xlane.f32.xlu1 %v745_v57 }
  0xd4   : > { %743 = vadd.xlane.f32.xlu0 %v742_v58 }
  0xd7   : > { %752 = vadd.xlane.f32.xlu1 %v751_v63 }
  0xd8   : > { %749 = vadd.xlane.f32.xlu0 %v748_v0 }
  0xe8   : > { %v570_v21 = vpop.xlane.xlu1 %569 }
  0xe9   : > { %v756_v22 = vmul.f32 0.00390625, %v570_v21  ;;  %v564_v23 = vpop.xlane.xlu0 %563 }
  0xea   : > { %v754_v25 = vmul.f32 0.00390625, %v564_v23 }
  0xeb   : > { %v944_v26 = vrot.slane %v756_v22, %v4968_v17  ;;  %v951_v27 = vrot.slane %v756_v22, %v4971_v18  ;;  %v958_v28 = vrot.slane %v756_v22, %v4974_v19  ;;  %v965_v29 = vrot.slane %v756_v22, %v4977_v20 }
  0xec   : > { %v888_v30 = vrot.slane %v754_v25, %v4968_v17  ;;  %v895_v31 = vrot.slane %v754_v25, %v4971_v18  ;;  %v902_v32 = vrot.slane %v754_v25, %v4974_v19  ;;  %v909_v33 = vrot.slane %v754_v25, %v4977_v20  ;;  %v573_v34 = vpop.xlane.xlu1 %572 }
  0xed   : > { %v757_v35 = vmul.f32 0.00390625, %v573_v34  ;;  %v567_v36 = vpop.xlane.xlu0 %566  ;;  %v2708_v42 = vcombine.low %v944_v26, %v951_v27  ;;  %v2709_v43 = vcombine.low %v958_v28, %v965_v29 }
  0xee   : > { %v755_v38 = vmul.f32 0.00390625, %v567_v36  ;;  %v2674_v39 = vcombine.low %v888_v30, %v895_v31  ;;  %v2675_v40 = vcombine.low %v902_v32, %v909_v33 }
  0xef   : > { %v972_v41 = vrot.slane %v757_v35, %v4968_v17  ;;  %v979_v49 = vrot.slane %v757_v35, %v4971_v18  ;;  %v986_v54 = vrot.slane %v757_v35, %v4974_v19  ;;  %v993_v55 = vrot.slane %v757_v35, %v4977_v20 }
  0xf0   : > { %v916_v44 = vrot.slane %v755_v38, %v4968_v17  ;;  %v923_v45 = vrot.slane %v755_v38, %v4971_v18  ;;  %v930_v46 = vrot.slane %v755_v38, %v4974_v19  ;;  %v937_v47 = vrot.slane %v755_v38, %v4977_v20  ;;  %v579_v48 = vpop.xlane.xlu1 %578 }
  0xf1   : > { %v4996_v50 = vmul.f32 0.00390625, %v579_v48  ;;  %v576_v51 = vpop.xlane.xlu0 %575  ;;  %v2682_v52 = vrot.slane %v2674_v39, %v4988_v37  ;;  %v2689_v53 = vrot.slane %v2675_v40, %v4988_v37  ;;  %v2716_v59 = vrot.slane %v2708_v42, %v4988_v37 }
  0xf2   : > { %v2691_v56 = vcombine.low %v916_v44, %v923_v45  ;;  %v2692_v57 = vcombine.low %v930_v46, %v937_v47  ;;  %v758_v58 = vmul.f32 0.00390625, %v576_v51  ;;  %v2723_v0 = vrot.slane %v2709_v43, %v4988_v37 }
  0xf3   : > { %v1028_v60 = vrot.slane %v4996_v50, %v4968_v17  ;;  %v1035_v61 = vrot.slane %v4996_v50, %v4971_v18  ;;  %v1042_v62 = vrot.slane %v4996_v50, %v4974_v19  ;;  %v2690_v2 = vcombine.low %v2682_v52, %v2689_v53 }
  0xf4   : > { %v585_v63 = vpop.xlane.xlu1 %584  ;;  %v2699_v5 = vrot.slane %v2691_v56, %v4988_v37  ;;  %v2706_v6 = vrot.slane %v2692_v57, %v4988_v37  ;;  %v1049_v7 = vrot.slane %v4996_v50, %v4977_v20  ;;  %v2725_v9 = vcombine.low %v972_v41, %v979_v49 }
  0xf5   : > { %v5010_v3 = vmul.f32 0.00390625, %v585_v63  ;;  %v582_v4 = vpop.xlane.xlu0 %581  ;;  %v2726_v11 = vcombine.low %v986_v54, %v993_v55  ;;  %v1000_v12 = vrot.slane %v758_v58, %v4968_v17  ;;  %v1007_v13 = vrot.slane %v758_v58, %v4971_v18  ;;  %3763 = vperm.xlu0 %4470, %v2690_v2  }
  0xf6   : > { %v5016_v8 = vmul.f32 0.00390625, %v582_v4  ;;  %v1014_v14 = vrot.slane %v758_v58, %v4974_v19  ;;  %v1021_v15 = vrot.slane %v758_v58, %v4977_v20  ;;  %v2724_v24 = vcombine.low %v2716_v59, %v2723_v0 }
  0xf7   : > { %v1084_v16 = vrot.slane %v5010_v3, %v4968_v17  ;;  %v1091_v21 = vrot.slane %v5010_v3, %v4971_v18  ;;  %v1098_v22 = vrot.slane %v5010_v3, %v4974_v19  ;;  %v1105_v25 = vrot.slane %v5010_v3, %v4977_v20 }
  0xf8   : > { %v591_v23 = vpop.xlane.xlu1 %590  ;;  %v1056_v26 = vrot.slane %v5016_v8, %v4968_v17  ;;  %v2707_v27 = vcombine.low %v2699_v5, %v2706_v6  ;;  %v1063_v30 = vrot.slane %v5016_v8, %v4971_v18  ;;  %v2733_v32 = vrot.slane %v2725_v9, %v4988_v37 }
  0xf9   : > { %v763_v28 = vmul.f32 0.00390625, %v591_v23  ;;  %v588_v29 = vpop.xlane.xlu0 %587  ;;  %v2740_v33 = vrot.slane %v2726_v11, %v4988_v37  ;;  %v1070_v39 = vrot.slane %v5016_v8, %v4974_v19  ;;  %v1077_v40 = vrot.slane %v5016_v8, %v4977_v20 }
  0xfa   : > { %v5034_v31 = vmul.f32 0.00390625, %v588_v29  ;;  %3766 = vperm.xlu1 %4471, %v2707_v27   ;;  %v2742_v42 = vcombine.low %v1000_v12, %v1007_v13  ;;  %v2743_v43 = vcombine.low %v1014_v14, %v1021_v15  ;;  %v2759_v48 = vcombine.low %v1028_v60, %v1035_v61 }
  0xfb   : > { %v1140_v34 = vrot.slane %v763_v28, %v4968_v17  ;;  %v1147_v35 = vrot.slane %v763_v28, %v4971_v18  ;;  %v1154_v36 = vrot.slane %v763_v28, %v4974_v19  ;;  %v1161_v38 = vrot.slane %v763_v28, %v4977_v20 }
  0xfc   : > { %v597_v41 = vpop.xlane.xlu1 %596  ;;  %v1112_v49 = vrot.slane %v5034_v31, %v4968_v17  ;;  %v1119_v51 = vrot.slane %v5034_v31, %v4971_v18  ;;  %v2741_v53 = vcombine.low %v2733_v32, %v2740_v33  ;;  %v1126_v58 = vrot.slane %v5034_v31, %v4974_v19 }
  0xfd   : > { %v765_v44 = vmul.f32 0.00390625, %v597_v41  ;;  %v594_v45 = vpop.xlane.xlu0 %593  ;;  %v2827_v46 = vcombine.low %v1140_v34, %v1147_v35  ;;  %v2828_v47 = vcombine.low %v1154_v36, %v1161_v38  ;;  %v1133_v59 = vrot.slane %v5034_v31, %v4977_v20 }
  0xfe   : > { %v5050_v52 = vmul.f32 0.00390625, %v594_v45  ;;  %3769 = vperm.xlu1 %4471, %v2724_v24   ;;  %v2750_v61 = vrot.slane %v2742_v42, %v4988_v37  ;;  %v2757_v63 = vrot.slane %v2743_v43, %v4988_v37  ;;  %v2760_v6 = vcombine.low %v1042_v62, %v1049_v7 }
  0xff   : > { %v1196_v54 = vrot.slane %v765_v44, %v4968_v17  ;;  %v1203_v55 = vrot.slane %v765_v44, %v4971_v18  ;;  %v1210_v56 = vrot.slane %v765_v44, %v4974_v19  ;;  %v1217_v57 = vrot.slane %v765_v44, %v4977_v20 }
 0x100   : > { %v603_v60 = vpop.xlane.xlu1 %602  ;;  %v2835_v4 = vrot.slane %v2827_v46, %v4988_v37  ;;  %v2842_v5 = vrot.slane %v2828_v47, %v4988_v37  ;;  %v1168_v9 = vrot.slane %v5050_v52, %v4968_v17  ;;  %v1175_v50 = vrot.slane %v5050_v52, %v4971_v18 }
 0x101   : > { %v767_v0 = vmul.f32 0.00390625, %v603_v60  ;;  %v600_v2 = vpop.xlane.xlu0 %599  ;;  %v2861_v12 = vcombine.low %v1196_v54, %v1203_v55  ;;  %v2862_v13 = vcombine.low %v1210_v56, %v1217_v57  ;;  %v1182_v62 = vrot.slane %v5050_v52, %v4974_v19 }
 0x102   : > { %v5069_v11 = vmul.f32 0.00390625, %v600_v2  ;;  %3772 = vperm.xlu1 %4471, %v2741_v53   ;;  %v2758_v7 = vcombine.low %v2750_v61, %v2757_v63  ;;  %v2767_v28 = vrot.slane %v2759_v48, %v4988_v37  ;;  %v2843_v29 = vcombine.low %v2835_v4, %v2842_v5 }
 0x103   : > { %v1252_v14 = vrot.slane %v767_v0, %v4968_v17  ;;  %v1259_v15 = vrot.slane %v767_v0, %v4971_v18  ;;  %v1266_v23 = vrot.slane %v767_v0, %v4974_v19  ;;  %v1273_v24 = vrot.slane %v767_v0, %v4977_v20 }
 0x104   : > { %v609_v27 = vpop.xlane.xlu1 %608  ;;  %v2869_v34 = vrot.slane %v2861_v12, %v4988_v37  ;;  %v2876_v35 = vrot.slane %v2862_v13, %v4988_v37  ;;  %v1189_v36 = vrot.slane %v5050_v52, %v4977_v20  ;;  %v2774_v38 = vrot.slane %v2760_v6, %v4988_v37  ;;  %3790 = vperm.xlu0 %4470, %v2843_v29  }
 0x105   : > { %v769_v32 = vmul.f32 0.00390625, %v609_v27  ;;  %v606_v33 = vpop.xlane.xlu0 %605  ;;  %v2895_v41 = vcombine.low %v1252_v14, %v1259_v15  ;;  %v2896_v42 = vcombine.low %v1266_v23, %v1273_v24  ;;  %v1224_v43 = vrot.slane %v5069_v11, %v4968_v17 }
 0x106   : > { %v1231_v44 = vrot.slane %v5069_v11, %v4971_v18  ;;  %v1238_v45 = vrot.slane %v5069_v11, %v4974_v19  ;;  %3775 = vperm.xlu1 %4471, %v2758_v7   ;;  %v5091_v46 = vmul.f32 0.00390625, %v606_v33  ;;  %v1245_v47 = vrot.slane %v5069_v11, %v4977_v20 }
 0x107   : > { %v1308_v48 = vrot.slane %v769_v32, %v4968_v17  ;;  %v1315_v53 = vrot.slane %v769_v32, %v4971_v18  ;;  %v1322_v54 = vrot.slane %v769_v32, %v4974_v19  ;;  %v1329_v56 = vrot.slane %v769_v32, %v4977_v20 }
 0x108   : > { %v615_v55 = vpop.xlane.xlu1 %614  ;;  %v2877_v57 = vcombine.low %v2869_v34, %v2876_v35  ;;  %v2775_v60 = vcombine.low %v2767_v28, %v2774_v38  ;;  %v2903_v2 = vrot.slane %v2895_v41, %v4988_v37  ;;  %v2910_v4 = vrot.slane %v2896_v42, %v4988_v37 }
 0x109   : > { %v771_v61 = vmul.f32 0.00390625, %v615_v55  ;;  %v612_v63 = vpop.xlane.xlu0 %611  ;;  %v2776_v5 = vcombine.low %v1056_v26, %v1063_v30  ;;  %v1280_v6 = vrot.slane %v5091_v46, %v4968_v17  ;;  %v1287_v12 = vrot.slane %v5091_v46, %v4971_v18 }
 0x10a   : > { %v5099_v0 = vmul.f32 0.00390625, %v612_v63  ;;  %v1294_v13 = vrot.slane %v5091_v46, %v4974_v19  ;;  %3796 = vperm.xlu0 %4470, %v2877_v57   ;;  %3778 = vperm.xlu1 %4471, %v2775_v60   ;;  %v1301_v14 = vrot.slane %v5091_v46, %v4977_v20  ;;  %v2911_v7 = vcombine.low %v2903_v2, %v2910_v4 }
 0x10b   : > { %v1364_v15 = vrot.slane %v771_v61, %v4968_v17  ;;  %v1371_v23 = vrot.slane %v771_v61, %v4971_v18  ;;  %v1378_v26 = vrot.slane %v771_v61, %v4974_v19  ;;  %v1385_v24 = vrot.slane %v771_v61, %v4977_v20 }
 0x10c   : > { %v621_v30 = vpop.xlane.xlu1 %620  ;;  %v2777_v27 = vcombine.low %v1070_v39, %v1077_v40  ;;  %v2784_v28 = vrot.slane %v2776_v5, %v4988_v37  ;;  %v1336_v32 = vrot.slane %v5099_v0, %v4968_v17  ;;  %v2929_v34 = vcombine.low %v1308_v48, %v1315_v53 }
 0x10d   : > { %v618_v29 = vpop.xlane.xlu0 %617  ;;  %v773_v33 = vmul.f32 0.00390625, %v621_v30  ;;  %v2930_v35 = vcombine.low %v1322_v54, %v1329_v56  ;;  %v2793_v8 = vcombine.low %v1084_v16, %v1091_v21  ;;  %v2794_v39 = vcombine.low %v1098_v22, %v1105_v25 }
 0x10e   : > { %3802 = vperm.xlu0 %4470, %v2911_v7   ;;  %v2791_v38 = vrot.slane %v2777_v27, %v4988_v37  ;;  %v5131_v41 = vmul.f32 0.00390625, %v618_v29  ;;  %v1343_v40 = vrot.slane %v5099_v0, %v4971_v18  ;;  %v1350_v42 = vrot.slane %v5099_v0, %v4974_v19 }
 0x10f   : > { %v1357_v48 = vrot.slane %v5099_v0, %v4977_v20  ;;  %v2963_v54 = vcombine.low %v1364_v15, %v1371_v23  ;;  %v1420_v16 = vrot.slane %v773_v33, %v4968_v17  ;;  %v1427_v21 = vrot.slane %v773_v33, %v4971_v18 }
 0x110   : > { %v627_v53 = vpop.xlane.xlu1 %626  ;;  %v2792_v55 = vcombine.low %v2784_v28, %v2791_v38  ;;  %v1434_v56 = vrot.slane %v773_v33, %v4974_v19  ;;  %v1441_v22 = vrot.slane %v773_v33, %v4977_v20  ;;  %v2937_v25 = vrot.slane %v2929_v34, %v4988_v37 }
 0x111   : > { %v624_v3 = vpop.xlane.xlu0 %623  ;;  %v2944_v57 = vrot.slane %v2930_v35, %v4988_v37  ;;  %v2801_v60 = vrot.slane %v2793_v8, %v4988_v37  ;;  %v1392_v61 = vrot.slane %v5131_v41, %v4968_v17  ;;  %v2808_v63 = vrot.slane %v2794_v39, %v4988_v37 }
 0x112   : > { %3781 = vperm.xlu1 %4471, %v2792_v55   ;;  %v775_v2 = vmul.f32 0.00390625, %v627_v53  ;;  %v2964_v4 = vcombine.low %v1378_v26, %v1385_v24  ;;  %v1399_v5 = vrot.slane %v5131_v41, %v4971_v18  ;;  %v2810_v23 = vcombine.low %v1112_v49, %v1119_v51 }
 0x113   : > { %v2945_v15 = vcombine.low %v2937_v25, %v2944_v57  ;;  %v2811_v30 = vcombine.low %v1126_v58, %v1133_v59  ;;  %v1406_v26 = vrot.slane %v5131_v41, %v4974_v19  ;;  %v1413_v24 = vrot.slane %v5131_v41, %v4977_v20 }
 0x114   : > { %v633_v7 = vpop.xlane.xlu1 %632  ;;  %v2809_v27 = vcombine.low %v2801_v60, %v2808_v63  ;;  %v2971_v28 = vrot.slane %v2963_v54, %v4988_v37  ;;  %v1476_v49 = vrot.slane %v775_v2, %v4968_v17  ;;  %v1483_v51 = vrot.slane %v775_v2, %v4971_v18 }
 0x115   : > { %v630_v29 = vpop.xlane.xlu0 %629  ;;  %3808 = vperm.xlu0 %4470, %v2945_v15   ;;  %v1490_v33 = vrot.slane %v775_v2, %v4974_v19  ;;  %v5183_v31 = vmul.f32 0.00390625, %v624_v3  ;;  %v1497_v58 = vrot.slane %v775_v2, %v4977_v20  ;;  %v2978_v59 = vrot.slane %v2964_v4, %v4988_v37 }
 0x116   : > { %3784 = vperm.xlu1 %4471, %v2809_v27   ;;  %v2818_v34 = vrot.slane %v2810_v23, %v4988_v37  ;;  %v2825_v35 = vrot.slane %v2811_v30, %v4988_v37  ;;  %v777_v38 = vmul.f32 0.00390625, %v633_v7  ;;  %v5189_v8 = vmul.f32 0.00390625, %v630_v29 }
 0x117   : > { %v2997_v39 = vcombine.low %v1420_v16, %v1427_v21  ;;  %v2998_v53 = vcombine.low %v1434_v56, %v1441_v22  ;;  %v2979_v55 = vcombine.low %v2971_v28, %v2978_v59  ;;  %v2844_v3 = vcombine.low %v1168_v9, %v1175_v50 }
 0x118   : > { %v639_v54 = vpop.xlane.xlu1 %638  ;;  %v2826_v25 = vcombine.low %v2818_v34, %v2825_v35  ;;  %v2845_v57 = vcombine.low %v1182_v62, %v1189_v36  ;;  %v1448_v16 = vrot.slane %v5183_v31, %v4968_v17  ;;  %v1455_v21 = vrot.slane %v5183_v31, %v4971_v18 }
 0x119   : > { %v636_v60 = vpop.xlane.xlu0 %635  ;;  %v1462_v56 = vrot.slane %v5183_v31, %v4974_v19  ;;  %v1469_v9 = vrot.slane %v5183_v31, %v4977_v20  ;;  %3814 = vperm.xlu0 %4470, %v2979_v55   ;;  %v1532_v50 = vrot.slane %v777_v38, %v4968_v17  ;;  %v1539_v52 = vrot.slane %v777_v38, %v4971_v18 }
 0x11a   : > { %3787 = vperm.xlu1 %4471, %v2826_v25   ;;  %v1546_v62 = vrot.slane %v777_v38, %v4974_v19  ;;  %v5214_v36 = vmul.f32 0.00390625, %v639_v54  ;;  %v1553_v22 = vrot.slane %v777_v38, %v4977_v20  ;;  %v3005_v63 = vrot.slane %v2997_v39, %v4988_v37 }
 0x11b   : > { %v3012_v2 = vrot.slane %v2998_v53, %v4988_v37  ;;  %v2852_v4 = vrot.slane %v2844_v3, %v4988_v37  ;;  %v1504_v23 = vrot.slane %v5189_v8, %v4968_v17  ;;  %v1511_v30 = vrot.slane %v5189_v8, %v4971_v18 }
 0x11c   : > { %v645_v15 = vpop.xlane.xlu1 %644  ;;  %v1518_v7 = vrot.slane %v5189_v8, %v4974_v19  ;;  %v2859_v27 = vrot.slane %v2845_v57, %v4988_v37  ;;  %v1525_v29 = vrot.slane %v5189_v8, %v4977_v20  ;;  %v1588_v34 = vrot.slane %v5214_v36, %v4968_v17 }
 0x11d   : > { %v642_v28 = vpop.xlane.xlu0 %641  ;;  %v3013_v59 = vcombine.low %v3005_v63, %v3012_v2  ;;  %v3031_v35 = vcombine.low %v1476_v49, %v1483_v51  ;;  %v3032_v39 = vcombine.low %v1490_v33, %v1497_v58  ;;  %v2878_v53 = vcombine.low %v1224_v43, %v1231_v44 }
 0x11e   : > { %v2860_v38 = vcombine.low %v2852_v4, %v2859_v27  ;;  %v2879_v54 = vcombine.low %v1238_v45, %v1245_v47  ;;  %v1595_v49 = vrot.slane %v5214_v36, %v4971_v18  ;;  %v1602_v51 = vrot.slane %v5214_v36, %v4974_v19 }
 0x11f   : > { %3820 = vperm.xlu0 %4470, %v3013_v59   ;;  %v1609_v33 = vrot.slane %v5214_v36, %v4977_v20  ;;  %v5249_v58 = vmul.f32 0.00390625, %v636_v60  ;;  %v3039_v44 = vrot.slane %v3031_v35, %v4988_v37  ;;  %v3046_v55 = vrot.slane %v3032_v39, %v4988_v37 }
 0x120   : > { %v651_v43 = vpop.xlane.xlu1 %650  ;;  %3793 = vperm.xlu1 %4471, %v2860_v38   ;;  %v2886_v11 = vrot.slane %v2878_v53, %v4988_v37  ;;  %v2893_v45 = vrot.slane %v2879_v54, %v4988_v37  ;;  %v781_v25 = vmul.f32 0.00390625, %v645_v15  ;;  %v5255_v3 = vmul.f32 0.00390625, %v642_v28 }
 0x121   : > { %v648_v47 = vpop.xlane.xlu0 %647  ;;  %v3065_v57 = vcombine.low %v1532_v50, %v1539_v52  ;;  %v3066_v63 = vcombine.low %v1546_v62, %v1553_v22  ;;  %v3047_v2 = vcombine.low %v3039_v44, %v3046_v55  ;;  %v2912_v60 = vcombine.low %v1280_v6, %v1287_v12 }
 0x122   : > { %v2894_v36 = vcombine.low %v2886_v11, %v2893_v45  ;;  %v2913_v4 = vcombine.low %v1294_v13, %v1301_v14  ;;  %v1560_v50 = vrot.slane %v5249_v58, %v4968_v17  ;;  %v1567_v52 = vrot.slane %v5249_v58, %v4971_v18 }
 0x123   : > { %v1574_v62 = vrot.slane %v5249_v58, %v4974_v19  ;;  %v1581_v22 = vrot.slane %v5249_v58, %v4977_v20  ;;  %3826 = vperm.xlu0 %4470, %v3047_v2   ;;  %v1644_v12 = vrot.slane %v781_v25, %v4968_v17  ;;  %v1651_v46 = vrot.slane %v781_v25, %v4971_v18 }
 0x124   : > { %v657_v6 = vpop.xlane.xlu1 %656  ;;  %3799 = vperm.xlu1 %4471, %v2894_v36   ;;  %v1658_v13 = vrot.slane %v781_v25, %v4974_v19  ;;  %v1665_v15 = vrot.slane %v781_v25, %v4977_v20  ;;  %v3073_v27 = vrot.slane %v3065_v57, %v4988_v37  ;;  %v3080_v28 = vrot.slane %v3066_v63, %v4988_v37 }
 0x125   : > { %v654_v14 = vpop.xlane.xlu0 %653  ;;  %v2920_v59 = vrot.slane %v2912_v60, %v4988_v37  ;;  %v1616_v35 = vrot.slane %v5255_v3, %v4968_v17  ;;  %v1623_v38 = vrot.slane %v5255_v3, %v4971_v18  ;;  %v1630_v39 = vrot.slane %v5255_v3, %v4974_v19 }
 0x126   : > { %v2927_v53 = vrot.slane %v2913_v4, %v4988_v37  ;;  %v3081_v54 = vcombine.low %v3073_v27, %v3080_v28  ;;  %v783_v44 = vmul.f32 0.00390625, %v651_v43  ;;  %v782_v55 = vmul.f32 0.00390625, %v648_v47 }
 0x127   : > { %v3099_v11 = vcombine.low %v1588_v34, %v1595_v49  ;;  %v3100_v57 = vcombine.low %v1602_v51, %v1609_v33  ;;  %v2946_v63 = vcombine.low %v1336_v32, %v1343_v40  ;;  %v2947_v2 = vcombine.low %v1350_v42, %v1357_v48 }
 0x128   : > { %v663_v45 = vpop.xlane.xlu1 %662  ;;  %v2928_v25 = vcombine.low %v2920_v59, %v2927_v53  ;;  %3832 = vperm.xlu0 %4470, %v3081_v54   ;;  %v1672_v34 = vrot.slane %v782_v55, %v4968_v17  ;;  %v1679_v49 = vrot.slane %v782_v55, %v4971_v18  ;;  %v1686_v51 = vrot.slane %v782_v55, %v4974_v19 }
 0x129   : > { %v660_v43 = vpop.xlane.xlu0 %659  ;;  %v1693_v33 = vrot.slane %v782_v55, %v4977_v20  ;;  %v3107_v32 = vrot.slane %v3099_v11, %v4988_v37  ;;  %v3114_v40 = vrot.slane %v3100_v57, %v4988_v37  ;;  %v2954_v47 = vrot.slane %v2946_v63, %v4988_v37 }
 0x12a   : > { %3805 = vperm.xlu1 %4471, %v2928_v25   ;;  %v2961_v0 = vrot.slane %v2947_v2, %v4988_v37  ;;  %v1637_v42 = vrot.slane %v5255_v3, %v4977_v20  ;;  %v1700_v48 = vrot.slane %v783_v44, %v4968_v17  ;;  %v5314_v36 = vmul.f32 0.00390625, %v657_v6 }
 0x12b   : > { %v784_v60 = vmul.f32 0.00390625, %v654_v14  ;;  %v3115_v27 = vcombine.low %v3107_v32, %v3114_v40  ;;  %v3133_v59 = vcombine.low %v1644_v12, %v1651_v46  ;;  %v3134_v53 = vcombine.low %v1658_v13, %v1665_v15 }
 0x12c   : > { %v669_v4 = vpop.xlane.xlu1 %668  ;;  %v2962_v28 = vcombine.low %v2954_v47, %v2961_v0  ;;  %v1707_v55 = vrot.slane %v783_v44, %v4971_v18  ;;  %v1714_v11 = vrot.slane %v783_v44, %v4974_v19  ;;  %v1721_v25 = vrot.slane %v783_v44, %v4977_v20 }
 0x12d   : > { %v666_v54 = vpop.xlane.xlu0 %665  ;;  %v5319_v57 = vcombine.low %v1672_v34, %v1679_v49  ;;  %v5321_v63 = vcombine.low %v1686_v51, %v1693_v33  ;;  %3838 = vperm.xlu0 %4470, %v3115_v27   ;;  %v1756_v6 = vrot.slane %v5314_v36, %v4968_v17  ;;  %v1728_v14 = vrot.slane %v784_v60, %v4968_v17 }
 0x12e   : > { %3811 = vperm.xlu1 %4471, %v2962_v28   ;;  %v1735_v12 = vrot.slane %v784_v60, %v4971_v18  ;;  %v3141_v46 = vrot.slane %v3133_v59, %v4988_v37  ;;  %v3148_v13 = vrot.slane %v3134_v53, %v4988_v37  ;;  %v2980_v15 = vcombine.low %v1392_v61, %v1399_v5 }
 0x12f   : > { %v1763_v2 = vrot.slane %v5314_v36, %v4971_v18  ;;  %v1770_v34 = vrot.slane %v5314_v36, %v4974_v19  ;;  %v2981_v49 = vcombine.low %v1406_v26, %v1413_v24  ;;  %v5347_v51 = vmul.f32 0.00390625, %v663_v45 }
 0x130   : > { %v5335_v44 = vpop.xlane.xlu1 %674  ;;  %v1777_v61 = vrot.slane %v5314_v36, %v4977_v20  ;;  %v1742_v5 = vrot.slane %v784_v60, %v4974_v19  ;;  %v3149_v32 = vcombine.low %v3141_v46, %v3148_v13  ;;  %v2988_v40 = vrot.slane %v2980_v15, %v4988_v37 }
 0x131   : > { %v672_v33 = vpop.xlane.xlu0 %671  ;;  %v1749_v47 = vrot.slane %v784_v60, %v4977_v20  ;;  %v2995_v0 = vrot.slane %v2981_v49, %v4988_v37  ;;  %v786_v27 = vmul.f32 0.00390625, %v660_v43  ;;  %v3167_v28 = vcombine.low %v1700_v48, %v1707_v55 }
 0x132   : > { %v5355_v59 = vcombine.low %v1728_v14, %v1735_v12  ;;  %3844 = vperm.xlu0 %4470, %v3149_v32   ;;  %v3168_v41 = vcombine.low %v1714_v11, %v1721_v25  ;;  %v3014_v26 = vcombine.low %v1448_v16, %v1455_v21  ;;  %v3015_v24 = vcombine.low %v1462_v56, %v1469_v9 }
 0x133   : > { %v2996_v43 = vcombine.low %v2988_v40, %v2995_v0  ;;  %v1812_v48 = vrot.slane %v5347_v51, %v4968_v17  ;;  %v1784_v36 = vrot.slane %v786_v27, %v4968_v17  ;;  %v5372_v60 = vmul.f32 0.00390625, %v669_v4 }
 0x134   : > { %v681_v45 = vpop.xlane.xlu1 %680  ;;  %v1791_v16 = vrot.slane %v786_v27, %v4971_v18  ;;  %v3175_v21 = vrot.slane %v3167_v28, %v4988_v37  ;;  %v3182_v55 = vrot.slane %v3168_v41, %v4988_v37  ;;  %v3022_v31 = vrot.slane %v3014_v26, %v4988_v37 }
 0x135   : > { %v5374_v53 = vpop.xlane.xlu0 %677  ;;  %3817 = vperm.xlu1 %4471, %v2996_v43   ;;  %v1819_v56 = vrot.slane %v5347_v51, %v4971_v18  ;;  %v1798_v9 = vrot.slane %v786_v27, %v4974_v19  ;;  %v1805_v11 = vrot.slane %v786_v27, %v4977_v20  ;;  %v3029_v4 = vrot.slane %v3015_v24, %v4988_v37 }
 0x136   : > { %v5385_v25 = vcombine.low %v1742_v5, %v1749_v47  ;;  %v1826_v14 = vrot.slane %v5347_v51, %v4974_v19  ;;  %v1833_v12 = vrot.slane %v5347_v51, %v4977_v20  ;;  %v3183_v46 = vcombine.low %v3175_v21, %v3182_v55 }
 0x137   : > { %v3030_v13 = vcombine.low %v3022_v31, %v3029_v4  ;;  %v788_v15 = vmul.f32 0.00390625, %v666_v54  ;;  %v3201_v49 = vcombine.low %v1756_v6, %v1763_v2  ;;  %v3202_v32 = vcombine.low %v1770_v34, %v1777_v61 }
 0x138   : > { %v5393_v0 = vcombine.low %v1784_v36, %v1791_v16  ;;  %3850 = vperm.xlu0 %4470, %v3183_v46   ;;  %v1868_v5 = vrot.slane %v5372_v60, %v4968_v17  ;;  %v3048_v51 = vcombine.low %v1504_v23, %v1511_v30  ;;  %v3049_v54 = vcombine.low %v1518_v7, %v1525_v29  ;;  %v687_v6 = vpop.xlane.xlu1 %686 }
 0x139   : > { %v5391_v40 = vpop.xlane.xlu0 %683  ;;  %v5409_v2 = vcombine.low %v1798_v9, %v1805_v11  ;;  %3823 = vperm.xlu1 %4471, %v3030_v13   ;;  %v1875_v34 = vrot.slane %v5372_v60, %v4971_v18  ;;  %v1882_v61 = vrot.slane %v5372_v60, %v4974_v19  ;;  %v790_v47 = vmul.f32 0.00390625, %v672_v33 }
 0x13a   : > { %v3209_v23 = vrot.slane %v3201_v49, %v4988_v37  ;;  %v3216_v30 = vrot.slane %v3202_v32, %v4988_v37  ;;  %v3056_v27 = vrot.slane %v3048_v51, %v4988_v37  ;;  %v3063_v8 = vrot.slane %v3049_v54, %v4988_v37 }
 0x13b   : > { %v1840_v7 = vrot.slane %v788_v15, %v4968_v17  ;;  %v1847_v29 = vrot.slane %v788_v15, %v4971_v18  ;;  %v1854_v28 = vrot.slane %v788_v15, %v4974_v19  ;;  %v1861_v41 = vrot.slane %v788_v15, %v4977_v20 }
 0x13c   : > { %v1889_v26 = vrot.slane %v5372_v60, %v4977_v20  ;;  %v3217_v33 = vcombine.low %v3209_v23, %v3216_v30  ;;  %v3064_v24 = vcombine.low %v3056_v27, %v3063_v8  ;;  %v5426_v43 = vmul.f32 0.00390625, %v5335_v44  ;;  %v5428_v36 = vpop.xlane.xlu1 %692 }
 0x13d   : > { %v1896_v16 = vrot.slane %v790_v47, %v4968_v17  ;;  %v1903_v21 = vrot.slane %v790_v47, %v4971_v18  ;;  %v1910_v55 = vrot.slane %v790_v47, %v4974_v19  ;;  %v1917_v31 = vrot.slane %v790_v47, %v4977_v20  ;;  %v5434_v9 = vpop.xlane.xlu0 %689 }
 0x13e   : > { %3856 = vperm.xlu0 %4470, %v3217_v33   ;;  %3829 = vperm.xlu1 %4471, %v3064_v24   ;;  %v3235_v60 = vcombine.low %v1812_v48, %v1819_v56  ;;  %v3236_v11 = vcombine.low %v1826_v14, %v1833_v12  ;;  %v3082_v44 = vcombine.low %v1560_v50, %v1567_v52  ;;  %v5443_v4 = vand.u32 127, %v885_v1 }
 0x13f   : > { %v5445_v46 = vcombine.low %v1840_v7, %v1847_v29  ;;  %v5447_v13 = vcombine.low %v1854_v28, %v1861_v41  ;;  %v3083_v48 = vcombine.low %v1574_v62, %v1581_v22  ;;  %v5455_v56 = vmul.f32 0.00390625, %v681_v45 }
 0x140   : > { %v1924_v14 = vrot.slane %v5426_v43, %v4968_v17  ;;  %v3243_v50 = vrot.slane %v3235_v60, %v4988_v37  ;;  %v3250_v1 = vrot.slane %v3236_v11, %v4988_v37  ;;  %v3090_v52 = vrot.slane %v3082_v44, %v4988_v37  ;;  %v5474_v51 = vpop.xlane.xlu1 %698 }
 0x141   : > { %v1931_v12 = vrot.slane %v5426_v43, %v4971_v18  ;;  %v1938_v15 = vrot.slane %v5426_v43, %v4974_v19  ;;  %v1945_v58 = vrot.slane %v5426_v43, %v4977_v20  ;;  %v3097_v62 = vrot.slane %v3083_v48, %v4988_v37  ;;  %v696_v27 = vpop.xlane.xlu0 %695 }
 0x142   : > { %v5469_v22 = vcombine.low %v1896_v16, %v1903_v21  ;;  %v5471_v45 = vcombine.low %v1910_v55, %v1917_v31  ;;  %v3251_v49 = vcombine.low %v3243_v50, %v3250_v1  ;;  %v792_v32 = vmul.f32 0.00390625, %v5374_v53 }
 0x143   : > { %v3098_v54 = vcombine.low %v3090_v52, %v3097_v62  ;;  %v1980_v47 = vrot.slane %v5455_v56, %v4968_v17  ;;  %v3269_v23 = vcombine.low %v1868_v5, %v1875_v34  ;;  %v3270_v30 = vcombine.low %v1882_v61, %v1889_v26 }
 0x144   : > { %3862 = vperm.xlu0 %4470, %v3251_v49   ;;  %v1987_v8 = vrot.slane %v5455_v56, %v4971_v18  ;;  %v3116_v53 = vcombine.low %v1616_v35, %v1623_v38  ;;  %v3117_v5 = vcombine.low %v1630_v39, %v1637_v42  ;;  %v795_v34 = vmul.f32 0.00390625, %v687_v6  ;;  %v5508_v16 = vpop.xlane.xlu1 %704 }
 0x145   : > { %3835 = vperm.xlu1 %4471, %v3098_v54   ;;  %v1994_v61 = vrot.slane %v5455_v56, %v4974_v19  ;;  %v3277_v7 = vrot.slane %v3269_v23, %v4988_v37  ;;  %v3284_v29 = vrot.slane %v3270_v30, %v4988_v37  ;;  %v794_v28 = vmul.f32 0.00390625, %v5391_v40  ;;  %v702_v11 = vpop.xlane.xlu0 %701 }
 0x146   : > { %v2001_v35 = vrot.slane %v5455_v56, %v4977_v20  ;;  %v1952_v38 = vrot.slane %v792_v32, %v4968_v17  ;;  %v3124_v41 = vrot.slane %v3116_v53, %v4988_v37  ;;  %v3131_v3 = vrot.slane %v3117_v5, %v4988_v37 }
 0x147   : > { %v1959_v39 = vrot.slane %v792_v32, %v4971_v18  ;;  %v1966_v42 = vrot.slane %v792_v32, %v4974_v19  ;;  %v1973_v6 = vrot.slane %v792_v32, %v4977_v20  ;;  %v3285_v26 = vcombine.low %v3277_v7, %v3284_v29 }
 0x148   : > { %v3132_v33 = vcombine.low %v3124_v41, %v3131_v3  ;;  %v2036_v24 = vrot.slane %v795_v34, %v4968_v17  ;;  %v2043_v40 = vrot.slane %v795_v34, %v4971_v18  ;;  %v2050_v43 = vrot.slane %v795_v34, %v4974_v19  ;;  %v5532_v53 = vpop.xlane.xlu1 %710 }
 0x149   : > { %3868 = vperm.xlu0 %4470, %v3285_v26   ;;  %v2057_v21 = vrot.slane %v795_v34, %v4977_v20  ;;  %v2008_v55 = vrot.slane %v794_v28, %v4968_v17  ;;  %v3303_v31 = vcombine.low %v1924_v14, %v1931_v12  ;;  %v3304_v60 = vcombine.low %v1938_v15, %v1945_v58  ;;  %v708_v7 = vpop.xlane.xlu0 %707 }
 0x14a   : > { %3841 = vperm.xlu1 %4471, %v3132_v33   ;;  %v2015_v44 = vrot.slane %v794_v28, %v4971_v18  ;;  %v2022_v48 = vrot.slane %v794_v28, %v4974_v19  ;;  %v3158_v56 = vrot.slane %v5319_v57, %v4988_v37  ;;  %v3165_v50 = vrot.slane %v5321_v63, %v4988_v37 }
 0x14b   : > { %v2029_v1 = vrot.slane %v794_v28, %v4977_v20  ;;  %v3311_v52 = vrot.slane %v3303_v31, %v4988_v37  ;;  %v3318_v62 = vrot.slane %v3304_v60, %v4988_v37  ;;  %v3337_v14 = vcombine.low %v1980_v47, %v1987_v8 }
 0x14c   : > { %v5521_v12 = vcombine.low %v1952_v38, %v1959_v39  ;;  %v3371_v15 = vcombine.low %v2036_v24, %v2043_v40  ;;  %v3166_v58 = vcombine.low %v3158_v56, %v3165_v50  ;;  %v796_v49 = vmul.f32 0.00390625, %v5434_v9  ;;  %v717_v31 = vpop.xlane.xlu1 %716 }
 0x14d   : > { %v5524_v32 = vcombine.low %v1966_v42, %v1973_v6  ;;  %v3319_v54 = vcombine.low %v3311_v52, %v3318_v62  ;;  %v3338_v57 = vcombine.low %v1994_v61, %v2001_v35  ;;  %v3345_v23 = vrot.slane %v3337_v14, %v4988_v37  ;;  %v714_v56 = vpop.xlane.xlu0 %713 }
 0x14e   : > { %v3372_v63 = vcombine.low %v2050_v43, %v2057_v21  ;;  %3847 = vperm.xlu1 %4471, %v3166_v58   ;;  %v3192_v30 = vrot.slane %v5355_v59, %v4988_v37  ;;  %v3199_v47 = vrot.slane %v5385_v25, %v4988_v37  ;;  %v797_v8 = vmul.f32 0.00390625, %v5428_v36 }
 0x14f   : > { %v5534_v5 = vcombine.low %v2008_v55, %v2015_v44  ;;  %v5536_v9 = vcombine.low %v2022_v48, %v2029_v1  ;;  %3874 = vperm.xlu0 %4470, %v3319_v54   ;;  %v3352_v34 = vrot.slane %v3338_v57, %v4988_v37  ;;  %v798_v61 = vmul.f32 0.00390625, %v696_v27 }
 0x150   : > { %v2064_v29 = vrot.slane %v796_v49, %v4968_v17  ;;  %v2071_v59 = vrot.slane %v796_v49, %v4971_v18  ;;  %v3200_v28 = vcombine.low %v3192_v30, %v3199_v47  ;;  %v3379_v25 = vrot.slane %v3371_v15, %v4988_v37 }
 0x151   : > { %v2078_v36 = vrot.slane %v796_v49, %v4974_v19  ;;  %v2085_v35 = vrot.slane %v796_v49, %v4977_v20  ;;  %v3353_v38 = vcombine.low %v3345_v23, %v3352_v34  ;;  %v2092_v41 = vrot.slane %v797_v8, %v4968_v17  ;;  %v723_v34 = vpop.xlane.xlu1 %722 }
 0x152   : > { %3853 = vperm.xlu1 %4471, %v3200_v28   ;;  %v2099_v3 = vrot.slane %v797_v8, %v4971_v18  ;;  %v2106_v27 = vrot.slane %v797_v8, %v4974_v19  ;;  %v2113_v39 = vrot.slane %v797_v8, %v4977_v20  ;;  %v3386_v42 = vrot.slane %v3372_v63, %v4988_v37 }
 0x153   : > { %3880 = vperm.xlu0 %4470, %v3353_v38   ;;  %v2120_v6 = vrot.slane %v798_v61, %v4968_v17  ;;  %v2127_v26 = vrot.slane %v798_v61, %v4971_v18  ;;  %v3226_v33 = vrot.slane %v5393_v0, %v4988_v37  ;;  %v3233_v24 = vrot.slane %v5409_v2, %v4988_v37 }
 0x154   : > { %v2134_v40 = vrot.slane %v798_v61, %v4974_v19  ;;  %v3387_v43 = vcombine.low %v3379_v25, %v3386_v42  ;;  %v799_v21 = vmul.f32 0.00390625, %v5474_v51  ;;  %v5557_v55 = vmul.f32 0.00390625, %v702_v11 }
 0x155   : > { %v2141_v60 = vrot.slane %v798_v61, %v4977_v20  ;;  %v3234_v44 = vcombine.low %v3226_v33, %v3233_v24  ;;  %v3260_v48 = vrot.slane %v5445_v46, %v4988_v37  ;;  %v3267_v0 = vrot.slane %v5447_v13, %v4988_v37 }
 0x156   : > { %v2148_v2 = vrot.slane %v799_v21, %v4968_v17  ;;  %v2155_v50 = vrot.slane %v799_v21, %v4971_v18  ;;  %v2162_v1 = vrot.slane %v799_v21, %v4974_v19  ;;  %v2169_v51 = vrot.slane %v799_v21, %v4977_v20 }
 0x157   : > { %v5568_v11 = vcombine.low %v2064_v29, %v2071_v59  ;;  %v5570_v52 = vcombine.low %v2078_v36, %v2085_v35  ;;  %v5572_v62 = vcombine.low %v2092_v41, %v2099_v3  ;;  %3886 = vperm.xlu0 %4470, %v3387_v43   ;;  %3859 = vperm.xlu1 %4471, %v3234_v44   ;;  %v802_v46 = vmul.f32 0.00390625, %v708_v7  ;;  %v720_v59 = vpop.xlane.xlu0 %719  ;;  %v729_v43 = vpop.xlane.xlu1 %728 }
 0x158   : > { %v5574_v14 = vcombine.low %v2106_v27, %v2113_v39  ;;  %v5576_v13 = vcombine.low %v2120_v6, %v2127_v26  ;;  %v2176_v15 = vrot.slane %v5557_v55, %v4968_v17  ;;  %v2183_v58 = vrot.slane %v5557_v55, %v4971_v18 }
 0x159   : > { %v5582_v49 = vcombine.low %v2134_v40, %v2141_v60  ;;  %v2190_v54 = vrot.slane %v5557_v55, %v4974_v19  ;;  %v3268_v57 = vcombine.low %v3260_v48, %v3267_v0  ;;  %v5587_v23 = vmul.f32 0.00390625, %v5508_v16 }
 0x15a   : > { %v5589_v63 = vcombine.low %v2148_v2, %v2155_v50  ;;  %v5591_v30 = vcombine.low %v2162_v1, %v2169_v51  ;;  %v2232_v47 = vrot.slane %v802_v46, %v4968_v17  ;;  %v2239_v8 = vrot.slane %v802_v46, %v4971_v18 }
 0x15b   : > { %v2197_v61 = vrot.slane %v5557_v55, %v4977_v20  ;;  %3865 = vperm.xlu1 %4471, %v3268_v57   ;;  %v2246_v7 = vrot.slane %v802_v46, %v4974_v19  ;;  %v2253_v29 = vrot.slane %v802_v46, %v4977_v20  ;;  %v3294_v16 = vrot.slane %v5469_v22, %v4988_v37  ;;  %v726_v0 = vpop.xlane.xlu0 %725 }
 0x15c   : > { %v5601_v28 = vcombine.low %v2176_v15, %v2183_v58  ;;  %v3490_v25 = vcombine.low %v2232_v47, %v2239_v8  ;;  %v3301_v36 = vrot.slane %v5471_v45, %v4988_v37  ;;  %v803_v35 = vmul.f32 0.00390625, %v5532_v53 }
 0x15d   : > { %v3491_v38 = vcombine.low %v2246_v7, %v2253_v29  ;;  %v804_v41 = vmul.f32 0.00390625, %v714_v56  ;;  %v3328_v3 = vrot.slane %v5521_v12, %v4988_v37  ;;  %v3335_v27 = vrot.slane %v5524_v32, %v4988_v37 }
 0x15e   : > { %v3302_v39 = vcombine.low %v3294_v16, %v3301_v36  ;;  %v2260_v22 = vrot.slane %v803_v35, %v4968_v17  ;;  %v2267_v42 = vrot.slane %v803_v35, %v4971_v18  ;;  %v2274_v6 = vrot.slane %v803_v35, %v4974_v19 }
 0x15f   : > { %v2281_v26 = vrot.slane %v803_v35, %v4977_v20  ;;  %v2288_v45 = vrot.slane %v804_v41, %v4968_v17  ;;  %v2295_v53 = vrot.slane %v804_v41, %v4971_v18  ;;  %v2302_v33 = vrot.slane %v804_v41, %v4974_v19 }
 0x160   : > { %3871 = vperm.xlu1 %4471, %v3302_v39   ;;  %v5617_v12 = vcombine.low %v2260_v22, %v2267_v42  ;;  %v2309_v32 = vrot.slane %v804_v41, %v4977_v20  ;;  %v3336_v24 = vcombine.low %v3328_v3, %v3335_v27  ;;  %v805_v40 = vmul.f32 0.00390625, %v717_v31  ;;  %v735_v3 = vpop.xlane.xlu1 %734  ;;  %v732_v22 = vpop.xlane.xlu0 %731 }
 0x161   : > { %v5620_v21 = vcombine.low %v2274_v6, %v2281_v26  ;;  %v3524_v60 = vcombine.low %v2288_v45, %v2295_v53  ;;  %v806_v44 = vmul.f32 0.00390625, %v720_v59  ;;  %v3362_v48 = vrot.slane %v5534_v5, %v4988_v37 }
 0x162   : > { %v3525_v56 = vcombine.low %v2302_v33, %v2309_v32  ;;  %v2316_v2 = vrot.slane %v805_v40, %v4968_v17  ;;  %v2323_v50 = vrot.slane %v805_v40, %v4971_v18  ;;  %v2330_v1 = vrot.slane %v805_v40, %v4974_v19 }
 0x163   : > { %v2337_v51 = vrot.slane %v805_v40, %v4977_v20  ;;  %v2344_v31 = vrot.slane %v806_v44, %v4968_v17  ;;  %v2351_v46 = vrot.slane %v806_v44, %v4971_v18  ;;  %v2358_v15 = vrot.slane %v806_v44, %v4974_v19 }
 0x164   : > { %3877 = vperm.xlu1 %4471, %v3336_v24   ;;  %v5631_v58 = vcombine.low %v2316_v2, %v2323_v50  ;;  %v2365_v5 = vrot.slane %v806_v44, %v4977_v20  ;;  %v3369_v57 = vrot.slane %v5536_v9, %v4988_v37  ;;  %v3498_v47 = vrot.slane %v3490_v25, %v4988_v37 }
 0x165   : > { %v5637_v8 = vcombine.low %v2330_v1, %v2337_v51  ;;  %v3558_v7 = vcombine.low %v2344_v31, %v2351_v46  ;;  %v3505_v29 = vrot.slane %v3491_v38, %v4988_v37  ;;  %v807_v16 = vmul.f32 0.00390625, %v723_v34 }
 0x166   : > { %v3559_v59 = vcombine.low %v2358_v15, %v2365_v5  ;;  %v3370_v36 = vcombine.low %v3362_v48, %v3369_v57  ;;  %v808_v35 = vmul.f32 0.00390625, %v726_v0  ;;  %v3396_v41 = vrot.slane %v5568_v11, %v4988_v37  ;;  %v738_v15 = vpop.xlane.xlu0 %737 }
 0x167   : > { %v3506_v27 = vcombine.low %v3498_v47, %v3505_v29  ;;  %v2372_v39 = vrot.slane %v807_v16, %v4968_v17  ;;  %v2379_v9 = vrot.slane %v807_v16, %v4971_v18  ;;  %v2386_v25 = vrot.slane %v807_v16, %v4974_v19 }
 0x168   : > { %3883 = vperm.xlu1 %4471, %v3370_v36   ;;  %v2393_v42 = vrot.slane %v807_v16, %v4977_v20  ;;  %v2400_v34 = vrot.slane %v808_v35, %v4968_v17  ;;  %v2407_v38 = vrot.slane %v808_v35, %v4971_v18  ;;  %v2414_v6 = vrot.slane %v808_v35, %v4974_v19 }
 0x169   : > { %3907 = vperm.xlu0 %4470, %v3506_v27   ;;  %v5649_v11 = vcombine.low %v2372_v39, %v2379_v9  ;;  %v2421_v26 = vrot.slane %v808_v35, %v4977_v20  ;;  %v3403_v45 = vrot.slane %v5570_v52, %v4988_v37  ;;  %v3532_v53 = vrot.slane %v3524_v60, %v4988_v37  ;;  %v741_v60 = vpop.xlane.xlu1 %740 }
 0x16a   : > { %v5655_v33 = vcombine.low %v2386_v25, %v2393_v42  ;;  %v3592_v32 = vcombine.low %v2400_v34, %v2407_v38  ;;  %v3539_v24 = vrot.slane %v3525_v56, %v4988_v37  ;;  %v809_v40 = vmul.f32 0.00390625, %v729_v43 }
 0x16b   : > { %v3593_v44 = vcombine.low %v2414_v6, %v2421_v26  ;;  %v3404_v48 = vcombine.low %v3396_v41, %v3403_v45  ;;  %v810_v0 = vmul.f32 0.00390625, %v732_v22  ;;  %v3515_v2 = vrot.slane %v5617_v12, %v4988_v37 }
 0x16c   : > { %v3540_v50 = vcombine.low %v3532_v53, %v3539_v24  ;;  %v2428_v1 = vrot.slane %v809_v40, %v4968_v17  ;;  %v2435_v51 = vrot.slane %v809_v40, %v4971_v18  ;;  %v2442_v52 = vrot.slane %v809_v40, %v4974_v19 }
 0x16d   : > { %3889 = vperm.xlu1 %4471, %v3404_v48   ;;  %v2449_v31 = vrot.slane %v809_v40, %v4977_v20  ;;  %v2456_v56 = vrot.slane %v810_v0, %v4968_v17  ;;  %v2463_v43 = vrot.slane %v810_v0, %v4971_v18  ;;  %v2470_v46 = vrot.slane %v810_v0, %v4974_v19  ;;  %v747_v25 = vpop.xlane.xlu1 %746 }
 0x16e   : > { %3913 = vperm.xlu0 %4470, %v3540_v50   ;;  %v3609_v12 = vcombine.low %v2428_v1, %v2435_v51  ;;  %v2477_v5 = vrot.slane %v810_v0, %v4977_v20  ;;  %v3522_v57 = vrot.slane %v5620_v21, %v4988_v37  ;;  %v3566_v47 = vrot.slane %v3558_v7, %v4988_v37 }
 0x16f   : > { %v3610_v29 = vcombine.low %v2442_v52, %v2449_v31  ;;  %v3626_v16 = vcombine.low %v2456_v56, %v2463_v43  ;;  %v3573_v36 = vrot.slane %v3559_v59, %v4988_v37  ;;  %v811_v35 = vmul.f32 0.00390625, %v735_v3  ;;  %v744_v52 = vpop.xlane.xlu0 %743 }
 0x170   : > { %v3627_v41 = vcombine.low %v2470_v46, %v2477_v5  ;;  %v3523_v27 = vcombine.low %v3515_v2, %v3522_v57  ;;  %v812_v39 = vmul.f32 0.00390625, %v738_v15  ;;  %v3549_v9 = vrot.slane %v5631_v58, %v4988_v37 }
 0x171   : > { %v3574_v22 = vcombine.low %v3566_v47, %v3573_v36  ;;  %v2484_v42 = vrot.slane %v811_v35, %v4968_v17  ;;  %v2491_v34 = vrot.slane %v811_v35, %v4971_v18  ;;  %v2498_v21 = vrot.slane %v811_v35, %v4974_v19  ;;  %v5686_v0 = vpop.xlane.xlu1 %752 }
 0x172   : > { %3910 = vperm.xlu1 %4471, %v3523_v27   ;;  %v2505_v7 = vrot.slane %v811_v35, %v4977_v20  ;;  %v2512_v59 = vrot.slane %v812_v39, %v4968_v17  ;;  %v2519_v3 = vrot.slane %v812_v39, %v4971_v18  ;;  %v2526_v38 = vrot.slane %v812_v39, %v4974_v19 }
 0x173   : > { %3919 = vperm.xlu0 %4470, %v3574_v22   ;;  %v3643_v6 = vcombine.low %v2484_v42, %v2491_v34  ;;  %v2533_v58 = vrot.slane %v812_v39, %v4977_v20  ;;  %v3556_v26 = vrot.slane %v5637_v8, %v4988_v37  ;;  %v3600_v45 = vrot.slane %v3592_v32, %v4988_v37  ;;  %v750_v34 = vpop.xlane.xlu0 %749 }
 0x174   : > { %v3644_v53 = vcombine.low %v2498_v21, %v2505_v7  ;;  %v3660_v24 = vcombine.low %v2512_v59, %v2519_v3  ;;  %v3607_v40 = vrot.slane %v3593_v44, %v4988_v37  ;;  %v813_v48 = vmul.f32 0.00390625, %v741_v60 }
 0x175   : > { %v3661_v2 = vcombine.low %v2526_v38, %v2533_v58  ;;  %v3557_v50 = vcombine.low %v3549_v9, %v3556_v26  ;;  %v3583_v1 = vrot.slane %v5649_v11, %v4988_v37  ;;  %v3590_v51 = vrot.slane %v5655_v33, %v4988_v37 }
 0x176   : > { %v3608_v31 = vcombine.low %v3600_v45, %v3607_v40  ;;  %v2540_v8 = vrot.slane %v813_v48, %v4968_v17  ;;  %v2547_v32 = vrot.slane %v813_v48, %v4971_v18  ;;  %v2554_v56 = vrot.slane %v813_v48, %v4974_v19 }
 0x177   : > { %3916 = vperm.xlu1 %4471, %v3557_v50   ;;  %v2561_v44 = vrot.slane %v813_v48, %v4977_v20  ;;  %v3591_v60 = vcombine.low %v3583_v1, %v3590_v51  ;;  %v3634_v43 = vrot.slane %v3626_v16, %v4988_v37  ;;  %v3641_v46 = vrot.slane %v3627_v41, %v4988_v37 }
 0x178   : > { %3925 = vperm.xlu0 %4470, %v3608_v31   ;;  %v3677_v11 = vcombine.low %v2540_v8, %v2547_v32  ;;  %v814_v15 = vmul.f32 0.00390625, %v744_v52  ;;  %v3617_v33 = vrot.slane %v3609_v12, %v4988_v37  ;;  %v3624_v5 = vrot.slane %v3610_v29, %v4988_v37  ;;  %v3764_v32 = vpop.permute.xlu0 %3763 }
 0x179   : > { %v5700_v57 = vpop.permute.xlu1 %3766  ;;  %v3678_v47 = vcombine.low %v2554_v56, %v2561_v44  ;;  %v3642_v36 = vcombine.low %v3634_v43, %v3641_v46  ;;  %v3668_v35 = vrot.slane %v3660_v24, %v4988_v37  ;;  %v3675_v27 = vrot.slane %v3661_v2, %v4988_v37 }
 0x17a   : > { %v2568_v39 = vrot.slane %v814_v15, %v4968_v17  ;;  %v2575_v16 = vrot.slane %v814_v15, %v4971_v18  ;;  %v2582_v41 = vrot.slane %v814_v15, %v4974_v19  ;;  %v2589_v9 = vrot.slane %v814_v15, %v4977_v20 }
 0x17b   : > { %3922 = vperm.xlu1 %4471, %v3591_v60   ;;  %v3625_v12 = vcombine.low %v3617_v33, %v3624_v5  ;;  %v3676_v22 = vcombine.low %v3668_v35, %v3675_v27  ;;  %v815_v29 = vmul.f32 0.00390625, %v747_v25  ;;  %v3651_v42 = vrot.slane %v3643_v6, %v4988_v37 }
 0x17c   : > { %3931 = vperm.xlu0 %4470, %v3642_v36   ;;  %v3694_v21 = vcombine.low %v2568_v39, %v2575_v16  ;;  %v3695_v7 = vcombine.low %v2582_v41, %v2589_v9  ;;  %v3658_v59 = vrot.slane %v3644_v53, %v4988_v37  ;;  %v3685_v3 = vrot.slane %v3677_v11, %v4988_v37 }
 0x17d   : > { %v5711_v38 = vpop.permute.xlu1 %3769  ;;  %v2596_v58 = vrot.slane %v815_v29, %v4968_v17  ;;  %v2603_v26 = vrot.slane %v815_v29, %v4971_v18  ;;  %v2610_v45 = vrot.slane %v815_v29, %v4974_v19  ;;  %v2617_v25 = vrot.slane %v815_v29, %v4977_v20 }
 0x17e   : > { %v2204_v6 = vrot.slane %v5587_v23, %v4968_v17  ;;  %v3692_v24 = vrot.slane %v3678_v47, %v4988_v37  ;;  %v816_v40 = vmul.f32 0.00390625, %v750_v34  ;;  %v3413_v53 = vrot.slane %v5572_v62, %v4988_v37 }
 0x17f   : > { %3928 = vperm.xlu1 %4471, %v3625_v12   ;;  %v3711_v48 = vcombine.low %v2596_v58, %v2603_v26  ;;  %v3659_v2 = vcombine.low %v3651_v42, %v3658_v59  ;;  %v3420_v50 = vrot.slane %v5574_v14, %v4988_v37  ;;  %v3702_v1 = vrot.slane %v3694_v21, %v4988_v37 }
 0x180   : > { %3937 = vperm.xlu0 %4470, %v3676_v22   ;;  %v3693_v51 = vcombine.low %v3685_v3, %v3692_v24  ;;  %v2624_v52 = vrot.slane %v816_v40, %v4968_v17  ;;  %v2631_v31 = vrot.slane %v816_v40, %v4971_v18  ;;  %v2638_v8 = vrot.slane %v816_v40, %v4974_v19 }
 0x181   : > { %v5728_v56 = vpop.permute.xlu1 %3772  ;;  %v3712_v62 = vcombine.low %v2610_v45, %v2617_v25  ;;  %v2645_v44 = vrot.slane %v816_v40, %v4977_v20  ;;  %v3709_v60 = vrot.slane %v3695_v7, %v4988_v37  ;;  %v817_v14 = vmul.f32 0.00390625, %v5686_v0 }
 0x182   : > { %v2211_v43 = vrot.slane %v5587_v23, %v4971_v18  ;;  %v2218_v46 = vrot.slane %v5587_v23, %v4974_v19  ;;  %v3421_v11 = vcombine.low %v3413_v53, %v3420_v50  ;;  %v5739_v15 = vsub.s32 %v5443_v4, %v4965_v10 }
 0x183   : > { %3934 = vperm.xlu1 %4471, %v3659_v2   ;;  %v3728_v33 = vcombine.low %v2624_v52, %v2631_v31  ;;  %v3729_v5 = vcombine.low %v2638_v8, %v2645_v44  ;;  %v2652_v47 = vrot.slane %v817_v14, %v4968_v17  ;;  %v2659_v36 = vrot.slane %v817_v14, %v4971_v18  ;;  %v5749_v41 = vpop.permute.xlu0 %3790 }
 0x184   : > { %3940 = vperm.xlu0 %4470, %v3693_v51   ;;  %v3710_v0 = vcombine.low %v3702_v1, %v3709_v60  ;;  %v2666_v35 = vrot.slane %v817_v14, %v4974_v19  ;;  %v2673_v27 = vrot.slane %v817_v14, %v4977_v20  ;;  %v3430_v39 = vrot.slane %v5576_v13, %v4988_v37 }
 0x185   : > { %v5747_v16 = vpop.permute.xlu1 %3775  ;;  %v3437_v9 = vrot.slane %v5582_v49, %v4988_v37  ;;  %v3719_v17 = vrot.slane %v3711_v48, %v4988_v37  ;;  %v3726_v18 = vrot.slane %v3712_v62, %v4988_v37  ;;  %v3960_v12 = vadd.s32 4294967288, %v5443_v4 }
 0x186   : > { %v3457_v13 = vcombine.low %v2190_v54, %v2197_v61  ;;  %v2225_v22 = vrot.slane %v5587_v23, %v4977_v20  ;;  %v5764_v29 = vcombine.low %v2204_v6, %v2211_v43  ;;  %v3959_v49 = vrot.slane %v3764_v32, %v5739_v15 }
 0x187   : > { %3892 = vperm.xlu1 %4471, %v3421_v11   ;;  %v3745_v42 = vcombine.low %v2652_v47, %v2659_v36  ;;  %v5768_v34 = vsub.s32 %v3960_v12, %v4965_v10  ;;  %v3736_v21 = vrot.slane %v3728_v33, %v4988_v37  ;;  %v3743_v7 = vrot.slane %v3729_v5, %v4988_v37 }
 0x188   : > { %3943 = vperm.xlu0 %4470, %v3710_v0   ;;  %v3746_v59 = vcombine.low %v2666_v35, %v2673_v27  ;;  %v3727_v19 = vcombine.low %v3719_v17, %v3726_v18  ;;  %v3967_v55 = vadd.s32 4294967280, %v5443_v4  ;;  %v3438_v20 = vcombine.low %v3430_v39, %v3437_v9 }
 0x189   : > { %v3964_v54 = vrot.slane %v5700_v57, %v5768_v34  ;;  %v3447_v23 = vrot.slane %v5589_v63, %v4988_v37  ;;  %v3454_v61 = vrot.slane %v5591_v30, %v4988_v37  ;;  %v3464_v58 = vrot.slane %v5601_v28, %v4988_v37  ;;  %v3779_v45 = vpop.permute.xlu1 %3778  ;;  %v5785_v25 = vpop.permute.xlu0 %3796 }
 0x18a   : > { %v5780_v3 = vsub.s32 %v3967_v55, %v4965_v10  ;;  %v3974_v26 = vadd.s32 4294967272, %v5443_v4  ;;  %v3744_v6 = vcombine.low %v3736_v21, %v3743_v7  ;;  %v3471_v63 = vrot.slane %v3457_v13, %v4988_v37 }
 0x18b   : > { %3895 = vperm.xlu1 %4471, %v3438_v20   ;;  %v3966_v57 = vsel %vm3965_vm0, %v3964_v54, %v3959_v49  ;;  %v3753_v30 = vrot.slane %v3745_v42, %v4988_v37  ;;  %v3760_v40 = vrot.slane %v3746_v59, %v4988_v37  ;;  %v3981_v53 = vadd.s32 4294967264, %v5443_v4 }
 0x18c   : > { %3946 = vperm.xlu0 %4470, %v3727_v19   ;;  %v3971_v24 = vrot.slane %v5711_v38, %v5780_v3  ;;  %v5794_v28 = vsub.s32 %v3974_v26, %v4965_v10  ;;  %v3474_v48 = vcombine.low %v2218_v46, %v2225_v22  ;;  %v3455_v2 = vcombine.low %v3447_v23, %v3454_v61 }
 0x18d   : > { %v3988_v50 = vadd.s32 4294967256, %v5443_v4  ;;  %v5802_v52 = vsub.s32 %v3981_v53, %v4965_v10  ;;  %v3472_v38 = vcombine.low %v3464_v58, %v3471_v63  ;;  %v3995_v8 = vadd.s32 4294967248, %v5443_v4  ;;  %v3803_v60 = vpop.permute.xlu0 %3802 }
 0x18e   : > { %v3973_v1 = vsel %vm3972_vm1, %v3971_v24, %v3966_v57  ;;  %v3978_v51 = vrot.slane %v5728_v56, %v5794_v28  ;;  %v3761_v32 = vcombine.low %v3753_v30, %v3760_v40  ;;  %v3481_v14 = vrot.slane %v5764_v29, %v4988_v37 }
 0x18f   : > { %3898 = vperm.xlu1 %4471, %v3455_v2   ;;  %v5805_v31 = vsub.s32 %v3988_v50, %v4965_v10  ;;  %v3985_v44 = vrot.slane %v5747_v16, %v5802_v52  ;;  %v3488_v43 = vrot.slane %v3474_v48, %v4988_v37  ;;  %v5816_v11 = vsub.s32 %v3995_v8, %v4965_v10 }
 0x190   : > { %3949 = vperm.xlu0 %4470, %v3744_v6   ;;  %v3980_v62 = vsel %vm3979_vm2, %v3978_v51, %v3973_v1  ;;  %v4016_v5 = vadd.s32 4294967224, %v5443_v4  ;;  %v4002_v47 = vadd.s32 4294967240, %v5443_v4  ;;  %v4009_v27 = vadd.s32 4294967232, %v5443_v4 }
 0x191   : > { %v3782_v56 = vpop.permute.xlu1 %3781  ;;  %v3992_v46 = vrot.slane %v3779_v45, %v5805_v31  ;;  %v3987_v33 = vsel %vm3986_vm3, %v3985_v44, %v3980_v62  ;;  %v3489_v39 = vcombine.low %v3481_v14, %v3488_v43  ;;  %v4023_v13 = vadd.s32 4294967216, %v5443_v4 }
 0x192   : > { %v3999_v0 = vrot.slane %v3782_v56, %v5816_v11  ;;  %v5824_v37 = vsub.s32 %v4002_v47, %v4965_v10  ;;  %v5829_v9 = vsub.s32 %v4016_v5, %v4965_v10  ;;  %v5833_v12 = vsub.s32 %v4009_v27, %v4965_v10 }
 0x193   : > { %3901 = vperm.xlu1 %4471, %v3472_v38   ;;  %v3994_v36 = vsel %vm3993_vm4, %v3992_v46, %v3987_v33  ;;  %v4030_v22 = vadd.s32 4294967208, %v5443_v4  ;;  %v5843_v59 = vsub.s32 %v4023_v13, %v4965_v10  ;;  %v4037_v19 = vadd.s32 4294967200, %v5443_v4 }
 0x194   : > { %3952 = vperm.xlu0 %4470, %v3761_v32   ;;  %v4001_v16 = vsel %vm4000_vm5, %v3999_v0, %v3994_v36  ;;  %v3809_v18 = vpop.permute.xlu0 %3808  ;;  %v4020_v21 = vrot.slane %v5749_v41, %v5829_v9  ;;  %v4044_v20 = vadd.s32 4294967192, %v5443_v4  ;;  %v4051_v6 = vadd.s32 4294967184, %v5443_v4 }
 0x195   : > { %v3785_v35 = vpop.permute.xlu1 %3784  ;;  %v5847_v55 = vsub.s32 %v4030_v22, %v4965_v10  ;;  %v5853_v41 = vsub.s32 %v4037_v19, %v4965_v10  ;;  %v4058_v63 = vadd.s32 4294967176, %v5443_v4 }
 0x196   : > { %v4006_v17 = vrot.slane %v3785_v35, %v5824_v37  ;;  %v5858_v45 = vsub.s32 %v4044_v20, %v4965_v10  ;;  %v5868_v2 = vsub.s32 %v4051_v6, %v4965_v10 }
 0x197   : > { %3904 = vperm.xlu1 %4471, %v3489_v39   ;;  %v4034_v26 = vrot.slane %v5785_v25, %v5847_v55  ;;  %v5871_v50 = vsub.s32 %v4058_v63, %v4965_v10 }
 0x198   : > { %v4008_v29 = vsel %vm4007_vm6, %v4006_v17, %v4001_v16  ;;  %v3815_v54 = vpop.permute.xlu0 %3814  ;;  %v4048_v48 = vrot.slane %v3803_v60, %v5858_v45 }
 0x199   : > { %v3788_v49 = vpop.permute.xlu1 %3787  ;;  %v4062_v8 = vrot.slane %v3809_v18, %v5871_v50  ;;  %v4072_v56 = vrot.slane %v3815_v54, %v5768_v34 }
 0x19a   : > { %v4013_v42 = vrot.slane %v3788_v49, %v5833_v12 }
 0x19c   : > { %v4015_v7 = vsel %vm4014_vm7, %v4013_v42, %v4008_v29 }
 0x19d   : > { %v4022_v23 = vsel %vm4021_vm8, %v4020_v21, %v4015_v7 }
 0x19e   : > { %v3821_v30 = vpop.permute.xlu0 %3820 }
 0x19f   : > { %v3794_v61 = vpop.permute.xlu1 %3793  ;;  %v4082_v5 = vrot.slane %v3821_v30, %v5794_v28 }
 0x1a0   : > { %v4027_v58 = vrot.slane %v3794_v61, %v5843_v59 }
 0x1a2   : > { %v4029_v57 = vsel %vm4028_vm9, %v4027_v58, %v4022_v23  ;;  %v3827_v1 = vpop.permute.xlu0 %3826 }
 0x1a3   : > { %v3800_v24 = vpop.permute.xlu1 %3799  ;;  %v4036_v40 = vsel %vm4035_vm10, %v4034_v26, %v4029_v57  ;;  %v4092_v27 = vrot.slane %v3827_v1, %v5805_v31 }
 0x1a4   : > { %v4041_v53 = vrot.slane %v3800_v24, %v5853_v41 }
 0x1a6   : > { %v4043_v25 = vsel %vm4042_vm11, %v4041_v53, %v4036_v40 }
 0x1a7   : > { %v4050_v4 = vsel %vm4049_vm12, %v4048_v48, %v4043_v25  ;;  %v3833_v60 = vpop.permute.xlu0 %3832 }
 0x1a8   : > { %v4102_v22 = vrot.slane %v3833_v60, %v5824_v37 }
 0x1a9   : > { %v3806_v51 = vpop.permute.xlu1 %3805 }
 0x1aa   : > { %v4055_v38 = vrot.slane %v3806_v51, %v5868_v2 }
 0x1ac   : > { %v4057_v32 = vsel %vm4056_vm13, %v4055_v38, %v4050_v4  ;;  %v3839_v43 = vpop.permute.xlu0 %3838 }
 0x1ad   : > { %v5878_v62 = vsel %vm4063_vm14, %v4062_v8, %v4057_v32  ;;  %v3812_v44 = vpop.permute.xlu1 %3811  ;;  %v4112_v19 = vrot.slane %v3839_v43, %v5829_v9 }
 0x1ae   : > { %v4068_v10 = vrot.slane %v3812_v44, %v5739_v15 }
 0x1b0   : > { %v4073_v14 = vsel %vm3965_vm0, %v4072_v56, %v4068_v10 }
 0x1b1   : > { %v3845_v39 = vpop.permute.xlu0 %3844 }
 0x1b2   : > { %v4122_v26 = vrot.slane %v3845_v39, %v5847_v55 }
 0x1b4   : > { %v3818_v46 = vpop.permute.xlu1 %3817 }
 0x1b5   : > { %v4077_v33 = vrot.slane %v3818_v46, %v5780_v3 }
 0x1b7   : > { %v4078_v47 = vsel %vm3972_vm1, %v4077_v33, %v4073_v14  ;;  %v3851_v29 = vpop.permute.xlu0 %3850 }
 0x1b8   : > { %v3824_v36 = vpop.permute.xlu1 %3823  ;;  %v4083_v0 = vsel %vm3979_vm2, %v4082_v5, %v4078_v47  ;;  %v4132_v40 = vrot.slane %v3851_v29, %v5858_v45 }
 0x1b9   : > { %v4087_v35 = vrot.slane %v3824_v36, %v5802_v52 }
 0x1bb   : > { %v4088_v16 = vsel %vm3986_vm3, %v4087_v35, %v4083_v0 }
 0x1bc   : > { %v4093_v17 = vsel %vm3993_vm4, %v4092_v27, %v4088_v16 }
 0x1bd   : > { %v3830_v18 = vpop.permute.xlu1 %3829  ;;  %v3857_v20 = vpop.permute.xlu0 %3856 }
 0x1be   : > { %v4097_v13 = vrot.slane %v3830_v18, %v5816_v11  ;;  %v4142_v51 = vrot.slane %v3857_v20, %v5871_v50 }
 0x1c0   : > { %v4098_v49 = vsel %vm4000_vm5, %v4097_v13, %v4093_v17 }
 0x1c1   : > { %v4103_v42 = vsel %vm4007_vm6, %v4102_v22, %v4098_v49 }
 0x1c3   : > { %v3863_v57 = vpop.permute.xlu0 %3862 }
 0x1c4   : > { %v3836_v21 = vpop.permute.xlu1 %3835 }
 0x1c5   : > { %v4107_v7 = vrot.slane %v3836_v21, %v5833_v12 }
 0x1c7   : > { %v4108_v54 = vsel %vm4014_vm7, %v4107_v7, %v4103_v42 }
 0x1c8   : > { %v4113_v23 = vsel %vm4021_vm8, %v4112_v19, %v4108_v54  ;;  %v3869_v4 = vpop.permute.xlu0 %3868 }
 0x1c9   : > { %v3842_v61 = vpop.permute.xlu1 %3841 }
 0x1ca   : > { %v4117_v58 = vrot.slane %v3842_v61, %v5843_v59  ;;  %v4151_v61 = vrot.slane %v3863_v57, %v5768_v34 }
 0x1cc   : > { %v4118_v6 = vsel %vm4028_vm9, %v4117_v58, %v4113_v23 }
 0x1cd   : > { %v3848_v63 = vpop.permute.xlu1 %3847  ;;  %v4123_v30 = vsel %vm4035_vm10, %v4122_v26, %v4118_v6 }
 0x1ce   : > { %v4127_v24 = vrot.slane %v3848_v63, %v5853_v41  ;;  %v3875_v44 = vpop.permute.xlu0 %3874 }
 0x1d0   : > { %v4128_v53 = vsel %vm4042_vm11, %v4127_v24, %v4123_v30 }
 0x1d1   : > { %v3854_v48 = vpop.permute.xlu1 %3853  ;;  %v4133_v25 = vsel %vm4049_vm12, %v4132_v40, %v4128_v53  ;;  %v4161_v53 = vrot.slane %v3869_v4, %v5794_v28 }
 0x1d2   : > { %v4137_v1 = vrot.slane %v3854_v48, %v5868_v2  ;;  %v3881_v10 = vpop.permute.xlu0 %3880 }
 0x1d4   : > { %v4138_v38 = vsel %vm4056_vm13, %v4137_v1, %v4133_v25 }
 0x1d5   : > { %v5911_v8 = vsel %vm4063_vm14, %v4142_v51, %v4138_v38 }
 0x1d6   : > { %v3860_v32 = vpop.permute.xlu1 %3859  ;;  %v5913_v43 = vpop.permute.xlu0 %3886 }
 0x1d7   : > { %v4147_v21 = vrot.slane %v3860_v32, %v5739_v15 }
 0x1d9   : > { %v4152_v6 = vsel %vm3965_vm0, %v4151_v61, %v4147_v21 }
 0x1da   : > { %v3866_v56 = vpop.permute.xlu1 %3865 }
 0x1db   : > { %v4156_v54 = vrot.slane %v3866_v56, %v5780_v3  ;;  %v4171_v56 = vrot.slane %v3875_v44, %v5805_v31 }
 0x1dd   : > { %v4157_v24 = vsel %vm3972_vm1, %v4156_v54, %v4152_v6 }
 0x1de   : > { %v4162_v48 = vsel %vm3979_vm2, %v4161_v53, %v4157_v24 }
 0x1df   : > { %v3872_v60 = vpop.permute.xlu1 %3871 }
 0x1e0   : > { %v4166_v40 = vrot.slane %v3872_v60, %v5802_v52 }
 0x1e2   : > { %v4167_v38 = vsel %vm3986_vm3, %v4166_v40, %v4162_v48 }
 0x1e3   : > { %v3878_v14 = vpop.permute.xlu1 %3877  ;;  %v4172_v60 = vsel %vm3993_vm4, %v4171_v56, %v4167_v38 }
 0x1e4   : > { %v4176_v32 = vrot.slane %v3878_v14, %v5816_v11 }
 0x1e7   : > { %v3884_v46 = vpop.permute.xlu1 %3883 }
 0x1e8   : > { %v3908_v33 = vpop.permute.xlu0 %3907 }
 0x1e9   : > { %v4226_v16 = vrot.slane %v3908_v33, %v5739_v15 }
 0x1ec   : > { %v5915_v5 = vpop.permute.xlu1 %3889 }
 0x1ed   : > { %v3914_v47 = vpop.permute.xlu0 %3913 }
 0x1ee   : > { %v4235_v29 = vrot.slane %v3914_v47, %v5780_v3 }
 0x1f1   : > { %v3911_v36 = vpop.permute.xlu1 %3910 }
 0x1f2   : > { %v3920_v0 = vpop.permute.xlu0 %3919  ;;  %v4230_v27 = vrot.slane %v3911_v36, %v5768_v34  ;;  %v4177_v36 = vsel %vm4000_vm5, %v4176_v32, %v4172_v60 }
 0x1f3   : > { %v4245_v23 = vrot.slane %v3920_v0, %v5802_v52  ;;  %v4186_v0 = vrot.slane %v3884_v46, %v5833_v12  ;;  %v4196_v46 = vrot.slane %v5915_v5, %v5843_v59 }
 0x1f4   : > { %v4231_v18 = vsel %vm3965_vm0, %v4230_v27, %v4226_v16 }
 0x1f5   : > { %v4236_v49 = vsel %vm3972_vm1, %v4235_v29, %v4231_v18 }
 0x1f6   : > { %v3917_v35 = vpop.permute.xlu1 %3916 }
 0x1f7   : > { %v3926_v39 = vpop.permute.xlu0 %3925  ;;  %v4240_v13 = vrot.slane %v3917_v35, %v5794_v28 }
 0x1f8   : > { %v4255_v3 = vrot.slane %v3926_v39, %v5816_v11  ;;  %v4181_v11 = vrot.slane %v3881_v10, %v5824_v37  ;;  %v4191_v10 = vrot.slane %v5913_v43, %v5829_v9 }
 0x1f9   : > { %v4241_v7 = vsel %vm3979_vm2, %v4240_v13, %v4236_v49 }
 0x1fa   : > { %v3923_v17 = vpop.permute.xlu1 %3922  ;;  %v4246_v58 = vsel %vm3986_vm3, %v4245_v23, %v4241_v7  ;;  %v4182_v44 = vsel %vm4007_vm6, %v4181_v11, %v4177_v36 }
 0x1fb   : > { %v3932_v22 = vpop.permute.xlu0 %3931  ;;  %v4250_v19 = vrot.slane %v3923_v17, %v5805_v31 }
 0x1fc   : > { %v4265_v52 = vrot.slane %v3932_v22, %v5833_v12  ;;  %v4187_v12 = vsel %vm4014_vm7, %v4186_v0, %v4182_v44 }
 0x1fd   : > { %v4251_v63 = vsel %vm3993_vm4, %v4250_v19, %v4246_v58  ;;  %v4192_v49 = vsel %vm4021_vm8, %v4191_v10, %v4187_v12 }
 0x1fe   : > { %v3929_v42 = vpop.permute.xlu1 %3928  ;;  %v4256_v34 = vsel %vm4000_vm5, %v4255_v3, %v4251_v63 }
 0x1ff   : > { %v3938_v20 = vpop.permute.xlu0 %3937  ;;  %v4260_v15 = vrot.slane %v3929_v42, %v5824_v37 }
 0x200   : > { %v4275_v35 = vrot.slane %v3938_v20, %v5843_v59 }
 0x201   : > { %v4261_v25 = vsel %vm4007_vm6, %v4260_v15, %v4256_v34 }
 0x202   : > { %v3935_v26 = vpop.permute.xlu1 %3934  ;;  %v4266_v28 = vsel %vm4014_vm7, %v4265_v52, %v4261_v25 }
 0x203   : > { %v3941_v30 = vpop.permute.xlu0 %3940  ;;  %v4270_v1 = vrot.slane %v3935_v26, %v5829_v9  ;;  %v4197_v9 = vsel %vm4028_vm9, %v4196_v46, %v4192_v49 }
 0x204   : > { %v4280_v27 = vrot.slane %v3941_v30, %v5847_v55 }
 0x205   : > { %v4271_v33 = vsel %vm4021_vm8, %v4270_v1, %v4266_v28 }
 0x206   : > { %v3893_v57 = vpop.permute.xlu1 %3892  ;;  %v4276_v14 = vsel %vm4028_vm9, %v4275_v35, %v4271_v33 }
 0x207   : > { %v3944_v51 = vpop.permute.xlu0 %3943  ;;  %v4281_v16 = vsel %vm4035_vm10, %v4280_v27, %v4276_v14  ;;  %v4201_v17 = vrot.slane %v3893_v57, %v5847_v55 }
 0x208   : > { %v4285_v37 = vrot.slane %v3944_v51, %v5853_v41 }
 0x20a   : > { %v3896_v4 = vpop.permute.xlu1 %3895  ;;  %v4286_v43 = vsel %vm4042_vm11, %v4285_v37, %v4281_v16 }
 0x20b   : > { %v3947_v47 = vpop.permute.xlu0 %3946  ;;  %v4206_v13 = vrot.slane %v3896_v4, %v5853_v41  ;;  %v4202_v41 = vsel %vm4035_vm10, %v4201_v17, %v4197_v9 }
 0x20c   : > { %v4290_v18 = vrot.slane %v3947_v47, %v5858_v45 }
 0x20d   : > { %v4207_v7 = vsel %vm4042_vm11, %v4206_v13, %v4202_v41 }
 0x20e   : > { %v3899_v31 = vpop.permute.xlu1 %3898  ;;  %v4291_v21 = vsel %vm4049_vm12, %v4290_v18, %v4286_v43 }
 0x20f   : > { %v3950_v39 = vpop.permute.xlu0 %3949  ;;  %v4211_v59 = vrot.slane %v3899_v31, %v5858_v45 }
 0x210   : > { %v4295_v22 = vrot.slane %v3950_v39, %v5868_v2 }
 0x211   : > { %v4212_v20 = vsel %vm4049_vm12, %v4211_v59, %v4207_v7 }
 0x212   : > { %v3902_v29 = vpop.permute.xlu1 %3901  ;;  %v4296_v19 = vsel %vm4056_vm13, %v4295_v22, %v4291_v21 }
 0x213   : > { %v3953_v5 = vpop.permute.xlu0 %3952  ;;  %v4216_v55 = vrot.slane %v3902_v29, %v5868_v2 }
 0x214   : > { %v4300_v42 = vrot.slane %v3953_v5, %v5871_v50 }
 0x215   : > { %v4217_v2 = vsel %vm4056_vm13, %v4216_v55, %v4212_v20 }
 0x216   : > { %v3905_v45 = vpop.permute.xlu1 %3904  ;;  %v4301_v54 = vsel %vm4063_vm14, %v4300_v42, %v4296_v19 }
 0x217   : > { %v4221_v23 = vrot.slane %v3905_v45, %v5871_v50  ;;  %v4304_v58 = vsel %vm4302_vm15, %v4301_v54, %v5911_v8 }
 0x219   : > { %v4222_v61 = vsel %vm4063_vm14, %v4221_v23, %v4217_v2 }
 0x21a   : > { %v4303_v26 = vsel %vm4302_vm15, %v4222_v61, %v5878_v62 }
 0x21b   : > { %v4305_v6 = vcombine.low %v4303_v26, %v4304_v58 }
 0x21d   : > { %4419 = vst.sshfl [vmem:[%s432_s30] sm:$0x33 pattern:$0x76325410] %v4305_v6 }
 0x21e PF: > { %s11_s10 = sadd.s32 1, %s4510_s10   ;;  %s6011_s6 = smov %s4498_s7 }
 0x21f   : > { %p8_p10 = scmp.ge.s32.totalorder %s11_s10, 6   ;;  %s6012_s7 = smov %s4563_s14 }
 0x220   : > { %s6013_s8 = smov %s4506_s9  ;;  %s6014_s9 = smov %s6016_s11 }
 0x221   :  { %10 = sbr.rel (!%p8_p10) target bundleno = 3 (0x3), region = 82 }

// kernel: custom_model_forward.3
= control target key start
LH: loop header
LB: loop body
LE: loop exit
PB: predicated region body
PF: predicated region fallthrough
CT: control target
= control target key end

     0   :  { %vm1391_vm0 = vcmask 1041408   ;;  %vm2247_vm1 = vmmov 0   ;;  %s4133_s1 = inlined_call_operand.vmem [shape: f32[1024,512], index: 1, kind: input, shape index: {}]   ;;  %s4134_s0 = inlined_call_operand.vmem [shape: f32[2,1024], index: 0, kind: input, shape index: {}]   ;;  %s4135_s3 = inlined_call_operand.vmem [shape: f32[512,128], index: 3, kind: input, shape index: {}]   ;;  %s4136_s2 = inlined_call_operand.vmem [shape: f32[1,512], index: 2, kind: input, shape index: {}]   ;;  %s4137_s5 = inlined_call_operand.vmem [shape: f32[128,128], index: 5, kind: input, shape index: {}]   ;;  %s4138_s4 = inlined_call_operand.vmem [shape: f32[1,128], index: 4, kind: input, shape index: {}]   ;;  %s4139_s7 = inlined_call_operand.vmem [shape: f32[2,256], index: 7, kind: output, shape index: {}]   ;;  %s4140_s6 = inlined_call_operand.vmem [shape: f32[1,128], index: 6, kind: input, shape index: {}]  }
   0x1   :  { %v29_v0 = vld [vmem:[%s4133_s1 + $0x8] sm:$0xff]  ;;  %v31_v2 = vld [vmem:[%s4133_s1 + $0x18] sm:$0xff]  ;;  %v28_v5 = vld [vmem:[%s4133_s1] sm:$0xff] }
   0x2   :  { %v33_v1 = vld [vmem:[%s4133_s1 + $0x28] sm:$0xff]  ;;  %v35_v4 = vld [vmem:[%s4133_s1 + $0x38] sm:$0xff]  ;;  %v32_v6 = vld [vmem:[%s4133_s1 + $0x20] sm:$0xff] }
   0x3   :  { %v1621_v3 = vpack.c.bf16 %v33_v1, %v29_v0  ;;  %v1877_v7 = vpack.c.bf16 %v35_v4, %v31_v2  ;;  %v1623_v8 = vpack.c.bf16 %v32_v6, %v28_v5  ;;  %v30_v9 = vld [vmem:[%s4133_s1 + $0x10] sm:$0xff]  ;;  %v37_v11 = vld [vmem:[%s4133_s1 + $0x48] sm:$0xff]  ;;  %v39_v14 = vld [vmem:[%s4133_s1 + $0x58] sm:$0xff] }
   0x4   :  { %v34_v10 = vld [vmem:[%s4133_s1 + $0x30] sm:$0xff]  ;;  %v41_v13 = vld [vmem:[%s4133_s1 + $0x68] sm:$0xff]  ;;  %v43_v15 = vld [vmem:[%s4133_s1 + $0x78] sm:$0xff] }
   0x5   :  { %1622 = vmatprep.subr.bf16.mxu0 %v1621_v3  ;;  %v1879_v12 = vpack.c.bf16 %v34_v10, %v30_v9  ;;  %1878 = vmatprep.subr.bf16.mxu1 %v1877_v7  ;;  %v1625_v16 = vpack.c.bf16 %v41_v13, %v37_v11  ;;  %v1881_v17 = vpack.c.bf16 %v43_v15, %v39_v14  ;;  %v36_v18 = vld [vmem:[%s4133_s1 + $0x40] sm:$0xff]  ;;  %v38_v20 = vld [vmem:[%s4133_s1 + $0x50] sm:$0xff]  ;;  %v45_v23 = vld [vmem:[%s4133_s1 + $0x88] sm:$0xff] }
   0x6   :  { %1624 = vmatpush1.bf16.msra.mxu0 %v1623_v8  ;;  %v40_v19 = vld [vmem:[%s4133_s1 + $0x60] sm:$0xff]  ;;  %v42_v22 = vld [vmem:[%s4133_s1 + $0x70] sm:$0xff]  ;;  %v49_v24 = vld [vmem:[%s4133_s1 + $0xa8] sm:$0xff] }
   0x7   :  { %1880 = vmatpush1.bf16.msra.mxu1 %v1879_v12  ;;  %v1627_v21 = vpack.c.bf16 %v40_v19, %v36_v18  ;;  %1626 = vmatprep.subr.bf16.mxu0 %v1625_v16  ;;  %v1883_v25 = vpack.c.bf16 %v42_v22, %v38_v20  ;;  %v1629_v26 = vpack.c.bf16 %v49_v24, %v45_v23  ;;  %v47_v27 = vld [vmem:[%s4133_s1 + $0x98] sm:$0xff]  ;;  %v44_v29 = vld [vmem:[%s4133_s1 + $0x80] sm:$0xff]  ;;  %v46_v32 = vld [vmem:[%s4133_s1 + $0x90] sm:$0xff] }
   0x8   :  { %1882 = vmatprep.subr.bf16.mxu1 %v1881_v17  ;;  %v51_v28 = vld [vmem:[%s4133_s1 + $0xb8] sm:$0xff]  ;;  %v48_v31 = vld [vmem:[%s4133_s1 + $0xa0] sm:$0xff]  ;;  %v50_v33 = vld [vmem:[%s4133_s1 + $0xb0] sm:$0xff] }
   0x9   :  { %v1885_v30 = vpack.c.bf16 %v51_v28, %v47_v27  ;;  %v1631_v34 = vpack.c.bf16 %v48_v31, %v44_v29  ;;  %v53_v35 = vld [vmem:[%s4133_s1 + $0xc8] sm:$0xff]  ;;  %v55_v37 = vld [vmem:[%s4133_s1 + $0xd8] sm:$0xff]  ;;  %v1887_v38 = vpack.c.bf16 %v50_v33, %v46_v32  ;;  %v52_v41 = vld [vmem:[%s4133_s1 + $0xc0] sm:$0xff] }
   0xa   :  { %1628 = vmatpush1.bf16.msra.mxu0 %v1627_v21  ;;  %v57_v36 = vld [vmem:[%s4133_s1 + $0xe8] sm:$0xff]  ;;  %v59_v40 = vld [vmem:[%s4133_s1 + $0xf8] sm:$0xff]  ;;  %v56_v42 = vld [vmem:[%s4133_s1 + $0xe0] sm:$0xff] }
   0xb   :  { %1884 = vmatpush1.bf16.msra.mxu1 %v1883_v25  ;;  %1630 = vmatprep.subr.bf16.mxu0 %v1629_v26  ;;  %v1633_v39 = vpack.c.bf16 %v57_v36, %v53_v35  ;;  %v1889_v43 = vpack.c.bf16 %v59_v40, %v55_v37  ;;  %v54_v44 = vld [vmem:[%s4133_s1 + $0xd0] sm:$0xff]  ;;  %v61_v46 = vld [vmem:[%s4133_s1 + $0x108] sm:$0xff]  ;;  %v63_v48 = vld [vmem:[%s4133_s1 + $0x118] sm:$0xff]  ;;  %v1635_v50 = vpack.c.bf16 %v56_v42, %v52_v41 }
   0xc   :  { %1886 = vmatprep.subr.bf16.mxu1 %v1885_v30  ;;  %v58_v45 = vld [vmem:[%s4133_s1 + $0xf0] sm:$0xff]  ;;  %v65_v47 = vld [vmem:[%s4133_s1 + $0x128] sm:$0xff]  ;;  %v67_v49 = vld [vmem:[%s4133_s1 + $0x138] sm:$0xff] }
   0xd   :  { %v1891_v51 = vpack.c.bf16 %v58_v45, %v54_v44  ;;  %v1637_v52 = vpack.c.bf16 %v65_v47, %v61_v46  ;;  %v60_v53 = vld [vmem:[%s4133_s1 + $0x100] sm:$0xff]  ;;  %v62_v55 = vld [vmem:[%s4133_s1 + $0x110] sm:$0xff]  ;;  %v1893_v56 = vpack.c.bf16 %v67_v49, %v63_v48  ;;  %v69_v58 = vld [vmem:[%s4133_s1 + $0x148] sm:$0xff]  ;;  %v542_v46 = vlaneseq }
   0xe   :  { %1632 = vmatpush1.bf16.msra.mxu0 %v1631_v34  ;;  %v64_v54 = vld [vmem:[%s4133_s1 + $0x120] sm:$0xff]  ;;  %v66_v57 = vld [vmem:[%s4133_s1 + $0x130] sm:$0xff]  ;;  %v73_v59 = vld [vmem:[%s4133_s1 + $0x168] sm:$0xff]  ;;  %v2245_v47 = vmov 1983009808  }
   0xf   :  { %1888 = vmatpush1.bf16.msra.mxu1 %v1887_v38  ;;  %1634 = vmatprep.subr.bf16.mxu0 %v1633_v39  ;;  %v71_v60 = vld [vmem:[%s4133_s1 + $0x158] sm:$0xff]  ;;  %v1639_v62 = vpack.c.bf16 %v64_v54, %v60_v53  ;;  %v1895_v63 = vpack.c.bf16 %v66_v57, %v62_v55  ;;  %v1641_v0 = vpack.c.bf16 %v73_v59, %v69_v58  ;;  %v68_v1 = vld [vmem:[%s4133_s1 + $0x140] sm:$0xff]  ;;  %v70_v3 = vld [vmem:[%s4133_s1 + $0x150] sm:$0xff]  ;;  %v566_v48 = vunpack.c.l.s4 %v2245_v47 }
  0x10   :  { %1890 = vmatprep.subr.bf16.mxu1 %v1889_v43  ;;  %v75_v61 = vld [vmem:[%s4133_s1 + $0x178] sm:$0xff]  ;;  %v72_v2 = vld [vmem:[%s4133_s1 + $0x160] sm:$0xff]  ;;  %v74_v5 = vld [vmem:[%s4133_s1 + $0x170] sm:$0xff] }
  0x11   :  { %v1897_v4 = vpack.c.bf16 %v75_v61, %v71_v60  ;;  %v77_v6 = vld [vmem:[%s4133_s1 + $0x188] sm:$0xff]  ;;  %v79_v8 = vld [vmem:[%s4133_s1 + $0x198] sm:$0xff]  ;;  %v1643_v10 = vpack.c.bf16 %v72_v2, %v68_v1  ;;  %v1899_v11 = vpack.c.bf16 %v74_v5, %v70_v3  ;;  %v76_v13 = vld [vmem:[%s4133_s1 + $0x180] sm:$0xff]  ;;  %v2541_v61 = vshrl.u32 %v542_v46, 7 }
  0x12   :  { %1636 = vmatpush1.bf16.msra.mxu0 %v1635_v50  ;;  %v81_v7 = vld [vmem:[%s4133_s1 + $0x1a8] sm:$0xff]  ;;  %v83_v9 = vld [vmem:[%s4133_s1 + $0x1b8] sm:$0xff]  ;;  %v80_v14 = vld [vmem:[%s4133_s1 + $0x1a0] sm:$0xff] }
  0x13   :  { %1892 = vmatpush1.bf16.msra.mxu1 %v1891_v51  ;;  %1638 = vmatprep.subr.bf16.mxu0 %v1637_v52  ;;  %v1645_v12 = vpack.c.bf16 %v81_v7, %v77_v6  ;;  %v78_v15 = vld [vmem:[%s4133_s1 + $0x190] sm:$0xff]  ;;  %v1901_v16 = vpack.c.bf16 %v83_v9, %v79_v8  ;;  %v85_v18 = vld [vmem:[%s4133_s1 + $0x1c8] sm:$0xff]  ;;  %v87_v20 = vld [vmem:[%s4133_s1 + $0x1d8] sm:$0xff]  ;;  %v1647_v22 = vpack.c.bf16 %v80_v14, %v76_v13 }
  0x14   :  { %1894 = vmatprep.subr.bf16.mxu1 %v1893_v56  ;;  %v82_v17 = vld [vmem:[%s4133_s1 + $0x1b0] sm:$0xff]  ;;  %v89_v19 = vld [vmem:[%s4133_s1 + $0x1e8] sm:$0xff]  ;;  %v91_v21 = vld [vmem:[%s4133_s1 + $0x1f8] sm:$0xff] }
  0x15   :  { %v1903_v23 = vpack.c.bf16 %v82_v17, %v78_v15  ;;  %v1649_v24 = vpack.c.bf16 %v89_v19, %v85_v18  ;;  %v84_v25 = vld [vmem:[%s4133_s1 + $0x1c0] sm:$0xff]  ;;  %v86_v27 = vld [vmem:[%s4133_s1 + $0x1d0] sm:$0xff]  ;;  %v1905_v28 = vpack.c.bf16 %v91_v21, %v87_v20  ;;  %v93_v30 = vld [vmem:[%s4133_s1 + $0x208] sm:$0xff] }
  0x16   :  { %1640 = vmatpush1.bf16.msra.mxu0 %v1639_v62  ;;  %v88_v26 = vld [vmem:[%s4133_s1 + $0x1e0] sm:$0xff]  ;;  %v90_v29 = vld [vmem:[%s4133_s1 + $0x1f0] sm:$0xff]  ;;  %v97_v31 = vld [vmem:[%s4133_s1 + $0x228] sm:$0xff]  ;;  %v567_v62 = vunpack.c.0.s8 %v566_v48 }
  0x17   :  { %1896 = vmatpush1.bf16.msra.mxu1 %v1895_v63  ;;  %1642 = vmatprep.subr.bf16.mxu0 %v1641_v0  ;;  %v95_v32 = vld [vmem:[%s4133_s1 + $0x218] sm:$0xff]  ;;  %v1651_v34 = vpack.c.bf16 %v88_v26, %v84_v25  ;;  %v1907_v35 = vpack.c.bf16 %v90_v29, %v86_v27  ;;  %v1653_v36 = vpack.c.bf16 %v97_v31, %v93_v30  ;;  %v92_v37 = vld [vmem:[%s4133_s1 + $0x200] sm:$0xff]  ;;  %v94_v39 = vld [vmem:[%s4133_s1 + $0x210] sm:$0xff] }
  0x18   :  { %1898 = vmatprep.subr.bf16.mxu1 %v1897_v4  ;;  %v99_v33 = vld [vmem:[%s4133_s1 + $0x238] sm:$0xff]  ;;  %v96_v38 = vld [vmem:[%s4133_s1 + $0x220] sm:$0xff]  ;;  %v98_v41 = vld [vmem:[%s4133_s1 + $0x230] sm:$0xff] }
  0x19   :  { %v1909_v40 = vpack.c.bf16 %v99_v33, %v95_v32  ;;  %v101_v42 = vld [vmem:[%s4133_s1 + $0x248] sm:$0xff]  ;;  %v103_v44 = vld [vmem:[%s4133_s1 + $0x258] sm:$0xff]  ;;  %v1655_v49 = vpack.c.bf16 %v96_v38, %v92_v37  ;;  %v1911_v50 = vpack.c.bf16 %v98_v41, %v94_v39  ;;  %v100_v52 = vld [vmem:[%s4133_s1 + $0x240] sm:$0xff] }
  0x1a   :  { %1644 = vmatpush1.bf16.msra.mxu0 %v1643_v10  ;;  %v105_v43 = vld [vmem:[%s4133_s1 + $0x268] sm:$0xff]  ;;  %v107_v45 = vld [vmem:[%s4133_s1 + $0x278] sm:$0xff]  ;;  %v104_v53 = vld [vmem:[%s4133_s1 + $0x260] sm:$0xff] }
  0x1b   :  { %1900 = vmatpush1.bf16.msra.mxu1 %v1899_v11  ;;  %1646 = vmatprep.subr.bf16.mxu0 %v1645_v12  ;;  %v1657_v51 = vpack.c.bf16 %v105_v43, %v101_v42  ;;  %v102_v54 = vld [vmem:[%s4133_s1 + $0x250] sm:$0xff]  ;;  %v1913_v55 = vpack.c.bf16 %v107_v45, %v103_v44  ;;  %v109_v57 = vld [vmem:[%s4133_s1 + $0x288] sm:$0xff]  ;;  %v111_v59 = vld [vmem:[%s4133_s1 + $0x298] sm:$0xff]  ;;  %v1659_v63 = vpack.c.bf16 %v104_v53, %v100_v52 }
  0x1c   :  { %1902 = vmatprep.subr.bf16.mxu1 %v1901_v16  ;;  %v106_v56 = vld [vmem:[%s4133_s1 + $0x270] sm:$0xff]  ;;  %v113_v58 = vld [vmem:[%s4133_s1 + $0x2a8] sm:$0xff]  ;;  %v115_v60 = vld [vmem:[%s4133_s1 + $0x2b8] sm:$0xff]  ;;  %v2568_v11 = vsub.s32 %v567_v62, %v2541_v61 }
  0x1d   :  { %v1915_v0 = vpack.c.bf16 %v106_v56, %v102_v54  ;;  %v1661_v1 = vpack.c.bf16 %v113_v58, %v109_v57  ;;  %v108_v2 = vld [vmem:[%s4133_s1 + $0x280] sm:$0xff]  ;;  %v110_v4 = vld [vmem:[%s4133_s1 + $0x290] sm:$0xff]  ;;  %v1917_v5 = vpack.c.bf16 %v115_v60, %v111_v59  ;;  %v117_v7 = vld [vmem:[%s4133_s1 + $0x2c8] sm:$0xff] }
  0x1e   :  { %1648 = vmatpush1.bf16.msra.mxu0 %v1647_v22  ;;  %v112_v3 = vld [vmem:[%s4133_s1 + $0x2a0] sm:$0xff]  ;;  %v114_v6 = vld [vmem:[%s4133_s1 + $0x2b0] sm:$0xff]  ;;  %v121_v8 = vld [vmem:[%s4133_s1 + $0x2e8] sm:$0xff] }
  0x1f   :  { %1904 = vmatpush1.bf16.msra.mxu1 %v1903_v23  ;;  %1650 = vmatprep.subr.bf16.mxu0 %v1649_v24  ;;  %v119_v9 = vld [vmem:[%s4133_s1 + $0x2d8] sm:$0xff]  ;;  %v1663_v12 = vpack.c.bf16 %v112_v3, %v108_v2  ;;  %v116_v13 = vld [vmem:[%s4133_s1 + $0x2c0] sm:$0xff]  ;;  %v1919_v14 = vpack.c.bf16 %v114_v6, %v110_v4  ;;  %v1665_v15 = vpack.c.bf16 %v121_v8, %v117_v7  ;;  %v118_v17 = vld [vmem:[%s4133_s1 + $0x2d0] sm:$0xff] }
  0x20   :  { %1906 = vmatprep.subr.bf16.mxu1 %v1905_v28  ;;  %v123_v10 = vld [vmem:[%s4133_s1 + $0x2f8] sm:$0xff]  ;;  %v120_v16 = vld [vmem:[%s4133_s1 + $0x2e0] sm:$0xff]  ;;  %v122_v18 = vld [vmem:[%s4133_s1 + $0x2f0] sm:$0xff] }
  0x21   :  { %v1921_v19 = vpack.c.bf16 %v123_v10, %v119_v9  ;;  %v125_v20 = vld [vmem:[%s4133_s1 + $0x308] sm:$0xff]  ;;  %v2591_v22 = vld [vmem:[%s4134_s0] sm:$0xff]  ;;  %v127_v23 = vld [vmem:[%s4133_s1 + $0x318] sm:$0xff]  ;;  %v1667_v26 = vpack.c.bf16 %v120_v16, %v116_v13  ;;  %v1923_v27 = vpack.c.bf16 %v122_v18, %v118_v17 }
  0x22   :  { %1652 = vmatpush1.bf16.msra.mxu0 %v1651_v34  ;;  %v129_v21 = vld [vmem:[%s4133_s1 + $0x328] sm:$0xff]  ;;  %v131_v24 = vld [vmem:[%s4133_s1 + $0x338] sm:$0xff]  ;;  %v2601_v25 = vrot.slane %v2591_v22, %v2568_v11  ;;  %v124_v29 = vld [vmem:[%s4133_s1 + $0x300] sm:$0xff]  ;;  %v564_v8 = vcombine.high %v2591_v22, %v2591_v22 }
  0x23   :  { %1908 = vmatpush1.bf16.msra.mxu1 %v1907_v35  ;;  %1654 = vmatprep.subr.bf16.mxu0 %v1653_v36  ;;  %v1669_v28 = vpack.c.bf16 %v129_v21, %v125_v20  ;;  %v128_v30 = vld [vmem:[%s4133_s1 + $0x320] sm:$0xff]  ;;  %v126_v31 = vld [vmem:[%s4133_s1 + $0x310] sm:$0xff]  ;;  %v1925_v33 = vpack.c.bf16 %v131_v24, %v127_v23  ;;  %v133_v35 = vld [vmem:[%s4133_s1 + $0x348] sm:$0xff] }
  0x24   :  { %1910 = vmatprep.subr.bf16.mxu1 %v1909_v40  ;;  %v579_v32 = vcombine.high %v2601_v25, %v2601_v25  ;;  %v130_v34 = vld [vmem:[%s4133_s1 + $0x330] sm:$0xff]  ;;  %v137_v36 = vld [vmem:[%s4133_s1 + $0x368] sm:$0xff]  ;;  %v135_v37 = vld [vmem:[%s4133_s1 + $0x358] sm:$0xff]  ;;  %v1671_v39 = vpack.c.bf16 %v128_v30, %v124_v29  ;;  %v2722_v24 = vrot.slane %v564_v8, %v2568_v11 }
  0x25   :  { %v139_v38 = vld [vmem:[%s4133_s1 + $0x378] sm:$0xff]  ;;  %v1927_v40 = vpack.c.bf16 %v130_v34, %v126_v31  ;;  %v1673_v41 = vpack.c.bf16 %v137_v36, %v133_v35  ;;  %v132_v42 = vld [vmem:[%s4133_s1 + $0x340] sm:$0xff]  ;;  %v134_v44 = vld [vmem:[%s4133_s1 + $0x350] sm:$0xff] }
  0x26   :  { %1656 = vmatpush1.bf16.msra.mxu0 %v1655_v49  ;;  %670 = vmatprep.mubr.f32.mxu0 %v579_v32  ;;  %v136_v43 = vld [vmem:[%s4133_s1 + $0x360] sm:$0xff]  ;;  %v1929_v45 = vpack.c.bf16 %v139_v38, %v135_v37  ;;  %v138_v46 = vld [vmem:[%s4133_s1 + $0x370] sm:$0xff]  ;;  %v141_v47 = vld [vmem:[%s4133_s1 + $0x388] sm:$0xff]  ;;  %v580_v38 = vcombine.high %v2722_v24, %v2722_v24 }
  0x27   :  { %1912 = vmatpush1.bf16.msra.mxu1 %v1911_v50  ;;  %1658 = vmatprep.subr.bf16.mxu0 %v1657_v51  ;;  %v145_v48 = vld [vmem:[%s4133_s1 + $0x3a8] sm:$0xff]  ;;  %v143_v49 = vld [vmem:[%s4133_s1 + $0x398] sm:$0xff]  ;;  %v1675_v51 = vpack.c.bf16 %v136_v43, %v132_v42  ;;  %v1931_v52 = vpack.c.bf16 %v138_v46, %v134_v44  ;;  %v140_v54 = vld [vmem:[%s4133_s1 + $0x380] sm:$0xff] }
  0x28   :  { %1914 = vmatprep.subr.bf16.mxu1 %v1913_v55  ;;  %954 = vmatprep.mubr.f32.mxu1 %v579_v32  ;;  %v147_v50 = vld [vmem:[%s4133_s1 + $0x3b8] sm:$0xff]  ;;  %v1677_v53 = vpack.c.bf16 %v145_v48, %v141_v47  ;;  %v144_v55 = vld [vmem:[%s4133_s1 + $0x3a0] sm:$0xff]  ;;  %v142_v56 = vld [vmem:[%s4133_s1 + $0x390] sm:$0xff] }
  0x29   :  { %v1933_v57 = vpack.c.bf16 %v147_v50, %v143_v49  ;;  %v146_v58 = vld [vmem:[%s4133_s1 + $0x3b0] sm:$0xff]  ;;  %v149_v59 = vld [vmem:[%s4133_s1 + $0x3c8] sm:$0xff]  ;;  %v151_v62 = vld [vmem:[%s4133_s1 + $0x3d8] sm:$0xff] }
  0x2a   :  { %1660 = vmatpush1.bf16.msra.mxu0 %v1659_v63  ;;  %v153_v60 = vld [vmem:[%s4133_s1 + $0x3e8] sm:$0xff]  ;;  %v155_v63 = vld [vmem:[%s4133_s1 + $0x3f8] sm:$0xff]  ;;  %v148_v3 = vld [vmem:[%s4133_s1 + $0x3c0] sm:$0xff] }
  0x2b   :  { %1916 = vmatpush1.bf16.msra.mxu1 %v1915_v0  ;;  %1662 = vmatprep.subr.bf16.mxu0 %v1661_v1  ;;  %v1679_v0 = vpack.c.bf16 %v144_v55, %v140_v54  ;;  %v1935_v1 = vpack.c.bf16 %v146_v58, %v142_v56  ;;  %v1681_v2 = vpack.c.bf16 %v153_v60, %v149_v59  ;;  %v152_v4 = vld [vmem:[%s4133_s1 + $0x3e0] sm:$0xff]  ;;  %v154_v7 = vld [vmem:[%s4133_s1 + $0x3f0] sm:$0xff]  ;;  %v157_v9 = vld [vmem:[%s4133_s1 + $0x408] sm:$0xff] }
  0x2c   :  { %1918 = vmatprep.subr.bf16.mxu1 %v1917_v5  ;;  %v150_v5 = vld [vmem:[%s4133_s1 + $0x3d0] sm:$0xff]  ;;  %v1937_v6 = vpack.c.bf16 %v155_v63, %v151_v62  ;;  %v161_v10 = vld [vmem:[%s4133_s1 + $0x428] sm:$0xff]  ;;  %v163_v13 = vld [vmem:[%s4133_s1 + $0x438] sm:$0xff] }
  0x2d   :  { %v1685_v16 = vpack.c.bf16 %v161_v10, %v157_v9  ;;  %v156_v17 = vld [vmem:[%s4133_s1 + $0x400] sm:$0xff]  ;;  %v162_v21 = vld [vmem:[%s4133_s1 + $0x430] sm:$0xff]  ;;  %v165_v22 = vld [vmem:[%s4133_s1 + $0x448] sm:$0xff] }
  0x2e   :  { %1664 = vmatpush1.bf16.msra.mxu0 %v1663_v12  ;;  %v159_v12 = vld [vmem:[%s4133_s1 + $0x418] sm:$0xff]  ;;  %v160_v18 = vld [vmem:[%s4133_s1 + $0x420] sm:$0xff]  ;;  %v169_v23 = vld [vmem:[%s4133_s1 + $0x468] sm:$0xff] }
  0x2f   :  { %1920 = vmatpush1.bf16.msra.mxu1 %v1919_v14  ;;  %1666 = vmatprep.subr.bf16.mxu0 %v1665_v15  ;;  %v1683_v14 = vpack.c.bf16 %v152_v4, %v148_v3  ;;  %v1939_v15 = vpack.c.bf16 %v154_v7, %v150_v5  ;;  %v1941_v20 = vpack.c.bf16 %v163_v13, %v159_v12  ;;  %v164_v31 = vld [vmem:[%s4133_s1 + $0x440] sm:$0xff]  ;;  %v170_v35 = vld [vmem:[%s4133_s1 + $0x470] sm:$0xff]  ;;  %v173_v36 = vld [vmem:[%s4133_s1 + $0x488] sm:$0xff] }
  0x30   :  { %1922 = vmatprep.subr.bf16.mxu1 %v1921_v19  ;;  %v158_v19 = vld [vmem:[%s4133_s1 + $0x410] sm:$0xff]  ;;  %v1689_v30 = vpack.c.bf16 %v169_v23, %v165_v22  ;;  %v168_v32 = vld [vmem:[%s4133_s1 + $0x460] sm:$0xff]  ;;  %v177_v37 = vld [vmem:[%s4133_s1 + $0x4a8] sm:$0xff] }
  0x31   :  { %v1943_v29 = vpack.c.bf16 %v162_v21, %v158_v19  ;;  %v1693_v43 = vpack.c.bf16 %v177_v37, %v173_v36  ;;  %v172_v44 = vld [vmem:[%s4133_s1 + $0x480] sm:$0xff]  ;;  %v174_v46 = vld [vmem:[%s4133_s1 + $0x490] sm:$0xff]  ;;  %v181_v48 = vld [vmem:[%s4133_s1 + $0x4c8] sm:$0xff] }
  0x32   :  { %1668 = vmatpush1.bf16.msra.mxu0 %v1667_v26  ;;  %v167_v26 = vld [vmem:[%s4133_s1 + $0x458] sm:$0xff]  ;;  %v185_v49 = vld [vmem:[%s4133_s1 + $0x4e8] sm:$0xff]  ;;  %v180_v55 = vld [vmem:[%s4133_s1 + $0x4c0] sm:$0xff] }
  0x33   :  { %1924 = vmatpush1.bf16.msra.mxu1 %v1923_v27  ;;  %1670 = vmatprep.subr.bf16.mxu0 %v1669_v28  ;;  %v171_v27 = vld [vmem:[%s4133_s1 + $0x478] sm:$0xff]  ;;  %v1687_v28 = vpack.c.bf16 %v160_v18, %v156_v17  ;;  %v1697_v54 = vpack.c.bf16 %v185_v49, %v181_v48  ;;  %v184_v56 = vld [vmem:[%s4133_s1 + $0x4e0] sm:$0xff]  ;;  %v186_v59 = vld [vmem:[%s4133_s1 + $0x4f0] sm:$0xff] }
  0x34   :  { %1926 = vmatprep.subr.bf16.mxu1 %v1925_v33  ;;  %v166_v33 = vld [vmem:[%s4133_s1 + $0x450] sm:$0xff]  ;;  %v1945_v34 = vpack.c.bf16 %v171_v27, %v167_v26  ;;  %v183_v50 = vld [vmem:[%s4133_s1 + $0x4d8] sm:$0xff]  ;;  %v189_v60 = vld [vmem:[%s4133_s1 + $0x508] sm:$0xff] }
  0x35   :  { %v1947_v42 = vpack.c.bf16 %v170_v35, %v166_v33  ;;  %v193_v62 = vld [vmem:[%s4133_s1 + $0x528] sm:$0xff]  ;;  %v191_v63 = vld [vmem:[%s4133_s1 + $0x518] sm:$0xff]  ;;  %v188_v4 = vld [vmem:[%s4133_s1 + $0x500] sm:$0xff] }
  0x36   :  { %1672 = vmatpush1.bf16.msra.mxu0 %v1671_v39  ;;  %v175_v39 = vld [vmem:[%s4133_s1 + $0x498] sm:$0xff]  ;;  %v1701_v3 = vpack.c.bf16 %v193_v62, %v189_v60  ;;  %v192_v5 = vld [vmem:[%s4133_s1 + $0x520] sm:$0xff]  ;;  %v194_v8 = vld [vmem:[%s4133_s1 + $0x530] sm:$0xff] }
  0x37   :  { %1928 = vmatpush1.bf16.msra.mxu1 %v1927_v40  ;;  %1674 = vmatprep.subr.bf16.mxu0 %v1673_v41  ;;  %v179_v40 = vld [vmem:[%s4133_s1 + $0x4b8] sm:$0xff]  ;;  %v1691_v41 = vpack.c.bf16 %v168_v32, %v164_v31  ;;  %v197_v9 = vld [vmem:[%s4133_s1 + $0x548] sm:$0xff]  ;;  %v196_v17 = vld [vmem:[%s4133_s1 + $0x540] sm:$0xff] }
  0x38   :  { %1930 = vmatprep.subr.bf16.mxu1 %v1929_v45  ;;  %v176_v45 = vld [vmem:[%s4133_s1 + $0x4a0] sm:$0xff]  ;;  %v1949_v47 = vpack.c.bf16 %v179_v40, %v175_v39  ;;  %v201_v10 = vld [vmem:[%s4133_s1 + $0x568] sm:$0xff]  ;;  %v199_v12 = vld [vmem:[%s4133_s1 + $0x558] sm:$0xff] }
  0x39   :  { %v203_v13 = vld [vmem:[%s4133_s1 + $0x578] sm:$0xff]  ;;  %v200_v18 = vld [vmem:[%s4133_s1 + $0x560] sm:$0xff]  ;;  %v198_v19 = vld [vmem:[%s4133_s1 + $0x550] sm:$0xff] }
  0x3a   :  { %1676 = vmatpush1.bf16.msra.mxu0 %v1675_v51  ;;  %v187_v51 = vld [vmem:[%s4133_s1 + $0x4f8] sm:$0xff]  ;;  %v202_v21 = vld [vmem:[%s4133_s1 + $0x570] sm:$0xff]  ;;  %v205_v22 = vld [vmem:[%s4133_s1 + $0x588] sm:$0xff] }
  0x3b   :  { %1932 = vmatpush1.bf16.msra.mxu1 %v1931_v52  ;;  %1678 = vmatprep.subr.bf16.mxu0 %v1677_v53  ;;  %v1695_v52 = vpack.c.bf16 %v176_v45, %v172_v44  ;;  %v1953_v58 = vpack.c.bf16 %v187_v51, %v183_v50  ;;  %v209_v23 = vld [vmem:[%s4133_s1 + $0x5a8] sm:$0xff]  ;;  %v207_v26 = vld [vmem:[%s4133_s1 + $0x598] sm:$0xff]  ;;  %v204_v31 = vld [vmem:[%s4133_s1 + $0x580] sm:$0xff] }
  0x3c   :  { %1934 = vmatprep.subr.bf16.mxu1 %v1933_v57  ;;  %v182_v57 = vld [vmem:[%s4133_s1 + $0x4d0] sm:$0xff]  ;;  %v211_v27 = vld [vmem:[%s4133_s1 + $0x5b8] sm:$0xff]  ;;  %v208_v32 = vld [vmem:[%s4133_s1 + $0x5a0] sm:$0xff] }
  0x3d   :  { %v206_v33 = vld [vmem:[%s4133_s1 + $0x590] sm:$0xff]  ;;  %v213_v36 = vld [vmem:[%s4133_s1 + $0x5c8] sm:$0xff]  ;;  %v219_v39 = vld [vmem:[%s4133_s1 + $0x5f8] sm:$0xff]  ;;  %v1711_v40 = vpack.c.bf16 %v208_v32, %v204_v31 }
  0x3e   :  { %1680 = vmatpush1.bf16.msra.mxu0 %v1679_v0  ;;  %v195_v0 = vld [vmem:[%s4133_s1 + $0x538] sm:$0xff]  ;;  %v210_v35 = vld [vmem:[%s4133_s1 + $0x5b0] sm:$0xff]  ;;  %v217_v37 = vld [vmem:[%s4133_s1 + $0x5e8] sm:$0xff] }
  0x3f   :  { %1936 = vmatpush1.bf16.msra.mxu1 %v1935_v1  ;;  %1682 = vmatprep.subr.bf16.mxu0 %v1681_v2  ;;  %v1699_v1 = vpack.c.bf16 %v184_v56, %v180_v55  ;;  %v1955_v2 = vpack.c.bf16 %v186_v59, %v182_v57  ;;  %v1957_v7 = vpack.c.bf16 %v195_v0, %v191_v63  ;;  %v216_v44 = vld [vmem:[%s4133_s1 + $0x5e0] sm:$0xff]  ;;  %v214_v45 = vld [vmem:[%s4133_s1 + $0x5d0] sm:$0xff]  ;;  %v225_v48 = vld [vmem:[%s4133_s1 + $0x628] sm:$0xff] }
  0x40   :  { %1938 = vmatprep.subr.bf16.mxu1 %v1937_v6  ;;  %v190_v6 = vld [vmem:[%s4133_s1 + $0x510] sm:$0xff]  ;;  %v223_v49 = vld [vmem:[%s4133_s1 + $0x618] sm:$0xff]  ;;  %v224_v55 = vld [vmem:[%s4133_s1 + $0x620] sm:$0xff] }
  0x41   :  { %v227_v50 = vld [vmem:[%s4133_s1 + $0x638] sm:$0xff]  ;;  %v222_v56 = vld [vmem:[%s4133_s1 + $0x610] sm:$0xff]  ;;  %v229_v59 = vld [vmem:[%s4133_s1 + $0x648] sm:$0xff] }
  0x42   :  { %1684 = vmatpush1.bf16.msra.mxu0 %v1683_v14  ;;  %v1703_v14 = vpack.c.bf16 %v192_v5, %v188_v4  ;;  %v1973_v57 = vpack.c.bf16 %v227_v50, %v223_v49  ;;  %v233_v60 = vld [vmem:[%s4133_s1 + $0x668] sm:$0xff]  ;;  %v231_v62 = vld [vmem:[%s4133_s1 + $0x658] sm:$0xff]  ;;  %v232_v4 = vld [vmem:[%s4133_s1 + $0x660] sm:$0xff] }
  0x43   :  { %1940 = vmatpush1.bf16.msra.mxu1 %v1939_v15  ;;  %1686 = vmatprep.subr.bf16.mxu0 %v1685_v16  ;;  %v1959_v15 = vpack.c.bf16 %v194_v8, %v190_v6  ;;  %v1705_v16 = vpack.c.bf16 %v201_v10, %v197_v9  ;;  %v235_v63 = vld [vmem:[%s4133_s1 + $0x678] sm:$0xff]  ;;  %v230_v5 = vld [vmem:[%s4133_s1 + $0x650] sm:$0xff]  ;;  %v237_v8 = vld [vmem:[%s4133_s1 + $0x688] sm:$0xff] }
  0x44   :  { %1942 = vmatprep.subr.bf16.mxu1 %v1941_v20  ;;  %v1961_v20 = vpack.c.bf16 %v203_v13, %v199_v12  ;;  %v1977_v6 = vpack.c.bf16 %v235_v63, %v231_v62  ;;  %v241_v9 = vld [vmem:[%s4133_s1 + $0x6a8] sm:$0xff]  ;;  %v239_v10 = vld [vmem:[%s4133_s1 + $0x698] sm:$0xff]  ;;  %v248_v31 = vld [vmem:[%s4133_s1 + $0x6e0] sm:$0xff] }
  0x45   :  { %671 = vmatmul.mubr.f32.vlgmr.msra.gmra.mrb[0].mxu0 %v2601_v25  ;;  %v243_v12 = vld [vmem:[%s4133_s1 + $0x6b8] sm:$0xff]  ;;  %v246_v32 = vld [vmem:[%s4133_s1 + $0x6d0] sm:$0xff] }
  0x46   :  { %1688 = vmatpush1.bf16.msra.mxu0 %v1687_v28  ;;  %955 = vmatmul.mubr.f32.vlgmr.msra.gmra.mrb[0].mxu1 %v2601_v25  ;;  %v178_v25 = vld [vmem:[%s4133_s1 + $0x4b0] sm:$0xff]  ;;  %v1707_v28 = vpack.c.bf16 %v200_v18, %v196_v17  ;;  %v240_v17 = vld [vmem:[%s4133_s1 + $0x6a0] sm:$0xff]  ;;  %v267_v49 = vld [vmem:[%s4133_s1 + $0x778] sm:$0xff] }
  0x47   :  { %1944 = vmatpush1.bf16.msra.mxu1 %v1943_v29  ;;  %1690 = vmatprep.subr.bf16.mxu0 %v1689_v30  ;;  %v1951_v53 = vpack.c.bf16 %v178_v25, %v174_v46  ;;  %v1963_v29 = vpack.c.bf16 %v202_v21, %v198_v19  ;;  %v1709_v30 = vpack.c.bf16 %v209_v23, %v205_v22  ;;  %v221_v25 = vld [vmem:[%s4133_s1 + $0x608] sm:$0xff]  ;;  %v238_v18 = vld [vmem:[%s4133_s1 + $0x690] sm:$0xff]  ;;  %v247_v23 = vld [vmem:[%s4133_s1 + $0x6d8] sm:$0xff] }
  0x48   :  { %1946 = vmatprep.subr.bf16.mxu1 %v1945_v34  ;;  %741 = vmatprep.mubr.f32.mxu0 %v580_v38  ;;  %v1965_v34 = vpack.c.bf16 %v211_v27, %v207_v26  ;;  %v1981_v19 = vpack.c.bf16 %v243_v12, %v239_v10  ;;  %v245_v21 = vld [vmem:[%s4133_s1 + $0x6c8] sm:$0xff]  ;;  %v251_v26 = vld [vmem:[%s4133_s1 + $0x6f8] sm:$0xff] }
  0x49   :  { %1025 = vmatprep.mubr.f32.mxu1 %v580_v38  ;;  %v215_v38 = vld [vmem:[%s4133_s1 + $0x5d8] sm:$0xff]  ;;  %v249_v22 = vld [vmem:[%s4133_s1 + $0x6e8] sm:$0xff] }
  0x4a   :  { %1692 = vmatpush1.bf16.msra.mxu0 %v1691_v41  ;;  %v1967_v41 = vpack.c.bf16 %v210_v35, %v206_v33  ;;  %v1969_v46 = vpack.c.bf16 %v219_v39, %v215_v38  ;;  %v1985_v33 = vpack.c.bf16 %v251_v26, %v247_v23  ;;  %v253_v35 = vld [vmem:[%s4133_s1 + $0x708] sm:$0xff]  ;;  %v259_v38 = vld [vmem:[%s4133_s1 + $0x738] sm:$0xff] }
  0x4b   :  { %1948 = vmatpush1.bf16.msra.mxu1 %v1947_v42  ;;  %1694 = vmatprep.subr.bf16.mxu0 %v1693_v43  ;;  %v1713_v42 = vpack.c.bf16 %v217_v37, %v213_v36  ;;  %v212_v43 = vld [vmem:[%s4133_s1 + $0x5c0] sm:$0xff]  ;;  %v257_v36 = vld [vmem:[%s4133_s1 + $0x728] sm:$0xff]  ;;  %v255_v37 = vld [vmem:[%s4133_s1 + $0x718] sm:$0xff] }
  0x4c   :  { %1950 = vmatprep.subr.bf16.mxu1 %v1949_v47  ;;  %v218_v47 = vld [vmem:[%s4133_s1 + $0x5f0] sm:$0xff]  ;;  %v1715_v51 = vpack.c.bf16 %v216_v44, %v212_v43  ;;  %v256_v43 = vld [vmem:[%s4133_s1 + $0x720] sm:$0xff]  ;;  %v275_v62 = vld [vmem:[%s4133_s1 + $0x7b8] sm:$0xff] }
  0x4d   :  { %v254_v44 = vld [vmem:[%s4133_s1 + $0x710] sm:$0xff]  ;;  %v283_v10 = vld [vmem:[%s4133_s1 + $0x7f8] sm:$0xff] }
  0x4e   :  { %1696 = vmatpush1.bf16.msra.mxu0 %v1695_v52  ;;  %v1971_v52 = vpack.c.bf16 %v218_v47, %v214_v45  ;;  %v1989_v45 = vpack.c.bf16 %v259_v38, %v255_v37  ;;  %v261_v47 = vld [vmem:[%s4133_s1 + $0x748] sm:$0xff]  ;;  %v287_v23 = vld [vmem:[%s4133_s1 + $0x818] sm:$0xff] }
  0x4f   :  { %1952 = vmatpush1.bf16.msra.mxu1 %v1951_v53  ;;  %1698 = vmatprep.subr.bf16.mxu0 %v1697_v54  ;;  %v1717_v53 = vpack.c.bf16 %v225_v48, %v221_v25  ;;  %v220_v54 = vld [vmem:[%s4133_s1 + $0x600] sm:$0xff]  ;;  %v265_v25 = vld [vmem:[%s4133_s1 + $0x768] sm:$0xff]  ;;  %v263_v48 = vld [vmem:[%s4133_s1 + $0x758] sm:$0xff] }
  0x50   :  { %1954 = vmatprep.subr.bf16.mxu1 %v1953_v58  ;;  %v226_v58 = vld [vmem:[%s4133_s1 + $0x630] sm:$0xff]  ;;  %v1719_v0 = vpack.c.bf16 %v224_v55, %v220_v54  ;;  %v264_v54 = vld [vmem:[%s4133_s1 + $0x760] sm:$0xff]  ;;  %v291_v26 = vld [vmem:[%s4133_s1 + $0x838] sm:$0xff] }
  0x51   :  { %v262_v55 = vld [vmem:[%s4133_s1 + $0x750] sm:$0xff]  ;;  %v295_v38 = vld [vmem:[%s4133_s1 + $0x858] sm:$0xff] }
  0x52   :  { %1700 = vmatpush1.bf16.msra.mxu0 %v1699_v1  ;;  %v1975_v1 = vpack.c.bf16 %v226_v58, %v222_v56  ;;  %v1993_v56 = vpack.c.bf16 %v267_v49, %v263_v48  ;;  %v269_v58 = vld [vmem:[%s4133_s1 + $0x788] sm:$0xff] }
  0x53   :  { %1956 = vmatpush1.bf16.msra.mxu1 %v1955_v2  ;;  %1702 = vmatprep.subr.bf16.mxu0 %v1701_v3  ;;  %v1721_v2 = vpack.c.bf16 %v233_v60, %v229_v59  ;;  %v228_v3 = vld [vmem:[%s4133_s1 + $0x640] sm:$0xff]  ;;  %v273_v59 = vld [vmem:[%s4133_s1 + $0x7a8] sm:$0xff]  ;;  %v271_v60 = vld [vmem:[%s4133_s1 + $0x798] sm:$0xff] }
  0x54   :  { %1958 = vmatprep.subr.bf16.mxu1 %v1957_v7  ;;  %v234_v7 = vld [vmem:[%s4133_s1 + $0x670] sm:$0xff]  ;;  %v1723_v13 = vpack.c.bf16 %v232_v4, %v228_v3  ;;  %v272_v3 = vld [vmem:[%s4133_s1 + $0x7a0] sm:$0xff]  ;;  %v305_v48 = vld [vmem:[%s4133_s1 + $0x8a8] sm:$0xff] }
  0x55   :  { %v270_v4 = vld [vmem:[%s4133_s1 + $0x790] sm:$0xff] }
  0x56   :  { %1704 = vmatpush1.bf16.msra.mxu0 %v1703_v14  ;;  %v1979_v14 = vpack.c.bf16 %v234_v7, %v230_v5  ;;  %v1997_v5 = vpack.c.bf16 %v275_v62, %v271_v60  ;;  %v277_v7 = vld [vmem:[%s4133_s1 + $0x7c8] sm:$0xff]  ;;  %v311_v62 = vld [vmem:[%s4133_s1 + $0x8d8] sm:$0xff] }
  0x57   :  { %1960 = vmatpush1.bf16.msra.mxu1 %v1959_v15  ;;  %1706 = vmatprep.subr.bf16.mxu0 %v1705_v16  ;;  %v1725_v15 = vpack.c.bf16 %v241_v9, %v237_v8  ;;  %v236_v16 = vld [vmem:[%s4133_s1 + $0x680] sm:$0xff]  ;;  %v281_v8 = vld [vmem:[%s4133_s1 + $0x7e8] sm:$0xff]  ;;  %v279_v9 = vld [vmem:[%s4133_s1 + $0x7d8] sm:$0xff] }
  0x58   :  { %1962 = vmatprep.subr.bf16.mxu1 %v1961_v20  ;;  %v242_v20 = vld [vmem:[%s4133_s1 + $0x6b0] sm:$0xff]  ;;  %v1727_v27 = vpack.c.bf16 %v240_v17, %v236_v16  ;;  %v280_v16 = vld [vmem:[%s4133_s1 + $0x7e0] sm:$0xff]  ;;  %v313_v60 = vld [vmem:[%s4133_s1 + $0x8e8] sm:$0xff] }
  0x59   :  { %v278_v17 = vld [vmem:[%s4133_s1 + $0x7d0] sm:$0xff] }
  0x5a   :  { %1708 = vmatpush1.bf16.msra.mxu0 %v1707_v28  ;;  %v1983_v28 = vpack.c.bf16 %v242_v20, %v238_v18  ;;  %v2001_v18 = vpack.c.bf16 %v283_v10, %v279_v9  ;;  %v285_v20 = vld [vmem:[%s4133_s1 + $0x808] sm:$0xff]  ;;  %v319_v10 = vld [vmem:[%s4133_s1 + $0x918] sm:$0xff] }
  0x5b   :  { %1964 = vmatpush1.bf16.msra.mxu1 %v1963_v29  ;;  %1710 = vmatprep.subr.bf16.mxu0 %v1709_v30  ;;  %v1729_v29 = vpack.c.bf16 %v249_v22, %v245_v21  ;;  %v244_v30 = vld [vmem:[%s4133_s1 + $0x6c0] sm:$0xff]  ;;  %v289_v21 = vld [vmem:[%s4133_s1 + $0x828] sm:$0xff] }
  0x5c   :  { %1966 = vmatprep.subr.bf16.mxu1 %v1965_v34  ;;  %v250_v34 = vld [vmem:[%s4133_s1 + $0x6f0] sm:$0xff]  ;;  %v1731_v39 = vpack.c.bf16 %v248_v31, %v244_v30  ;;  %v3091_v22 = vld [vmem:[%s4134_s0 + $0x8] sm:$0xff]  ;;  %v284_v30 = vld [vmem:[%s4133_s1 + $0x800] sm:$0xff] }
  0x5d   :  { %v288_v31 = vld [vmem:[%s4133_s1 + $0x820] sm:$0xff]  ;;  %v3119_v37 = vrot.slane %v3091_v22, %v2568_v11  ;;  %v321_v9 = vld [vmem:[%s4133_s1 + $0x928] sm:$0xff] }
  0x5e   :  { %1712 = vmatpush1.bf16.msra.mxu0 %v1711_v40  ;;  %v1987_v40 = vpack.c.bf16 %v250_v34, %v246_v32  ;;  %v286_v32 = vld [vmem:[%s4133_s1 + $0x810] sm:$0xff] }
  0x5f   :  { %1968 = vmatpush1.bf16.msra.mxu1 %v1967_v41  ;;  %1714 = vmatprep.subr.bf16.mxu0 %v1713_v42  ;;  %v1733_v41 = vpack.c.bf16 %v257_v36, %v253_v35  ;;  %v252_v42 = vld [vmem:[%s4133_s1 + $0x700] sm:$0xff]  ;;  %v290_v34 = vld [vmem:[%s4133_s1 + $0x830] sm:$0xff]  ;;  %v293_v35 = vld [vmem:[%s4133_s1 + $0x848] sm:$0xff]  ;;  %v596_v49 = vcombine.high %v3119_v37, %v3119_v37 }
  0x60   :  { %1970 = vmatprep.subr.bf16.mxu1 %v1969_v46  ;;  %v258_v46 = vld [vmem:[%s4133_s1 + $0x730] sm:$0xff]  ;;  %v1735_v50 = vpack.c.bf16 %v256_v43, %v252_v42  ;;  %v297_v36 = vld [vmem:[%s4133_s1 + $0x868] sm:$0xff]  ;;  %v292_v43 = vld [vmem:[%s4133_s1 + $0x840] sm:$0xff] }
  0x61   :  { %v1753_v42 = vpack.c.bf16 %v297_v36, %v293_v35  ;;  %v330_v35 = vld [vmem:[%s4133_s1 + $0x970] sm:$0xff]  ;;  %v333_v36 = vld [vmem:[%s4133_s1 + $0x988] sm:$0xff] }
  0x62   :  { %1716 = vmatpush1.bf16.msra.mxu0 %v1715_v51  ;;  %v1991_v51 = vpack.c.bf16 %v258_v46, %v254_v44  ;;  %v296_v44 = vld [vmem:[%s4133_s1 + $0x860] sm:$0xff] }
  0x63   :  { %1972 = vmatpush1.bf16.msra.mxu1 %v1971_v52  ;;  %1718 = vmatprep.subr.bf16.mxu0 %v1717_v53  ;;  %v1737_v52 = vpack.c.bf16 %v265_v25, %v261_v47  ;;  %v260_v53 = vld [vmem:[%s4133_s1 + $0x740] sm:$0xff]  ;;  %v298_v47 = vld [vmem:[%s4133_s1 + $0x870] sm:$0xff]  ;;  %v301_v25 = vld [vmem:[%s4133_s1 + $0x888] sm:$0xff] }
  0x64   :  { %1974 = vmatprep.subr.bf16.mxu1 %v1973_v57  ;;  %v266_v57 = vld [vmem:[%s4133_s1 + $0x770] sm:$0xff]  ;;  %v1739_v63 = vpack.c.bf16 %v264_v54, %v260_v53  ;;  %v1757_v54 = vpack.c.bf16 %v305_v48, %v301_v25  ;;  %v341_v48 = vld [vmem:[%s4133_s1 + $0x9c8] sm:$0xff] }
  0x65   :  { %v338_v25 = vld [vmem:[%s4133_s1 + $0x9b0] sm:$0xff] }
  0x66   :  { %1720 = vmatpush1.bf16.msra.mxu0 %v1719_v0  ;;  %v1995_v0 = vpack.c.bf16 %v266_v57, %v262_v55  ;;  %v300_v55 = vld [vmem:[%s4133_s1 + $0x880] sm:$0xff]  ;;  %v302_v57 = vld [vmem:[%s4133_s1 + $0x890] sm:$0xff] }
  0x67   :  { %1976 = vmatpush1.bf16.msra.mxu1 %v1975_v1  ;;  %1722 = vmatprep.subr.bf16.mxu0 %v1721_v2  ;;  %v1741_v1 = vpack.c.bf16 %v273_v59, %v269_v58  ;;  %v268_v2 = vld [vmem:[%s4133_s1 + $0x780] sm:$0xff]  ;;  %v309_v59 = vld [vmem:[%s4133_s1 + $0x8c8] sm:$0xff] }
  0x68   :  { %1978 = vmatprep.subr.bf16.mxu1 %v1977_v6  ;;  %v274_v6 = vld [vmem:[%s4133_s1 + $0x7b0] sm:$0xff]  ;;  %v1743_v12 = vpack.c.bf16 %v272_v3, %v268_v2  ;;  %v1761_v2 = vpack.c.bf16 %v313_v60, %v309_v59  ;;  %v308_v3 = vld [vmem:[%s4133_s1 + $0x8c0] sm:$0xff]  ;;  %v349_v59 = vld [vmem:[%s4133_s1 + $0xa08] sm:$0xff] }
  0x69   :  { %v353_v60 = vld [vmem:[%s4133_s1 + $0xa28] sm:$0xff] }
  0x6a   :  { %1724 = vmatpush1.bf16.msra.mxu0 %v1723_v13  ;;  %v1999_v13 = vpack.c.bf16 %v274_v6, %v270_v4  ;;  %v312_v4 = vld [vmem:[%s4133_s1 + $0x8e0] sm:$0xff] }
  0x6b   :  { %1980 = vmatpush1.bf16.msra.mxu1 %v1979_v14  ;;  %1726 = vmatprep.subr.bf16.mxu0 %v1725_v15  ;;  %v1745_v14 = vpack.c.bf16 %v281_v8, %v277_v7  ;;  %v276_v15 = vld [vmem:[%s4133_s1 + $0x7c0] sm:$0xff]  ;;  %v314_v7 = vld [vmem:[%s4133_s1 + $0x8f0] sm:$0xff]  ;;  %v317_v8 = vld [vmem:[%s4133_s1 + $0x908] sm:$0xff] }
  0x6c   :  { %1982 = vmatprep.subr.bf16.mxu1 %v1981_v19  ;;  %v282_v19 = vld [vmem:[%s4133_s1 + $0x7f0] sm:$0xff] }
  0x6e   :  { %1728 = vmatpush1.bf16.msra.mxu0 %v1727_v27  ;;  %v1747_v27 = vpack.c.bf16 %v280_v16, %v276_v15  ;;  %v1765_v15 = vpack.c.bf16 %v321_v9, %v317_v8  ;;  %v316_v16 = vld [vmem:[%s4133_s1 + $0x900] sm:$0xff]  ;;  %v357_v8 = vld [vmem:[%s4133_s1 + $0xa48] sm:$0xff] }
  0x6f   :  { %1984 = vmatpush1.bf16.msra.mxu1 %v1983_v28  ;;  %1730 = vmatprep.subr.bf16.mxu0 %v1729_v29  ;;  %v2003_v28 = vpack.c.bf16 %v282_v19, %v278_v17  ;;  %v1749_v29 = vpack.c.bf16 %v289_v21, %v285_v20  ;;  %v320_v17 = vld [vmem:[%s4133_s1 + $0x920] sm:$0xff]  ;;  %v322_v20 = vld [vmem:[%s4133_s1 + $0x930] sm:$0xff]  ;;  %v325_v21 = vld [vmem:[%s4133_s1 + $0x948] sm:$0xff] }
  0x70   :  { %1986 = vmatprep.subr.bf16.mxu1 %v1985_v33  ;;  %v2005_v33 = vpack.c.bf16 %v291_v26, %v287_v23  ;;  %v329_v23 = vld [vmem:[%s4133_s1 + $0x968] sm:$0xff]  ;;  %v327_v26 = vld [vmem:[%s4133_s1 + $0x958] sm:$0xff] }
  0x71   :  { %v361_v9 = vld [vmem:[%s4133_s1 + $0xa68] sm:$0xff] }
  0x72   :  { %1732 = vmatpush1.bf16.msra.mxu0 %v1731_v39  ;;  %v299_v39 = vld [vmem:[%s4133_s1 + $0x878] sm:$0xff] }
  0x73   :  { %1988 = vmatpush1.bf16.msra.mxu1 %v1987_v40  ;;  %1734 = vmatprep.subr.bf16.mxu0 %v1733_v41  ;;  %v1751_v40 = vpack.c.bf16 %v288_v31, %v284_v30  ;;  %v2007_v41 = vpack.c.bf16 %v290_v34, %v286_v32  ;;  %v2009_v46 = vpack.c.bf16 %v299_v39, %v295_v38  ;;  %v324_v31 = vld [vmem:[%s4133_s1 + $0x940] sm:$0xff]  ;;  %v337_v38 = vld [vmem:[%s4133_s1 + $0x9a8] sm:$0xff]  ;;  %v335_v39 = vld [vmem:[%s4133_s1 + $0x998] sm:$0xff] }
  0x74   :  { %1990 = vmatprep.subr.bf16.mxu1 %v1989_v45  ;;  %v294_v45 = vld [vmem:[%s4133_s1 + $0x850] sm:$0xff]  ;;  %v1769_v30 = vpack.c.bf16 %v329_v23, %v325_v21  ;;  %v328_v32 = vld [vmem:[%s4133_s1 + $0x960] sm:$0xff]  ;;  %v365_v21 = vld [vmem:[%s4133_s1 + $0xa88] sm:$0xff] }
  0x75   :  { %v2011_v53 = vpack.c.bf16 %v298_v47, %v294_v45  ;;  %v336_v45 = vld [vmem:[%s4133_s1 + $0x9a0] sm:$0xff]  ;;  %v369_v23 = vld [vmem:[%s4133_s1 + $0xaa8] sm:$0xff] }
  0x76   :  { %1736 = vmatpush1.bf16.msra.mxu0 %v1735_v50  ;;  %v303_v50 = vld [vmem:[%s4133_s1 + $0x898] sm:$0xff] }
  0x77   :  { %1992 = vmatpush1.bf16.msra.mxu1 %v1991_v51  ;;  %1738 = vmatprep.subr.bf16.mxu0 %v1737_v52  ;;  %v307_v51 = vld [vmem:[%s4133_s1 + $0x8b8] sm:$0xff]  ;;  %v1755_v52 = vpack.c.bf16 %v296_v44, %v292_v43  ;;  %v1773_v43 = vpack.c.bf16 %v337_v38, %v333_v36  ;;  %v332_v44 = vld [vmem:[%s4133_s1 + $0x980] sm:$0xff]  ;;  %v373_v36 = vld [vmem:[%s4133_s1 + $0xac8] sm:$0xff] }
  0x78   :  { %1994 = vmatprep.subr.bf16.mxu1 %v1993_v56  ;;  %v304_v56 = vld [vmem:[%s4133_s1 + $0x8a0] sm:$0xff]  ;;  %v2013_v58 = vpack.c.bf16 %v307_v51, %v303_v50  ;;  %v343_v50 = vld [vmem:[%s4133_s1 + $0x9d8] sm:$0xff]  ;;  %v377_v38 = vld [vmem:[%s4133_s1 + $0xae8] sm:$0xff] }
  0x79   :  { %v347_v51 = vld [vmem:[%s4133_s1 + $0x9f8] sm:$0xff] }
  0x7a   :  { %1740 = vmatpush1.bf16.msra.mxu0 %v1739_v63  ;;  %v315_v63 = vld [vmem:[%s4133_s1 + $0x8f8] sm:$0xff] }
  0x7b   :  { %1996 = vmatpush1.bf16.msra.mxu1 %v1995_v0  ;;  %1742 = vmatprep.subr.bf16.mxu0 %v1741_v1  ;;  %v1759_v0 = vpack.c.bf16 %v304_v56, %v300_v55  ;;  %v2017_v6 = vpack.c.bf16 %v315_v63, %v311_v62  ;;  %v340_v55 = vld [vmem:[%s4133_s1 + $0x9c0] sm:$0xff]  ;;  %v351_v62 = vld [vmem:[%s4133_s1 + $0xa18] sm:$0xff] }
  0x7c   :  { %1998 = vmatprep.subr.bf16.mxu1 %v1997_v5  ;;  %v310_v5 = vld [vmem:[%s4133_s1 + $0x8d0] sm:$0xff]  ;;  %v344_v56 = vld [vmem:[%s4133_s1 + $0x9e0] sm:$0xff]  ;;  %v355_v63 = vld [vmem:[%s4133_s1 + $0xa38] sm:$0xff] }
  0x7e   :  { %1744 = vmatpush1.bf16.msra.mxu0 %v1743_v12  ;;  %v323_v12 = vld [vmem:[%s4133_s1 + $0x938] sm:$0xff] }
  0x7f   :  { %2000 = vmatpush1.bf16.msra.mxu1 %v1999_v13  ;;  %1746 = vmatprep.subr.bf16.mxu0 %v1745_v14  ;;  %v1763_v13 = vpack.c.bf16 %v312_v4, %v308_v3  ;;  %v2019_v14 = vpack.c.bf16 %v314_v7, %v310_v5  ;;  %v2021_v19 = vpack.c.bf16 %v323_v12, %v319_v10  ;;  %v348_v3 = vld [vmem:[%s4133_s1 + $0xa00] sm:$0xff]  ;;  %v350_v5 = vld [vmem:[%s4133_s1 + $0xa10] sm:$0xff]  ;;  %v359_v10 = vld [vmem:[%s4133_s1 + $0xa58] sm:$0xff] }
  0x80   :  { %2002 = vmatprep.subr.bf16.mxu1 %v2001_v18  ;;  %v318_v18 = vld [vmem:[%s4133_s1 + $0x910] sm:$0xff]  ;;  %v352_v4 = vld [vmem:[%s4133_s1 + $0xa20] sm:$0xff]  ;;  %v363_v12 = vld [vmem:[%s4133_s1 + $0xa78] sm:$0xff] }
  0x81   :  { %v354_v7 = vld [vmem:[%s4133_s1 + $0xa30] sm:$0xff] }
  0x82   :  { %1748 = vmatpush1.bf16.msra.mxu0 %v1747_v27  ;;  %v331_v27 = vld [vmem:[%s4133_s1 + $0x978] sm:$0xff] }
  0x83   :  { %2004 = vmatpush1.bf16.msra.mxu1 %v2003_v28  ;;  %1750 = vmatprep.subr.bf16.mxu0 %v1749_v29  ;;  %v1767_v28 = vpack.c.bf16 %v320_v17, %v316_v16  ;;  %v2023_v29 = vpack.c.bf16 %v322_v20, %v318_v18  ;;  %v2025_v34 = vpack.c.bf16 %v331_v27, %v327_v26  ;;  %v356_v16 = vld [vmem:[%s4133_s1 + $0xa40] sm:$0xff]  ;;  %v358_v18 = vld [vmem:[%s4133_s1 + $0xa50] sm:$0xff]  ;;  %v367_v26 = vld [vmem:[%s4133_s1 + $0xa98] sm:$0xff] }
  0x84   :  { %2006 = vmatprep.subr.bf16.mxu1 %v2005_v33  ;;  %v326_v33 = vld [vmem:[%s4133_s1 + $0x950] sm:$0xff]  ;;  %v360_v17 = vld [vmem:[%s4133_s1 + $0xa60] sm:$0xff]  ;;  %v371_v27 = vld [vmem:[%s4133_s1 + $0xab8] sm:$0xff] }
  0x85   :  { %742 = vmatmul.mubr.f32.vlgmr.msra.gmra.mrb[0].mxu0 %v2722_v24  ;;  %v362_v20 = vld [vmem:[%s4133_s1 + $0xa70] sm:$0xff] }
  0x86   :  { %1752 = vmatpush1.bf16.msra.mxu0 %v1751_v40  ;;  %1026 = vmatmul.mubr.f32.vlgmr.msra.gmra.mrb[0].mxu1 %v2722_v24  ;;  %v306_v24 = vld [vmem:[%s4133_s1 + $0x8b0] sm:$0xff]  ;;  %v339_v40 = vld [vmem:[%s4133_s1 + $0x9b8] sm:$0xff] }
  0x87   :  { %2008 = vmatpush1.bf16.msra.mxu1 %v2007_v41  ;;  %1754 = vmatprep.subr.bf16.mxu0 %v1753_v42  ;;  %v2015_v1 = vpack.c.bf16 %v306_v24, %v302_v57  ;;  %v1771_v41 = vpack.c.bf16 %v328_v32, %v324_v31  ;;  %v2027_v42 = vpack.c.bf16 %v330_v35, %v326_v33  ;;  %v342_v57 = vld [vmem:[%s4133_s1 + $0x9d0] sm:$0xff]  ;;  %v364_v31 = vld [vmem:[%s4133_s1 + $0xa80] sm:$0xff] }
  0x88   :  { %2010 = vmatprep.subr.bf16.mxu1 %v2009_v46  ;;  %812 = vmatprep.mubr.f32.mxu0 %v596_v49  ;;  %v334_v46 = vld [vmem:[%s4133_s1 + $0x990] sm:$0xff]  ;;  %v2029_v47 = vpack.c.bf16 %v339_v40, %v335_v39  ;;  %v368_v32 = vld [vmem:[%s4133_s1 + $0xaa0] sm:$0xff]  ;;  %v375_v39 = vld [vmem:[%s4133_s1 + $0xad8] sm:$0xff] }
  0x89   :  { %1096 = vmatprep.mubr.f32.mxu1 %v596_v49  ;;  %v345_v49 = vld [vmem:[%s4133_s1 + $0x9e8] sm:$0xff]  ;;  %v346_v24 = vld [vmem:[%s4133_s1 + $0x9f0] sm:$0xff]  ;;  %v379_v40 = vld [vmem:[%s4133_s1 + $0xaf8] sm:$0xff] }
  0x8a   :  { %1756 = vmatpush1.bf16.msra.mxu0 %v1755_v52  ;;  %v1775_v52 = vpack.c.bf16 %v336_v45, %v332_v44  ;;  %v366_v33 = vld [vmem:[%s4133_s1 + $0xa90] sm:$0xff]  ;;  %v372_v44 = vld [vmem:[%s4133_s1 + $0xac0] sm:$0xff] }
  0x8b   :  { %2012 = vmatpush1.bf16.msra.mxu1 %v2011_v53  ;;  %1758 = vmatprep.subr.bf16.mxu0 %v1757_v54  ;;  %v2031_v53 = vpack.c.bf16 %v338_v25, %v334_v46  ;;  %v1777_v54 = vpack.c.bf16 %v345_v49, %v341_v48  ;;  %v370_v35 = vld [vmem:[%s4133_s1 + $0xab0] sm:$0xff]  ;;  %v376_v45 = vld [vmem:[%s4133_s1 + $0xae0] sm:$0xff]  ;;  %v381_v48 = vld [vmem:[%s4133_s1 + $0xb08] sm:$0xff] }
  0x8c   :  { %2014 = vmatprep.subr.bf16.mxu1 %v2013_v58  ;;  %v2033_v58 = vpack.c.bf16 %v347_v51, %v343_v50  ;;  %v374_v46 = vld [vmem:[%s4133_s1 + $0xad0] sm:$0xff]  ;;  %v385_v49 = vld [vmem:[%s4133_s1 + $0xb28] sm:$0xff]  ;;  %v383_v50 = vld [vmem:[%s4133_s1 + $0xb18] sm:$0xff] }
  0x8d   :  { %v378_v25 = vld [vmem:[%s4133_s1 + $0xaf0] sm:$0xff]  ;;  %v387_v51 = vld [vmem:[%s4133_s1 + $0xb38] sm:$0xff] }
  0x8e   :  { %1760 = vmatpush1.bf16.msra.mxu0 %v1759_v0  ;;  %v1779_v0 = vpack.c.bf16 %v344_v56, %v340_v55  ;;  %v380_v55 = vld [vmem:[%s4133_s1 + $0xb00] sm:$0xff] }
  0x8f   :  { %2016 = vmatpush1.bf16.msra.mxu1 %v2015_v1  ;;  %1762 = vmatprep.subr.bf16.mxu0 %v1761_v2  ;;  %v2035_v1 = vpack.c.bf16 %v346_v24, %v342_v57  ;;  %v1781_v2 = vpack.c.bf16 %v353_v60, %v349_v59  ;;  %v384_v56 = vld [vmem:[%s4133_s1 + $0xb20] sm:$0xff]  ;;  %v382_v57 = vld [vmem:[%s4133_s1 + $0xb10] sm:$0xff]  ;;  %v389_v59 = vld [vmem:[%s4133_s1 + $0xb48] sm:$0xff] }
  0x90   :  { %2018 = vmatprep.subr.bf16.mxu1 %v2017_v6  ;;  %v2037_v6 = vpack.c.bf16 %v355_v63, %v351_v62  ;;  %v386_v24 = vld [vmem:[%s4133_s1 + $0xb30] sm:$0xff]  ;;  %v393_v60 = vld [vmem:[%s4133_s1 + $0xb68] sm:$0xff]  ;;  %v391_v62 = vld [vmem:[%s4133_s1 + $0xb58] sm:$0xff] }
  0x91   :  { %v395_v63 = vld [vmem:[%s4133_s1 + $0xb78] sm:$0xff] }
  0x92   :  { %1764 = vmatpush1.bf16.msra.mxu0 %v1763_v13  ;;  %v1783_v13 = vpack.c.bf16 %v352_v4, %v348_v3  ;;  %v388_v3 = vld [vmem:[%s4133_s1 + $0xb40] sm:$0xff] }
  0x93   :  { %2020 = vmatpush1.bf16.msra.mxu1 %v2019_v14  ;;  %1766 = vmatprep.subr.bf16.mxu0 %v1765_v15  ;;  %v2039_v14 = vpack.c.bf16 %v354_v7, %v350_v5  ;;  %v1785_v15 = vpack.c.bf16 %v361_v9, %v357_v8  ;;  %v392_v4 = vld [vmem:[%s4133_s1 + $0xb60] sm:$0xff]  ;;  %v390_v5 = vld [vmem:[%s4133_s1 + $0xb50] sm:$0xff]  ;;  %v397_v8 = vld [vmem:[%s4133_s1 + $0xb88] sm:$0xff] }
  0x94   :  { %2022 = vmatprep.subr.bf16.mxu1 %v2021_v19  ;;  %v2041_v19 = vpack.c.bf16 %v363_v12, %v359_v10  ;;  %v394_v7 = vld [vmem:[%s4133_s1 + $0xb70] sm:$0xff]  ;;  %v401_v9 = vld [vmem:[%s4133_s1 + $0xba8] sm:$0xff]  ;;  %v399_v10 = vld [vmem:[%s4133_s1 + $0xb98] sm:$0xff] }
  0x95   :  { %v403_v12 = vld [vmem:[%s4133_s1 + $0xbb8] sm:$0xff] }
  0x96   :  { %1768 = vmatpush1.bf16.msra.mxu0 %v1767_v28  ;;  %v1787_v28 = vpack.c.bf16 %v360_v17, %v356_v16  ;;  %v396_v16 = vld [vmem:[%s4133_s1 + $0xb80] sm:$0xff] }
  0x97   :  { %2024 = vmatpush1.bf16.msra.mxu1 %v2023_v29  ;;  %1770 = vmatprep.subr.bf16.mxu0 %v1769_v30  ;;  %v2043_v29 = vpack.c.bf16 %v362_v20, %v358_v18  ;;  %v1789_v30 = vpack.c.bf16 %v369_v23, %v365_v21  ;;  %v400_v17 = vld [vmem:[%s4133_s1 + $0xba0] sm:$0xff]  ;;  %v398_v18 = vld [vmem:[%s4133_s1 + $0xb90] sm:$0xff]  ;;  %v405_v21 = vld [vmem:[%s4133_s1 + $0xbc8] sm:$0xff] }
  0x98   :  { %2026 = vmatprep.subr.bf16.mxu1 %v2025_v34  ;;  %v2045_v34 = vpack.c.bf16 %v371_v27, %v367_v26  ;;  %v402_v20 = vld [vmem:[%s4133_s1 + $0xbb0] sm:$0xff]  ;;  %v409_v23 = vld [vmem:[%s4133_s1 + $0xbe8] sm:$0xff]  ;;  %v407_v26 = vld [vmem:[%s4133_s1 + $0xbd8] sm:$0xff] }
  0x99   :  { %v411_v27 = vld [vmem:[%s4133_s1 + $0xbf8] sm:$0xff] }
  0x9a   :  { %1772 = vmatpush1.bf16.msra.mxu0 %v1771_v41  ;;  %v1791_v41 = vpack.c.bf16 %v368_v32, %v364_v31  ;;  %v404_v31 = vld [vmem:[%s4133_s1 + $0xbc0] sm:$0xff] }
  0x9b   :  { %2028 = vmatpush1.bf16.msra.mxu1 %v2027_v42  ;;  %1774 = vmatprep.subr.bf16.mxu0 %v1773_v43  ;;  %v2047_v42 = vpack.c.bf16 %v370_v35, %v366_v33  ;;  %v1793_v43 = vpack.c.bf16 %v377_v38, %v373_v36  ;;  %v408_v32 = vld [vmem:[%s4133_s1 + $0xbe0] sm:$0xff]  ;;  %v406_v33 = vld [vmem:[%s4133_s1 + $0xbd0] sm:$0xff]  ;;  %v2065_v35 = vpack.c.bf16 %v411_v27, %v407_v26  ;;  %v413_v38 = vld [vmem:[%s4133_s1 + $0xc08] sm:$0xff] }
  0x9c   :  { %2030 = vmatprep.subr.bf16.mxu1 %v2029_v47  ;;  %v2049_v47 = vpack.c.bf16 %v379_v40, %v375_v39  ;;  %v410_v36 = vld [vmem:[%s4133_s1 + $0xbf0] sm:$0xff]  ;;  %v417_v39 = vld [vmem:[%s4133_s1 + $0xc28] sm:$0xff]  ;;  %v415_v40 = vld [vmem:[%s4133_s1 + $0xc18] sm:$0xff] }
  0x9d   :  { %v447_v26 = vld [vmem:[%s4133_s1 + $0xd18] sm:$0xff] }
  0x9e   :  { %1776 = vmatpush1.bf16.msra.mxu0 %v1775_v52  ;;  %v1795_v52 = vpack.c.bf16 %v376_v45, %v372_v44  ;;  %v412_v44 = vld [vmem:[%s4133_s1 + $0xc00] sm:$0xff]  ;;  %v451_v27 = vld [vmem:[%s4133_s1 + $0xd38] sm:$0xff] }
  0x9f   :  { %2032 = vmatpush1.bf16.msra.mxu1 %v2031_v53  ;;  %1778 = vmatprep.subr.bf16.mxu0 %v1777_v54  ;;  %v2051_v53 = vpack.c.bf16 %v378_v25, %v374_v46  ;;  %v1797_v54 = vpack.c.bf16 %v385_v49, %v381_v48  ;;  %v416_v45 = vld [vmem:[%s4133_s1 + $0xc20] sm:$0xff]  ;;  %v414_v46 = vld [vmem:[%s4133_s1 + $0xc10] sm:$0xff]  ;;  %v421_v48 = vld [vmem:[%s4133_s1 + $0xc48] sm:$0xff] }
  0xa0   :  { %2034 = vmatprep.subr.bf16.mxu1 %v2033_v58  ;;  %v2053_v58 = vpack.c.bf16 %v387_v51, %v383_v50  ;;  %v418_v25 = vld [vmem:[%s4133_s1 + $0xc30] sm:$0xff]  ;;  %v425_v49 = vld [vmem:[%s4133_s1 + $0xc68] sm:$0xff]  ;;  %v423_v51 = vld [vmem:[%s4133_s1 + $0xc58] sm:$0xff] }
  0xa2   :  { %1780 = vmatpush1.bf16.msra.mxu0 %v1779_v0  ;;  %v1799_v0 = vpack.c.bf16 %v384_v56, %v380_v55  ;;  %v1817_v55 = vpack.c.bf16 %v425_v49, %v421_v48  ;;  %v420_v56 = vld [vmem:[%s4133_s1 + $0xc40] sm:$0xff]  ;;  %v465_v48 = vld [vmem:[%s4133_s1 + $0xda8] sm:$0xff]  ;;  %v463_v49 = vld [vmem:[%s4133_s1 + $0xd98] sm:$0xff] }
  0xa3   :  { %2036 = vmatpush1.bf16.msra.mxu1 %v2035_v1  ;;  %1782 = vmatprep.subr.bf16.mxu0 %v1781_v2  ;;  %v2055_v1 = vpack.c.bf16 %v386_v24, %v382_v57  ;;  %v1801_v2 = vpack.c.bf16 %v393_v60, %v389_v59  ;;  %v422_v57 = vld [vmem:[%s4133_s1 + $0xc50] sm:$0xff]  ;;  %v429_v59 = vld [vmem:[%s4133_s1 + $0xc88] sm:$0xff] }
  0xa4   :  { %2038 = vmatprep.subr.bf16.mxu1 %v2037_v6  ;;  %v2057_v6 = vpack.c.bf16 %v395_v63, %v391_v62  ;;  %v426_v24 = vld [vmem:[%s4133_s1 + $0xc70] sm:$0xff]  ;;  %v433_v60 = vld [vmem:[%s4133_s1 + $0xca8] sm:$0xff]  ;;  %v431_v63 = vld [vmem:[%s4133_s1 + $0xc98] sm:$0xff] }
  0xa6   :  { %1784 = vmatpush1.bf16.msra.mxu0 %v1783_v13  ;;  %v1803_v13 = vpack.c.bf16 %v392_v4, %v388_v3  ;;  %v1821_v3 = vpack.c.bf16 %v433_v60, %v429_v59  ;;  %v428_v4 = vld [vmem:[%s4133_s1 + $0xc80] sm:$0xff]  ;;  %v473_v59 = vld [vmem:[%s4133_s1 + $0xde8] sm:$0xff]  ;;  %v471_v60 = vld [vmem:[%s4133_s1 + $0xdd8] sm:$0xff] }
  0xa7   :  { %2040 = vmatpush1.bf16.msra.mxu1 %v2039_v14  ;;  %1786 = vmatprep.subr.bf16.mxu0 %v1785_v15  ;;  %v2059_v14 = vpack.c.bf16 %v394_v7, %v390_v5  ;;  %v1805_v15 = vpack.c.bf16 %v401_v9, %v397_v8  ;;  %v432_v5 = vld [vmem:[%s4133_s1 + $0xca0] sm:$0xff]  ;;  %v437_v8 = vld [vmem:[%s4133_s1 + $0xcc8] sm:$0xff] }
  0xa8   :  { %2042 = vmatprep.subr.bf16.mxu1 %v2041_v19  ;;  %v2061_v19 = vpack.c.bf16 %v403_v12, %v399_v10  ;;  %v441_v9 = vld [vmem:[%s4133_s1 + $0xce8] sm:$0xff]  ;;  %v439_v10 = vld [vmem:[%s4133_s1 + $0xcd8] sm:$0xff] }
  0xa9   :  { %v443_v12 = vld [vmem:[%s4133_s1 + $0xcf8] sm:$0xff] }
  0xaa   :  { %1788 = vmatpush1.bf16.msra.mxu0 %v1787_v28  ;;  %v1807_v28 = vpack.c.bf16 %v400_v17, %v396_v16  ;;  %v436_v16 = vld [vmem:[%s4133_s1 + $0xcc0] sm:$0xff] }
  0xab   :  { %2044 = vmatpush1.bf16.msra.mxu1 %v2043_v29  ;;  %1790 = vmatprep.subr.bf16.mxu0 %v1789_v30  ;;  %v2063_v29 = vpack.c.bf16 %v402_v20, %v398_v18  ;;  %v1809_v30 = vpack.c.bf16 %v409_v23, %v405_v21  ;;  %v440_v17 = vld [vmem:[%s4133_s1 + $0xce0] sm:$0xff]  ;;  %v438_v18 = vld [vmem:[%s4133_s1 + $0xcd0] sm:$0xff]  ;;  %v445_v21 = vld [vmem:[%s4133_s1 + $0xd08] sm:$0xff] }
  0xac   :  { %2046 = vmatprep.subr.bf16.mxu1 %v2045_v34  ;;  %v581_v34 = vcombine.high %v3091_v22, %v3091_v22  ;;  %v419_v22 = vld [vmem:[%s4133_s1 + $0xc38] sm:$0xff]  ;;  %v442_v20 = vld [vmem:[%s4133_s1 + $0xcf0] sm:$0xff]  ;;  %v449_v23 = vld [vmem:[%s4133_s1 + $0xd28] sm:$0xff] }
  0xae   :  { %1792 = vmatpush1.bf16.msra.mxu0 %v1791_v41  ;;  %v1811_v41 = vpack.c.bf16 %v408_v32, %v404_v31  ;;  %v3512_v50 = vrot.slane %v581_v34, %v2568_v11  ;;  %v424_v11 = vld [vmem:[%s4133_s1 + $0xc60] sm:$0xff]  ;;  %v2085_v34 = vpack.c.bf16 %v451_v27, %v447_v26 }
  0xaf   :  { %2048 = vmatpush1.bf16.msra.mxu1 %v2047_v42  ;;  %1794 = vmatprep.subr.bf16.mxu0 %v1793_v43  ;;  %v2067_v42 = vpack.c.bf16 %v410_v36, %v406_v33  ;;  %v1813_v43 = vpack.c.bf16 %v417_v39, %v413_v38  ;;  %v444_v31 = vld [vmem:[%s4133_s1 + $0xd00] sm:$0xff]  ;;  %v446_v33 = vld [vmem:[%s4133_s1 + $0xd10] sm:$0xff]  ;;  %v453_v36 = vld [vmem:[%s4133_s1 + $0xd48] sm:$0xff] }
  0xb0   :  { %2050 = vmatprep.subr.bf16.mxu1 %v2049_v47  ;;  %v2069_v47 = vpack.c.bf16 %v419_v22, %v415_v40  ;;  %v597_v62 = vcombine.high %v3512_v50, %v3512_v50  ;;  %v448_v32 = vld [vmem:[%s4133_s1 + $0xd20] sm:$0xff]  ;;  %v457_v38 = vld [vmem:[%s4133_s1 + $0xd68] sm:$0xff]  ;;  %v455_v39 = vld [vmem:[%s4133_s1 + $0xd58] sm:$0xff] }
  0xb1   :  { %v459_v40 = vld [vmem:[%s4133_s1 + $0xd78] sm:$0xff]  ;;  %v1831_v22 = vpack.c.bf16 %v448_v32, %v444_v31  ;;  %v486_v31 = vld [vmem:[%s4133_s1 + $0xe50] sm:$0xff] }
  0xb2   :  { %1796 = vmatpush1.bf16.msra.mxu0 %v1795_v52  ;;  %v427_v52 = vld [vmem:[%s4133_s1 + $0xc78] sm:$0xff] }
  0xb3   :  { %2052 = vmatpush1.bf16.msra.mxu1 %v2051_v53  ;;  %1798 = vmatprep.subr.bf16.mxu0 %v1797_v54  ;;  %v1815_v53 = vpack.c.bf16 %v416_v45, %v412_v44  ;;  %v2071_v54 = vpack.c.bf16 %v418_v25, %v414_v46  ;;  %v456_v44 = vld [vmem:[%s4133_s1 + $0xd60] sm:$0xff]  ;;  %v454_v45 = vld [vmem:[%s4133_s1 + $0xd50] sm:$0xff]  ;;  %v2089_v46 = vpack.c.bf16 %v459_v40, %v455_v39  ;;  %v461_v25 = vld [vmem:[%s4133_s1 + $0xd88] sm:$0xff] }
  0xb4   :  { %2054 = vmatprep.subr.bf16.mxu1 %v2053_v58  ;;  %v2073_v58 = vpack.c.bf16 %v427_v52, %v423_v51  ;;  %v467_v51 = vld [vmem:[%s4133_s1 + $0xdb8] sm:$0xff] }
  0xb6   :  { %1800 = vmatpush1.bf16.msra.mxu0 %v1799_v0  ;;  %v435_v0 = vld [vmem:[%s4133_s1 + $0xcb8] sm:$0xff] }
  0xb7   :  { %2056 = vmatpush1.bf16.msra.mxu1 %v2055_v1  ;;  %1802 = vmatprep.subr.bf16.mxu0 %v1801_v2  ;;  %v1819_v1 = vpack.c.bf16 %v424_v11, %v420_v56  ;;  %v2075_v2 = vpack.c.bf16 %v426_v24, %v422_v57  ;;  %v2077_v7 = vpack.c.bf16 %v435_v0, %v431_v63  ;;  %v464_v56 = vld [vmem:[%s4133_s1 + $0xda0] sm:$0xff]  ;;  %v462_v11 = vld [vmem:[%s4133_s1 + $0xd90] sm:$0xff]  ;;  %v469_v24 = vld [vmem:[%s4133_s1 + $0xdc8] sm:$0xff] }
  0xb8   :  { %2058 = vmatprep.subr.bf16.mxu1 %v2057_v6  ;;  %v430_v6 = vld [vmem:[%s4133_s1 + $0xc90] sm:$0xff]  ;;  %v2093_v57 = vpack.c.bf16 %v467_v51, %v463_v49 }
  0xba   :  { %1804 = vmatpush1.bf16.msra.mxu0 %v1803_v13  ;;  %v1823_v13 = vpack.c.bf16 %v432_v5, %v428_v4  ;;  %v470_v4 = vld [vmem:[%s4133_s1 + $0xdd0] sm:$0xff] }
  0xbb   :  { %2060 = vmatpush1.bf16.msra.mxu1 %v2059_v14  ;;  %1806 = vmatprep.subr.bf16.mxu0 %v1805_v15  ;;  %v1825_v15 = vpack.c.bf16 %v441_v9, %v437_v8  ;;  %v479_v8 = vld [vmem:[%s4133_s1 + $0xe18] sm:$0xff] }
  0xbc   :  { %2062 = vmatprep.subr.bf16.mxu1 %v2061_v19  ;;  %v2081_v19 = vpack.c.bf16 %v443_v12, %v439_v10  ;;  %v483_v9 = vld [vmem:[%s4133_s1 + $0xe38] sm:$0xff] }
  0xbe   :  { %1808 = vmatpush1.bf16.msra.mxu0 %v1807_v28  ;;  %v1827_v28 = vpack.c.bf16 %v440_v17, %v436_v16  ;;  %v478_v16 = vld [vmem:[%s4133_s1 + $0xe10] sm:$0xff]  ;;  %v2101_v17 = vpack.c.bf16 %v483_v9, %v479_v8 }
  0xbf   :  { %2064 = vmatpush1.bf16.msra.mxu1 %v2063_v29  ;;  %1810 = vmatprep.subr.bf16.mxu0 %v1809_v30  ;;  %v2083_v29 = vpack.c.bf16 %v442_v20, %v438_v18  ;;  %v1829_v30 = vpack.c.bf16 %v449_v23, %v445_v21  ;;  %v482_v18 = vld [vmem:[%s4133_s1 + $0xe30] sm:$0xff]  ;;  %v489_v20 = vld [vmem:[%s4133_s1 + $0xe68] sm:$0xff]  ;;  %v487_v21 = vld [vmem:[%s4133_s1 + $0xe58] sm:$0xff] }
  0xc0   :  { %2066 = vmatprep.subr.bf16.mxu1 %v2065_v35  ;;  %v450_v35 = vld [vmem:[%s4133_s1 + $0xd30] sm:$0xff]  ;;  %v491_v23 = vld [vmem:[%s4133_s1 + $0xe78] sm:$0xff]  ;;  %v2103_v27 = vpack.c.bf16 %v482_v18, %v478_v16  ;;  %v529_v18 = vld [vmem:[%s4133_s1 + $0xfa8] sm:$0xff] }
  0xc1   :  { %v2105_v32 = vpack.c.bf16 %v491_v23, %v487_v21  ;;  %v522_v16 = vld [vmem:[%s4133_s1 + $0xf70] sm:$0xff] }
  0xc2   :  { %1812 = vmatpush1.bf16.msra.mxu0 %v1811_v41  ;;  %v2087_v41 = vpack.c.bf16 %v450_v35, %v446_v33  ;;  %v490_v33 = vld [vmem:[%s4133_s1 + $0xe70] sm:$0xff]  ;;  %v497_v35 = vld [vmem:[%s4133_s1 + $0xea8] sm:$0xff] }
  0xc3   :  { %2068 = vmatpush1.bf16.msra.mxu1 %v2067_v42  ;;  %1814 = vmatprep.subr.bf16.mxu0 %v1813_v43  ;;  %v1833_v42 = vpack.c.bf16 %v457_v38, %v453_v36  ;;  %v452_v43 = vld [vmem:[%s4133_s1 + $0xd40] sm:$0xff]  ;;  %v495_v36 = vld [vmem:[%s4133_s1 + $0xe98] sm:$0xff]  ;;  %v2107_v40 = vpack.c.bf16 %v490_v33, %v486_v31  ;;  %v530_v31 = vld [vmem:[%s4133_s1 + $0xfb0] sm:$0xff] }
  0xc4   :  { %2070 = vmatprep.subr.bf16.mxu1 %v2069_v47  ;;  %v458_v47 = vld [vmem:[%s4133_s1 + $0xd70] sm:$0xff]  ;;  %v1835_v52 = vpack.c.bf16 %v456_v44, %v452_v43  ;;  %v499_v38 = vld [vmem:[%s4133_s1 + $0xeb8] sm:$0xff]  ;;  %v537_v33 = vld [vmem:[%s4133_s1 + $0xfe8] sm:$0xff] }
  0xc5   :  { %813 = vmatmul.mubr.f32.vlgmr.msra.gmra.mrb[0].mxu0 %v3119_v37  ;;  %v494_v43 = vld [vmem:[%s4133_s1 + $0xe90] sm:$0xff]  ;;  %v2109_v44 = vpack.c.bf16 %v499_v38, %v495_v36 }
  0xc6   :  { %1816 = vmatpush1.bf16.msra.mxu0 %v1815_v53  ;;  %1097 = vmatmul.mubr.f32.vlgmr.msra.gmra.mrb[0].mxu1 %v3119_v37  ;;  %v434_v37 = vld [vmem:[%s4133_s1 + $0xcb0] sm:$0xff]  ;;  %v2091_v53 = vpack.c.bf16 %v458_v47, %v454_v45  ;;  %v505_v47 = vld [vmem:[%s4133_s1 + $0xee8] sm:$0xff] }
  0xc7   :  { %2072 = vmatpush1.bf16.msra.mxu1 %v2071_v54  ;;  %1818 = vmatprep.subr.bf16.mxu0 %v1817_v55  ;;  %v2079_v14 = vpack.c.bf16 %v434_v37, %v430_v6  ;;  %v1837_v54 = vpack.c.bf16 %v465_v48, %v461_v25  ;;  %v460_v55 = vld [vmem:[%s4133_s1 + $0xd80] sm:$0xff]  ;;  %v474_v6 = vld [vmem:[%s4133_s1 + $0xdf0] sm:$0xff]  ;;  %v481_v37 = vld [vmem:[%s4133_s1 + $0xe28] sm:$0xff] }
  0xc8   :  { %2074 = vmatprep.subr.bf16.mxu1 %v2073_v58  ;;  %883 = vmatprep.mubr.f32.mxu0 %v597_v62  ;;  %v466_v58 = vld [vmem:[%s4133_s1 + $0xdb0] sm:$0xff]  ;;  %v1839_v63 = vpack.c.bf16 %v464_v56, %v460_v55  ;;  %v2099_v12 = vpack.c.bf16 %v474_v6, %v470_v4  ;;  %v503_v25 = vld [vmem:[%s4133_s1 + $0xed8] sm:$0xff]  ;;  %v521_v6 = vld [vmem:[%s4133_s1 + $0xf68] sm:$0xff] }
  0xc9   :  { %1167 = vmatprep.mubr.f32.mxu1 %v597_v62  ;;  %v475_v62 = vld [vmem:[%s4133_s1 + $0xdf8] sm:$0xff]  ;;  %v2095_v0 = vpack.c.bf16 %v466_v58, %v462_v11  ;;  %v498_v45 = vld [vmem:[%s4133_s1 + $0xeb0] sm:$0xff]  ;;  %v513_v58 = vld [vmem:[%s4133_s1 + $0xf28] sm:$0xff] }
  0xca   :  { %1820 = vmatpush1.bf16.msra.mxu0 %v1819_v1  ;;  %v1841_v1 = vpack.c.bf16 %v473_v59, %v469_v24  ;;  %v2097_v5 = vpack.c.bf16 %v475_v62, %v471_v60  ;;  %v507_v48 = vld [vmem:[%s4133_s1 + $0xef8] sm:$0xff]  ;;  %v2111_v51 = vpack.c.bf16 %v498_v45, %v494_v43  ;;  %v502_v55 = vld [vmem:[%s4133_s1 + $0xed0] sm:$0xff]  ;;  %v1195_v45 = vld [vmem:[%s4135_s3 + $0x88] sm:$0xff] }
  0xcb   :  { %2076 = vmatpush1.bf16.msra.mxu1 %v2075_v2  ;;  %1822 = vmatprep.subr.bf16.mxu0 %v1821_v3  ;;  %v468_v2 = vld [vmem:[%s4133_s1 + $0xdc0] sm:$0xff]  ;;  %v2113_v56 = vpack.c.bf16 %v507_v48, %v503_v25  ;;  %v506_v11 = vld [vmem:[%s4133_s1 + $0xef0] sm:$0xff]  ;;  %v511_v24 = vld [vmem:[%s4133_s1 + $0xf18] sm:$0xff] }
  0xcc   :  { %2078 = vmatprep.subr.bf16.mxu1 %v2077_v7  ;;  %v472_v3 = vld [vmem:[%s4133_s1 + $0xde0] sm:$0xff]  ;;  %v477_v7 = vld [vmem:[%s4133_s1 + $0xe08] sm:$0xff]  ;;  %v515_v59 = vld [vmem:[%s4133_s1 + $0xf38] sm:$0xff]  ;;  %v2115_v62 = vpack.c.bf16 %v506_v11, %v502_v55 }
  0xcd   :  { %v1843_v10 = vpack.c.bf16 %v472_v3, %v468_v2  ;;  %v510_v2 = vld [vmem:[%s4133_s1 + $0xf10] sm:$0xff]  ;;  %v2117_v3 = vpack.c.bf16 %v515_v59, %v511_v24  ;;  %v1211_v55 = vld [vmem:[%s4135_s3 + $0x108] sm:$0xff]  ;;  %v1197_v11 = vld [vmem:[%s4135_s3 + $0x98] sm:$0xff] }
  0xce   :  { %1824 = vmatpush1.bf16.msra.mxu0 %v1823_v13  ;;  %v1845_v13 = vpack.c.bf16 %v481_v37, %v477_v7  ;;  %v514_v4 = vld [vmem:[%s4133_s1 + $0xf30] sm:$0xff]  ;;  %v519_v7 = vld [vmem:[%s4133_s1 + $0xf58] sm:$0xff] }
  0xcf   :  { %2080 = vmatpush1.bf16.msra.mxu1 %v2079_v14  ;;  %1826 = vmatprep.subr.bf16.mxu0 %v1825_v15  ;;  %v476_v14 = vld [vmem:[%s4133_s1 + $0xe00] sm:$0xff]  ;;  %v523_v37 = vld [vmem:[%s4133_s1 + $0xf78] sm:$0xff]  ;;  %v2119_v9 = vpack.c.bf16 %v514_v4, %v510_v2  ;;  %v538_v43 = vld [vmem:[%s4133_s1 + $0xff0] sm:$0xff] }
  0xd0   :  { %2082 = vmatprep.subr.bf16.mxu1 %v2081_v19  ;;  %v480_v15 = vld [vmem:[%s4133_s1 + $0xe20] sm:$0xff]  ;;  %v485_v19 = vld [vmem:[%s4133_s1 + $0xe48] sm:$0xff]  ;;  %v1213_v2 = vld [vmem:[%s4135_s3 + $0x118] sm:$0xff] }
  0xd1   :  { %v1847_v26 = vpack.c.bf16 %v480_v15, %v476_v14  ;;  %v518_v14 = vld [vmem:[%s4133_s1 + $0xf50] sm:$0xff]  ;;  %v2121_v15 = vpack.c.bf16 %v523_v37, %v519_v7  ;;  %v1199_v4 = vld [vmem:[%s4135_s3 + $0xa8] sm:$0xff] }
  0xd2   :  { %1828 = vmatpush1.bf16.msra.mxu0 %v1827_v28  ;;  %v1849_v28 = vpack.c.bf16 %v489_v20, %v485_v19  ;;  %v527_v19 = vld [vmem:[%s4133_s1 + $0xf98] sm:$0xff]  ;;  %v2123_v23 = vpack.c.bf16 %v522_v16, %v518_v14  ;;  %v1200_v14 = vld [vmem:[%s4135_s3 + $0xb0] sm:$0xff] }
  0xd3   :  { %2084 = vmatpush1.bf16.msra.mxu1 %v2083_v29  ;;  %1830 = vmatprep.subr.bf16.mxu0 %v1829_v30  ;;  %v484_v29 = vld [vmem:[%s4133_s1 + $0xe40] sm:$0xff]  ;;  %v531_v20 = vld [vmem:[%s4133_s1 + $0xfb8] sm:$0xff]  ;;  %v1232_v16 = vld [vmem:[%s4135_s3 + $0x1b0] sm:$0xff] }
  0xd4   :  { %2086 = vmatprep.subr.bf16.mxu1 %v2085_v34  ;;  %v488_v30 = vld [vmem:[%s4133_s1 + $0xe60] sm:$0xff]  ;;  %v493_v34 = vld [vmem:[%s4133_s1 + $0xe88] sm:$0xff] }
  0xd5   :  { %v1851_v39 = vpack.c.bf16 %v488_v30, %v484_v29  ;;  %v526_v29 = vld [vmem:[%s4133_s1 + $0xf90] sm:$0xff]  ;;  %v2125_v30 = vpack.c.bf16 %v531_v20, %v527_v19 }
  0xd6   :  { %1832 = vmatpush1.bf16.msra.mxu0 %v1831_v22  ;;  %v1853_v22 = vpack.c.bf16 %v497_v35, %v493_v34  ;;  %v535_v34 = vld [vmem:[%s4133_s1 + $0xfd8] sm:$0xff]  ;;  %v2127_v38 = vpack.c.bf16 %v530_v31, %v526_v29  ;;  %v1202_v29 = vld [vmem:[%s4135_s3 + $0xc0] sm:$0xff] }
  0xd7   :  { %2088 = vmatpush1.bf16.msra.mxu1 %v2087_v41  ;;  %1834 = vmatprep.subr.bf16.mxu0 %v1833_v42  ;;  %v492_v41 = vld [vmem:[%s4133_s1 + $0xe80] sm:$0xff]  ;;  %v539_v35 = vld [vmem:[%s4133_s1 + $0xff8] sm:$0xff] }
  0xd8   :  { %2090 = vmatprep.subr.bf16.mxu1 %v2089_v46  ;;  %v496_v42 = vld [vmem:[%s4133_s1 + $0xea0] sm:$0xff]  ;;  %v501_v46 = vld [vmem:[%s4133_s1 + $0xec8] sm:$0xff] }
  0xd9   :  { %v1855_v49 = vpack.c.bf16 %v496_v42, %v492_v41  ;;  %v534_v41 = vld [vmem:[%s4133_s1 + $0xfd0] sm:$0xff]  ;;  %v2129_v42 = vpack.c.bf16 %v539_v35, %v535_v34  ;;  %v1234_v31 = vld [vmem:[%s4135_s3 + $0x1c0] sm:$0xff] }
  0xda   :  { %1836 = vmatpush1.bf16.msra.mxu0 %v1835_v52  ;;  %v1857_v52 = vpack.c.bf16 %v505_v47, %v501_v46  ;;  %v1226_v46 = vld [vmem:[%s4135_s3 + $0x180] sm:$0xff]  ;;  %v1227_v47 = vld [vmem:[%s4135_s3 + $0x188] sm:$0xff]  ;;  %v2131_v48 = vpack.c.bf16 %v538_v43, %v534_v41  ;;  %v1204_v41 = vld [vmem:[%s4135_s3 + $0xd0] sm:$0xff] }
  0xdb   :  { %2092 = vmatpush1.bf16.msra.mxu1 %v2091_v53  ;;  %1838 = vmatprep.subr.bf16.mxu0 %v1837_v54  ;;  %v500_v53 = vld [vmem:[%s4133_s1 + $0xec0] sm:$0xff]  ;;  %v1236_v43 = vld [vmem:[%s4135_s3 + $0x1d0] sm:$0xff] }
  0xdc   :  { %2094 = vmatprep.subr.bf16.mxu1 %v2093_v57  ;;  %v504_v54 = vld [vmem:[%s4133_s1 + $0xee0] sm:$0xff]  ;;  %v509_v57 = vld [vmem:[%s4133_s1 + $0xf08] sm:$0xff] }
  0xdd   :  { %v1859_v60 = vpack.c.bf16 %v504_v54, %v500_v53  ;;  %v1210_v53 = vld [vmem:[%s4135_s3 + $0x100] sm:$0xff]  ;;  %v2165_v54 = vpack.c.bf16 %v1227_v47, %v1226_v46 }
  0xde   :  { %1840 = vmatpush1.bf16.msra.mxu0 %v1839_v63  ;;  %v1861_v63 = vpack.c.bf16 %v513_v58, %v509_v57  ;;  %v1228_v57 = vld [vmem:[%s4135_s3 + $0x190] sm:$0xff]  ;;  %v1229_v58 = vld [vmem:[%s4135_s3 + $0x198] sm:$0xff]  ;;  %v2167_v59 = vpack.c.bf16 %v1211_v55, %v1210_v53  ;;  %v1206_v53 = vld [vmem:[%s4135_s3 + $0xe0] sm:$0xff] }
  0xdf   :  { %2096 = vmatpush1.bf16.msra.mxu1 %v2095_v0  ;;  %1842 = vmatprep.subr.bf16.mxu0 %v1841_v1  ;;  %v508_v0 = vld [vmem:[%s4133_s1 + $0xf00] sm:$0xff] }
  0xe0   :  { %2098 = vmatprep.subr.bf16.mxu1 %v2097_v5  ;;  %v512_v1 = vld [vmem:[%s4133_s1 + $0xf20] sm:$0xff]  ;;  %v517_v5 = vld [vmem:[%s4133_s1 + $0xf48] sm:$0xff] }
  0xe1   :  { %v1863_v8 = vpack.c.bf16 %v512_v1, %v508_v0  ;;  %v1212_v0 = vld [vmem:[%s4135_s3 + $0x110] sm:$0xff]  ;;  %v2169_v1 = vpack.c.bf16 %v1229_v58, %v1228_v57  ;;  %v1238_v55 = vld [vmem:[%s4135_s3 + $0x1e0] sm:$0xff] }
  0xe2   :  { %1844 = vmatpush1.bf16.msra.mxu0 %v1843_v10  ;;  %v1865_v10 = vpack.c.bf16 %v521_v6, %v517_v5  ;;  %v1230_v5 = vld [vmem:[%s4135_s3 + $0x1a0] sm:$0xff]  ;;  %v1231_v6 = vld [vmem:[%s4135_s3 + $0x1a8] sm:$0xff]  ;;  %v2171_v37 = vpack.c.bf16 %v1213_v2, %v1212_v0  ;;  %v1208_v2 = vld [vmem:[%s4135_s3 + $0xf0] sm:$0xff] }
  0xe3   :  { %2100 = vmatpush1.bf16.msra.mxu1 %v2099_v12  ;;  %1846 = vmatprep.subr.bf16.mxu0 %v1845_v13  ;;  %v516_v12 = vld [vmem:[%s4133_s1 + $0xf40] sm:$0xff]  ;;  %v1223_v0 = vld [vmem:[%s4135_s3 + $0x168] sm:$0xff] }
  0xe4   :  { %2102 = vmatprep.subr.bf16.mxu1 %v2101_v17  ;;  %v520_v13 = vld [vmem:[%s4133_s1 + $0xf60] sm:$0xff]  ;;  %v525_v17 = vld [vmem:[%s4133_s1 + $0xf88] sm:$0xff] }
  0xe5   :  { %v1867_v21 = vpack.c.bf16 %v520_v13, %v516_v12  ;;  %v1214_v12 = vld [vmem:[%s4135_s3 + $0x120] sm:$0xff]  ;;  %v1215_v13 = vld [vmem:[%s4135_s3 + $0x128] sm:$0xff] }
  0xe6   :  { %1848 = vmatpush1.bf16.msra.mxu0 %v1847_v26  ;;  %v1869_v26 = vpack.c.bf16 %v529_v18, %v525_v17  ;;  %v1233_v17 = vld [vmem:[%s4135_s3 + $0x1b8] sm:$0xff]  ;;  %v2175_v19 = vpack.c.bf16 %v1215_v13, %v1214_v12  ;;  %v544_v13 = vsub.s32 0, %v2541_v61 }
  0xe7   :  { %2104 = vmatpush1.bf16.msra.mxu1 %v2103_v27  ;;  %1850 = vmatprep.subr.bf16.mxu0 %v1849_v28  ;;  %v524_v27 = vld [vmem:[%s4133_s1 + $0xf80] sm:$0xff]  ;;  %v1225_v12 = vld [vmem:[%s4135_s3 + $0x178] sm:$0xff] }
  0xe8   :  { %2106 = vmatprep.subr.bf16.mxu1 %v2105_v32  ;;  %v528_v28 = vld [vmem:[%s4133_s1 + $0xfa0] sm:$0xff]  ;;  %v533_v32 = vld [vmem:[%s4133_s1 + $0xfc8] sm:$0xff] }
  0xe9   :  { %v1871_v36 = vpack.c.bf16 %v528_v28, %v524_v27  ;;  %v2177_v27 = vpack.c.bf16 %v1233_v17, %v1232_v16  ;;  %v1217_v28 = vld [vmem:[%s4135_s3 + $0x138] sm:$0xff]  ;;  %v548_v16 = vsub.s32 1, %v2541_v61  ;;  %v556_v17 = vsub.s32 3, %v2541_v61 }
  0xea   :  { %1852 = vmatpush1.bf16.msra.mxu0 %v1851_v39  ;;  %v1873_v39 = vpack.c.bf16 %v537_v33, %v533_v32  ;;  %v1235_v32 = vld [vmem:[%s4135_s3 + $0x1c8] sm:$0xff] }
  0xeb   :  { %2108 = vmatpush1.bf16.msra.mxu1 %v2107_v40  ;;  %1854 = vmatprep.subr.bf16.mxu0 %v1853_v22  ;;  %v532_v40 = vld [vmem:[%s4133_s1 + $0xfc0] sm:$0xff] }
  0xec   :  { %2110 = vmatprep.subr.bf16.mxu1 %v2109_v44  ;;  %v536_v22 = vld [vmem:[%s4133_s1 + $0xfe0] sm:$0xff] }
  0xed   :  { %v1194_v44 = vld [vmem:[%s4135_s3 + $0x80] sm:$0xff]  ;;  %v1875_v25 = vpack.c.bf16 %v536_v22, %v532_v40  ;;  %v2181_v40 = vpack.c.bf16 %v1235_v32, %v1234_v31  ;;  %v1219_v22 = vld [vmem:[%s4135_s3 + $0x148] sm:$0xff] }
  0xee   :  { %1856 = vmatpush1.bf16.msra.mxu0 %v1855_v49  ;;  %v2133_v49 = vpack.c.bf16 %v1195_v45, %v1194_v44  ;;  %v1237_v44 = vld [vmem:[%s4135_s3 + $0x1d8] sm:$0xff] }
  0xef   :  { %2112 = vmatpush1.bf16.msra.mxu1 %v2111_v51  ;;  %1858 = vmatprep.subr.bf16.mxu0 %v1857_v52  ;;  %v1178_v51 = vld [vmem:[%s4135_s3] sm:$0xff]  ;;  %v1179_v52 = vld [vmem:[%s4135_s3 + $0x8] sm:$0xff] }
  0xf0   :  { %2114 = vmatprep.subr.bf16.mxu1 %v2113_v56  ;;  %v1196_v56 = vld [vmem:[%s4135_s3 + $0x90] sm:$0xff]  ;;  %v2135_v24 = vpack.c.bf16 %v1179_v52, %v1178_v51  ;;  %v2185_v51 = vpack.c.bf16 %v1237_v44, %v1236_v43  ;;  %v1221_v52 = vld [vmem:[%s4135_s3 + $0x158] sm:$0xff]  ;;  %v1402_v43 = vld [vmem:[%s4137_s5 + $0x20] sm:$0xff] }
  0xf1   :  { %v1403_v44 = vld [vmem:[%s4137_s5 + $0x28] sm:$0xff] }
  0xf2   :  { %1860 = vmatpush1.bf16.msra.mxu0 %v1859_v60  ;;  %v2137_v60 = vpack.c.bf16 %v1197_v11, %v1196_v56  ;;  %v1239_v56 = vld [vmem:[%s4135_s3 + $0x1e8] sm:$0xff] }
  0xf3   :  { %2116 = vmatpush1.bf16.msra.mxu1 %v2115_v62  ;;  %1862 = vmatprep.subr.bf16.mxu0 %v1861_v63  ;;  %v1180_v62 = vld [vmem:[%s4135_s3 + $0x10] sm:$0xff]  ;;  %v1181_v63 = vld [vmem:[%s4135_s3 + $0x18] sm:$0xff] }
  0xf4   :  { %2118 = vmatprep.subr.bf16.mxu1 %v2117_v3  ;;  %v1198_v3 = vld [vmem:[%s4135_s3 + $0xa0] sm:$0xff]  ;;  %v2139_v7 = vpack.c.bf16 %v1181_v63, %v1180_v62 }
  0xf5   :  { %v1222_v62 = vld [vmem:[%s4135_s3 + $0x160] sm:$0xff] }
  0xf6   :  { %1864 = vmatpush1.bf16.msra.mxu0 %v1863_v8  ;;  %v2141_v8 = vpack.c.bf16 %v1199_v4, %v1198_v3  ;;  %v1209_v3 = vld [vmem:[%s4135_s3 + $0xf8] sm:$0xff]  ;;  %v1240_v4 = vld [vmem:[%s4135_s3 + $0x1f0] sm:$0xff] }
  0xf7   :  { %2120 = vmatpush1.bf16.msra.mxu1 %v2119_v9  ;;  %1866 = vmatprep.subr.bf16.mxu0 %v1865_v10  ;;  %v1182_v9 = vld [vmem:[%s4135_s3 + $0x20] sm:$0xff]  ;;  %v1183_v10 = vld [vmem:[%s4135_s3 + $0x28] sm:$0xff] }
  0xf8   :  { %2122 = vmatprep.subr.bf16.mxu1 %v2121_v15  ;;  %v1201_v15 = vld [vmem:[%s4135_s3 + $0xb8] sm:$0xff]  ;;  %v2143_v18 = vpack.c.bf16 %v1183_v10, %v1182_v9  ;;  %v1224_v10 = vld [vmem:[%s4135_s3 + $0x170] sm:$0xff] }
  0xf9   :  { %v2145_v20 = vpack.c.bf16 %v1201_v15, %v1200_v14  ;;  %v540_v14 = vld [vmem:[%s4136_s2] sm:$0xf]  ;;  %v552_v15 = vsub.s32 2, %v2541_v61  ;;  %v2246_v61 = vmov 0.0|0.0  }
  0xfa   :  { %1868 = vmatpush1.bf16.msra.mxu0 %v1867_v21  ;;  %v1184_v21 = vld [vmem:[%s4135_s3 + $0x30] sm:$0xff] }
  0xfb   :  { %2124 = vmatpush1.bf16.msra.mxu1 %v2123_v23  ;;  %1870 = vmatprep.subr.bf16.mxu0 %v1869_v26  ;;  %v1185_v23 = vld [vmem:[%s4135_s3 + $0x38] sm:$0xff]  ;;  %v1216_v26 = vld [vmem:[%s4135_s3 + $0x130] sm:$0xff] }
  0xfc   :  { %2126 = vmatprep.subr.bf16.mxu1 %v2125_v30  ;;  %v1203_v30 = vld [vmem:[%s4135_s3 + $0xc8] sm:$0xff]  ;;  %v2147_v33 = vpack.c.bf16 %v1185_v23, %v1184_v21  ;;  %v2179_v34 = vpack.c.bf16 %v1217_v28, %v1216_v26  ;;  %v557_v21 = vrot.slane %v540_v14, %v556_v17 }
  0xfd   :  { %v2149_v35 = vpack.c.bf16 %v1203_v30, %v1202_v29 }
  0xfe   :  { %1872 = vmatpush1.bf16.msra.mxu0 %v1871_v36  ;;  %v1186_v36 = vld [vmem:[%s4135_s3 + $0x40] sm:$0xff] }
  0xff   :  { %2128 = vmatpush1.bf16.msra.mxu1 %v2127_v38  ;;  %1874 = vmatprep.subr.bf16.mxu0 %v1873_v39  ;;  %v1187_v38 = vld [vmem:[%s4135_s3 + $0x48] sm:$0xff]  ;;  %v1218_v39 = vld [vmem:[%s4135_s3 + $0x140] sm:$0xff] }
 0x100   :  { %2130 = vmatprep.subr.bf16.mxu1 %v2129_v42  ;;  %v1205_v42 = vld [vmem:[%s4135_s3 + $0xd8] sm:$0xff]  ;;  %v2151_v45 = vpack.c.bf16 %v1187_v38, %v1186_v36  ;;  %v2183_v46 = vpack.c.bf16 %v1219_v22, %v1218_v39  ;;  %v1398_v38 = vld [vmem:[%s4137_s5] sm:$0xff]  ;;  %v1399_v39 = vld [vmem:[%s4137_s5 + $0x8] sm:$0xff] }
 0x101   :  { %v2153_v47 = vpack.c.bf16 %v1205_v42, %v1204_v41  ;;  %v2198_v22 = vpack.c.bf16 %v1399_v39, %v1398_v38  ;;  %v1401_v41 = vld [vmem:[%s4137_s5 + $0x18] sm:$0xff] }
 0x102   :  { %1876 = vmatpush1.bf16.msra.mxu0 %v1875_v25  ;;  %v1188_v25 = vld [vmem:[%s4135_s3 + $0x50] sm:$0xff] }
 0x103   :  { %2132 = vmatpush1.bf16.msra.mxu1 %v2131_v48  ;;  %2134 = vmatprep.subr.bf16.mxu0 %v2133_v49  ;;  %v1189_v48 = vld [vmem:[%s4135_s3 + $0x58] sm:$0xff]  ;;  %v1220_v49 = vld [vmem:[%s4135_s3 + $0x150] sm:$0xff] }
 0x104   :  { %2166 = vmatprep.subr.bf16.mxu1 %v2165_v54  ;;  %v1207_v54 = vld [vmem:[%s4135_s3 + $0xe8] sm:$0xff]  ;;  %v2155_v11 = vpack.c.bf16 %v1189_v48, %v1188_v25  ;;  %v2187_v57 = vpack.c.bf16 %v1221_v52, %v1220_v49 }
 0x105   :  { %884 = vmatmul.mubr.f32.vlgmr.msra.gmra.mrb[0].mxu0 %v3512_v50  ;;  %v2157_v58 = vpack.c.bf16 %v1207_v54, %v1206_v53 }
 0x106   :  { %1168 = vmatmul.mubr.f32.vlgmr.msra.gmra.mrb[0].mxu1 %v3512_v50  ;;  %2136 = vmatpush3.bf16.msra.mxu0 %v2135_v24  ;;  %v2173_v50 = vpack.c.bf16 %v1231_v6, %v1230_v5  ;;  %v2189_v24 = vpack.c.bf16 %v1239_v56, %v1238_v55  ;;  %v2161_v5 = vpack.c.bf16 %v1209_v3, %v1208_v2  ;;  %v1241_v6 = vld [vmem:[%s4135_s3 + $0x1f8] sm:$0xff]  ;;  %v1411_v3 = vld [vmem:[%s4137_s5 + $0x68] sm:$0xff] }
 0x107   :  { %2168 = vmatpush3.bf16.msra.mxu1 %v2167_v59  ;;  %2138 = vmatprep.subr.bf16.mxu0 %v2137_v60  ;;  %v1190_v59 = vld [vmem:[%s4135_s3 + $0x60] sm:$0xff]  ;;  %v1191_v60 = vld [vmem:[%s4135_s3 + $0x68] sm:$0xff] }
 0x108   :  { %2170 = vmatprep.subr.bf16.mxu1 %v2169_v1  ;;  %v2159_v63 = vpack.c.bf16 %v1191_v60, %v1190_v59  ;;  %v2191_v1 = vpack.c.bf16 %v1223_v0, %v1222_v62  ;;  %v1406_v59 = vld [vmem:[%s4137_s5 + $0x40] sm:$0xff]  ;;  %v1407_v60 = vld [vmem:[%s4137_s5 + $0x48] sm:$0xff]  ;;  %v1409_v0 = vld [vmem:[%s4137_s5 + $0x58] sm:$0xff] }
 0x109   :  { %v2210_v62 = vpack.c.bf16 %v1407_v60, %v1406_v59 }
 0x10a   :  { %2140 = vmatpush3.bf16.msra.mxu0 %v2139_v7  ;;  %v1192_v7 = vld [vmem:[%s4135_s3 + $0x70] sm:$0xff] }
 0x10b   :  { %2172 = vmatpush3.bf16.msra.mxu1 %v2171_v37  ;;  %2142 = vmatprep.subr.bf16.mxu0 %v2141_v8  ;;  %v1193_v37 = vld [vmem:[%s4135_s3 + $0x78] sm:$0xff]  ;;  %v2193_v8 = vpack.c.bf16 %v1241_v6, %v1240_v4  ;;  %v2248_v4 = vmov 0.0   ;;  %v1412_v6 = vld [vmem:[%s4137_s5 + $0x70] sm:$0xff] }
 0x10c   :  { %2174 = vmatprep.subr.bf16.mxu1 %v2173_v50  ;;  %v2163_v9 = vpack.c.bf16 %v1193_v37, %v1192_v7  ;;  %v2195_v50 = vpack.c.bf16 %v1225_v12, %v1224_v10  ;;  %v1413_v7 = vld [vmem:[%s4137_s5 + $0x78] sm:$0xff] }
 0x10d   :  { %v2219_v37 = vpack.c.bf16 %v1413_v7, %v1412_v6 }
 0x10e   :  { %2144 = vmatpush3.bf16.msra.mxu0 %v2143_v18  ;;  %v545_v18 = vrot.slane %v540_v14, %v544_v13 }
 0x10f   :  { %2176 = vmatpush3.bf16.msra.mxu1 %v2175_v19  ;;  %2146 = vmatprep.subr.bf16.mxu0 %v2145_v20  ;;  %v553_v19 = vrot.slane %v540_v14, %v552_v15  ;;  %v549_v20 = vrot.slane %v540_v14, %v548_v16 }
 0x110   :  { %2178 = vmatprep.subr.bf16.mxu1 %v2177_v27 }
 0x112   :  { %2148 = vmatpush3.bf16.msra.mxu0 %v2147_v33 }
 0x113   :  { %2180 = vmatpush3.bf16.msra.mxu1 %v2179_v34  ;;  %2150 = vmatprep.subr.bf16.mxu0 %v2149_v35 }
 0x114   :  { %2182 = vmatprep.subr.bf16.mxu1 %v2181_v40  ;;  %v1400_v40 = vld [vmem:[%s4137_s5 + $0x10] sm:$0xff] }
 0x115   :  { %v2201_v42 = vpack.c.bf16 %v1401_v41, %v1400_v40 }
 0x116   :  { %2152 = vmatpush3.bf16.msra.mxu0 %v2151_v45  ;;  %v2204_v45 = vpack.c.bf16 %v1403_v44, %v1402_v43 }
 0x117   :  { %2184 = vmatpush3.bf16.msra.mxu1 %v2183_v46  ;;  %2154 = vmatprep.subr.bf16.mxu0 %v2153_v47  ;;  %v1404_v46 = vld [vmem:[%s4137_s5 + $0x30] sm:$0xff]  ;;  %v1405_v47 = vld [vmem:[%s4137_s5 + $0x38] sm:$0xff] }
 0x118   :  { %2186 = vmatprep.subr.bf16.mxu1 %v2185_v51  ;;  %v2207_v25 = vpack.c.bf16 %v1405_v47, %v1404_v46  ;;  %v1497_v51 = vld [vmem:[%s4138_s4] ss:$0 sm:$0xff] }
 0x11a   :  { %2156 = vmatpush3.bf16.msra.mxu0 %v2155_v11 }
 0x11b   :  { %2188 = vmatpush3.bf16.msra.mxu1 %v2187_v57  ;;  %2158 = vmatprep.subr.bf16.mxu0 %v2157_v58 }
 0x11c   :  { %2190 = vmatprep.subr.bf16.mxu1 %v2189_v24 }
 0x11e   :  { %2160 = vmatpush3.bf16.msra.mxu0 %v2159_v63  ;;  %v1408_v63 = vld [vmem:[%s4137_s5 + $0x50] sm:$0xff] }
 0x11f   :  { %2192 = vmatpush3.bf16.msra.mxu1 %v2191_v1  ;;  %2162 = vmatprep.subr.bf16.mxu0 %v2161_v5  ;;  %v1410_v1 = vld [vmem:[%s4137_s5 + $0x60] sm:$0xff]  ;;  %v2213_v2 = vpack.c.bf16 %v1409_v0, %v1408_v63 }
 0x120   :  { %2194 = vmatprep.subr.bf16.mxu1 %v2193_v8  ;;  %v2216_v5 = vpack.c.bf16 %v1411_v3, %v1410_v1 }
 0x122   :  { %2164 = vmatpush3.bf16.msra.mxu0 %v2163_v9 }
 0x123   :  { %2196 = vmatpush3.bf16.msra.mxu1 %v2195_v50  ;;  %2197 = vmatprep.subr.bf16.mxu0 %v2246_v61  ;;  %v1498_v50 = vld [vmem:[%s4140_s6] ss:$0 sm:$0xff] }
 0x1d8   :  { %v885_v23 = vpop.f32.mrb[0].mxu0 }
 0x1d9   :  { %v2221_v26 = vadd.f32 %v885_v23, %v545_v18  ;;  %v1169_v27 = vpop.f32.mrb[0].mxu1  ;;  %v887_v28 = vpop.f32.mrb[1].mxu0 }
 0x1da   :  { %v2223_v29 = vadd.f32 %v1169_v27, %v553_v19  ;;  %v2222_v30 = vadd.f32 %v887_v28, %v549_v20  ;;  %v1171_v31 = vpop.f32.mrb[1].mxu1 }
 0x1db   :  { %v2224_v32 = vadd.f32 %v1171_v31, %v557_v21  ;;  %v1174_v34 = vmax.f32 %v2221_v26, 0.0 }
 0x1dc   :  { %v1175_v33 = vmax.f32 %v2222_v30, 0.0  ;;  %v1176_v36 = vmax.f32 %v2223_v29, 0.0 }
 0x1dd   :  { %v1177_v35 = vmax.f32 %v2224_v32, 0.0 }
 0x1de   :  { %1313 = vmatprep.mubr.f32.mxu0 %v1175_v33 }
 0x1df   :  { %1383 = vmatprep.mubr.f32.mxu1 %v1177_v35  ;;  %1314 = vmatmul.mubr.f32.vlgmr.msra.gmra.mrb[2].mxu0 %v1174_v34 }
 0x1e0   :  { %1384 = vmatmul.mubr.f32.vlgmr.msra.gmra.mrb[2].mxu1 %v1176_v36  ;;  %2199 = vmatpush3.bf16.msra.mxu0 %v2198_v22 }
 0x1e1   :  { %2200 = vmatprep.subr.bf16.mxu0 %v2246_v61  ;;  %1618 = vmatprep.mubr.msk.f32.mxu0 %vm2247_vm1, %v2248_v4 }
 0x1e4   :  { %2202 = vmatpush3.bf16.msra.mxu0 %v2201_v42 }
 0x1e5   :  { %2203 = vmatprep.subr.bf16.mxu0 %v2246_v61 }
 0x1e8   :  { %2205 = vmatpush3.bf16.msra.mxu0 %v2204_v45 }
 0x1e9   :  { %2206 = vmatprep.subr.bf16.mxu0 %v2246_v61 }
 0x1ec   :  { %2208 = vmatpush3.bf16.msra.mxu0 %v2207_v25 }
 0x1ed   :  { %2209 = vmatprep.subr.bf16.mxu0 %v2246_v61 }
 0x1f0   :  { %2211 = vmatpush3.bf16.msra.mxu0 %v2210_v62 }
 0x1f1   :  { %2212 = vmatprep.subr.bf16.mxu0 %v2246_v61 }
 0x1f4   :  { %2214 = vmatpush3.bf16.msra.mxu0 %v2213_v2 }
 0x1f5   :  { %2215 = vmatprep.subr.bf16.mxu0 %v2246_v61 }
 0x1f8   :  { %2217 = vmatpush3.bf16.msra.mxu0 %v2216_v5 }
 0x1f9   :  { %2218 = vmatprep.subr.bf16.mxu0 %v2246_v61 }
 0x1fc   :  { %2220 = vmatpush3.bf16.msra.mxu0 %v2219_v37 }
 0x2b2   :  { %v1531_v48 = vpop.f32.mrb[2].mxu0 }
 0x2b3   :  { %v1566_v49 = vpop.f32.mrb[2].mxu1  ;;  %v1532_v52 = vpop.f32.mrb[3].mxu0 }
 0x2b4   :  { %v1533_v53 = vadd.f32 %v1532_v52, %v1531_v48  ;;  %v1567_v54 = vpop.f32.mrb[3].mxu1 }
 0x2b5   :  { %v1568_v55 = vadd.f32 %v1567_v54, %v1566_v49 }
 0x2b6   :  { %v1316_v56 = vadd.f32 %v1533_v53, %v1497_v51 }
 0x2b8   :  { %v1386_v11 = vadd.f32 %v1568_v55, %v1316_v56 }
 0x2ba   :  { %v1389_v57 = vmax.f32 %v1386_v11, 0.0 }
 0x2bc   :  { %v1390_v58 = vmul.f32 %v1389_v57, %v1389_v57 }
 0x2be   :  { %v1392_v24 = vsel %vm1391_vm0, %v1390_v58, 0.0 }
 0x2bf   :  { %1393 = vadd.xlane.f32.xlu0 %v1392_v24 }
 0x34c   :  { %v1394_v8 = vpop.xlane.xlu0 %1393 }
 0x34d   :  { %v1395_v9 = vmax.f32 %v1394_v8, 1e-24 }
 0x34f   :  { %2243 = vrsqrt.f32 %v1395_v9 }
 0x359   :  { %v2244_v10 = vpop.eup %2243 }
 0x35a   :  { %v1397_v12 = vmul.f32 %v2244_v10, %v1389_v57 }
 0x35c   :  { %1619 = vmatmul.mubr.f32.vlgmr.msra.gmra.mrb[4].mxu0 %v1397_v12  ;;  %1491 = vst [vmem:[%s4139_s7] sm:$0x3] %v1397_v12 }
 0x42f   :  { %v1487_v13 = vpop.f32.mrb[4].mxu0 }
 0x430   :  { %v1488_v14 = vadd.f32 %v1498_v50, %v1487_v13  ;;  %v1620_v15 = vpop.f32.mrb[5].mxu0 }
 0x432   :  { %1492 = vst [vmem:[%s4139_s7 + $0x2] sm:$0x3] %v1488_v14 }

</bundles_post_ra>
